<compile_context>
chip_gen: v6e
topology: v6e:2x2x1
jax: 0.10.0
libtpu: 0.0.40
codegen_flags: <defaults>
</compile_context>

<pallas_src>
import jax
import jax.numpy as jnp
from jax.experimental import pallas as pl
from jax.experimental.pallas import tpu as pltpu


# ----------------------------------------------------------------------------
# Fused kernel
# ----------------------------------------------------------------------------
def dqn_fused_kernel(x_ref, w1_ref, b1_ref, w2c_ref, b2_ref, w3c_ref, b3_ref,
                     fw1_ref, fb1_ref, fw2_ref, fb2_ref, fw3_ref, fb3_ref,
                     o_ref, pad1, pad2, act2, fc1in):
    b, h, w, cin = x_ref.shape          # (1, H, W, 4) per grid step
    c1 = w1_ref.shape[-1]               # 64
    c2 = w2c_ref.shape[-1]              # 128
    c3 = w3c_ref.shape[-1]              # 128
    hv, wv = h - 2, w - 2               # VALID conv3 output spatial
    rows = b * h * w                    # GEMM rows for conv1/conv2

    # ---- conv1: 3x3 SAME + ReLU (per-tap accumulation, K=4 per tap) ----------
    pad1[...] = jnp.zeros_like(pad1)
    pad1[:, 1:h + 1, 1:w + 1, :] = x_ref[...]
    a1 = jnp.zeros((rows, c1), jnp.float32)
    for dy in range(3):
        for dx in range(3):
            patch = pad1[:, dy:dy + h, dx:dx + w, :].reshape(rows, cin)
            a1 = a1 + jnp.dot(patch, w1_ref[dy, dx],
                              preferred_element_type=jnp.float32)
    a1 = jnp.maximum(a1 + b1_ref[...], 0.0)

    # ---- conv2: 3x3 SAME + ReLU, im2col single GEMM (K = 9*64 = 576) ---------
    pad2[...] = jnp.zeros_like(pad2)
    pad2[:, 1:h + 1, 1:w + 1, :] = a1.reshape(b, h, w, c1)
    col = jnp.concatenate(
        [pad2[:, dy:dy + h, dx:dx + w, :] for dy in range(3) for dx in range(3)],
        axis=-1).reshape(rows, 9 * c1)
    a2 = jnp.maximum(
        jnp.dot(col, w2c_ref[...], preferred_element_type=jnp.float32)
        + b2_ref[...], 0.0)
    act2[...] = a2.reshape(b, h, w, c2)

    # ---- conv3: 3x3 VALID + ReLU, im2col single GEMM (K = 9*128 = 1152) ------
    col = jnp.concatenate(
        [act2[:, dy:dy + hv, dx:dx + wv, :] for dy in range(3) for dx in range(3)],
        axis=-1).reshape(b * hv * wv, 9 * c2)
    a3 = jnp.maximum(
        jnp.dot(col, w3c_ref[...], preferred_element_type=jnp.float32)
        + b3_ref[...], 0.0).reshape(b, hv, wv, c3)

    # ---- flatten (HWC order) via 128-lane-aligned stores ----------------------
    for yy in range(hv):
        for xx in range(wv):
            p = yy * wv + xx
            fc1in[:, p * c3:(p + 1) * c3] = a3[:, yy, xx, :]

    # ---- classifier: Linear+ReLU -> Linear+ReLU -> Linear (128-lane padded) ---
    t = jnp.maximum(
        jnp.dot(fc1in[...], fw1_ref[...], preferred_element_type=jnp.float32)
        + fb1_ref[...], 0.0)
    t = jnp.maximum(
        jnp.dot(t, fw2_ref[...], preferred_element_type=jnp.float32)
        + fb2_ref[...], 0.0)
    t = jnp.dot(t, fw3_ref[...], preferred_element_type=jnp.float32) + fb3_ref[...]
    o_ref[...] = t.reshape(o_ref.shape)


# ----------------------------------------------------------------------------
# Wrapper
# ----------------------------------------------------------------------------
def dqn_forward(x_nchw, params):
    """Full DQN forward.  Input in PyTorch NCHW; converted to NHWC internally."""
    x = jnp.transpose(x_nchw, (0, 2, 3, 1)).astype(jnp.float32)     # -> NHWC
    n, h, w, cin = x.shape
    hv, wv = h - 2, w - 2
    c1 = params["w1"].shape[-1]
    c2 = params["w2"].shape[-1]
    c3 = params["w3"].shape[-1]
    d1 = params["fw1"].shape[-1]
    d2 = params["fw2"].shape[-1]
    na = params["fw3"].shape[-1]
    cw = 128                      # lane-dense width for the final Linear output

    # im2col-reshaped conv weights: row order (dy, dx, cin) matches the kernel concat.
    w2c = params["w2"].reshape(9 * c1, c2)
    w3c = params["w3"].reshape(9 * c2, c3)
    # Zero-pad the last Linear to 128 output lanes (sliced back after the call).
    fw3p = jnp.zeros((d2, cw), jnp.float32).at[:, :na].set(params["fw3"])
    fb3p = jnp.zeros((1, cw), jnp.float32).at[:, :na].set(params["fb3"][None, :])

    def full_spec(arr):
        zeros = (0,) * arr.ndim
        return pl.BlockSpec(arr.shape, lambda i: zeros)

    args = (
        x,
        params["w1"], params["b1"].reshape(1, c1),
        w2c, params["b2"].reshape(1, c2),
        w3c, params["b3"].reshape(1, c3),
        params["fw1"], params["fb1"].reshape(1, d1),
        params["fw2"], params["fb2"].reshape(1, d2),
        fw3p, fb3p,
    )
    in_specs = [pl.BlockSpec((1, h, w, cin), lambda i: (i, 0, 0, 0))]
    in_specs += [full_spec(a) for a in args[1:]]

    out = pl.pallas_call(
        dqn_fused_kernel,
        out_shape=jax.ShapeDtypeStruct((n, 1, cw), jnp.float32),
        grid=(n,),                                   # one image per grid step
        in_specs=in_specs,
        out_specs=pl.BlockSpec((1, 1, cw), lambda i: (i, 0, 0)),
        scratch_shapes=[
            pltpu.VMEM((1, h + 2, w + 2, cin), jnp.float32),   # padded input
            pltpu.VMEM((1, h + 2, w + 2, c1), jnp.float32),    # padded conv1 out
            pltpu.VMEM((1, h, w, c2), jnp.float32),            # conv2 out
            pltpu.VMEM((1, hv * wv * c3), jnp.float32),        # flattened conv3 out
        ],
        # "parallel" shards the batch grid across the 2 TensorCores on v7x;
        # harmless (sequential loop) on single-core v5e/v6e.
        compiler_params=pltpu.CompilerParams(dimension_semantics=("parallel",)),
    )(*args)
    return out[:, 0, :na]


# ----------------------------------------------------------------------------
# Pure-JAX reference (same NHWC convention) for correctness checking
# ----------------------------------------------------------------------------
def reference_forward(x_nchw, params):
    x = jnp.transpose(x_nchw, (0, 2, 3, 1)).astype(jnp.float32)

    def conv(x, w, b, pad):
        y = jax.lax.conv_general_dilated(
            x, w, (1, 1), pad,
            dimension_numbers=("NHWC", "HWIO", "NHWC"),
            precision=jax.lax.Precision.HIGHEST,
        )
        return jax.nn.relu(y + b)

    x = conv(x, params["w1"], params["b1"], "SAME")
    x = conv(x, params["w2"], params["b2"], "SAME")
    x = conv(x, params["w3"], params["b3"], "VALID")
    x = x.reshape(x.shape[0], -1)
    hi = jax.lax.Precision.HIGHEST
    x = jax.nn.relu(jnp.dot(x, params["fw1"], precision=hi) + params["fb1"])
    x = jax.nn.relu(jnp.dot(x, params["fw2"], precision=hi) + params["fb2"])
    return jnp.dot(x, params["fw3"], precision=hi) + params["fb3"]


# ----------------------------------------------------------------------------
# Parameter init + demo
# ----------------------------------------------------------------------------
def init_params(key, h, w, num_actions):
    h3, w3 = h - 2, w - 2                       # after 3rd conv (no padding)
    conv_output_size = 128 * h3 * w3
    ks = jax.random.split(key, 12)
    s = 0.05
    return {
        "w1": jax.random.normal(ks[0], (3, 3, 4, 64), jnp.float32) * s,
        "b1": jax.random.normal(ks[1], (64,), jnp.float32) * s,
        "w2": jax.random.normal(ks[2], (3, 3, 64, 128), jnp.float32) * s,
        "b2": jax.random.normal(ks[3], (128,), jnp.float32) * s,
        "w3": jax.random.normal(ks[4], (3, 3, 128, 128), jnp.float32) * s,
        "b3": jax.random.normal(ks[5], (128,), jnp.float32) * s,
        "fw1": jax.random.normal(ks[6], (conv_output_size, 128), jnp.float32) * s,
        "fb1": jax.random.normal(ks[7], (128,), jnp.float32) * s,
        "fw2": jax.random.normal(ks[8], (128, 128), jnp.float32) * s,
        "fb2": jax.random.normal(ks[9], (128,), jnp.float32) * s,
        "fw3": jax.random.normal(ks[10], (128, num_actions), jnp.float32) * s,
        "fb3": jax.random.normal(ks[11], (num_actions,), jnp.float32) * s,
    }


if __name__ == "__main__":
    N, C, H, W = 2, 4, 8, 8          # small shapes; input_shape = (4, 8, 8)
    NUM_ACTIONS = 6

    key = jax.random.PRNGKey(0)
    k_x, k_p = jax.random.split(key)
    x = jax.random.normal(k_x, (N, C, H, W), jnp.float32)    # NCHW, like PyTorch
    params = init_params(k_p, H, W, NUM_ACTIONS)

    out = jax.jit(dqn_forward)(x, params)
    out = jax.block_until_ready(out)

    ref = jax.block_until_ready(reference_forward(x, params))
    assert out.shape == (N, NUM_ACTIONS)
    assert jnp.allclose(out, ref, rtol=1e-2, atol=1e-3), (out, ref)

    print("KERNEL_OK")
</pallas_src>

<mosaic_0001>
module attributes {stable_mosaic.version = 11 : i64} {
  func.func @dqn_fused_kernel(%arg0: i32, %arg1: memref<1x8x8x4xf32, #tpu.memory_space<vmem>>, %arg2: memref<3x3x4x64xf32, #tpu.memory_space<vmem>>, %arg3: memref<1x64xf32, #tpu.memory_space<vmem>>, %arg4: memref<576x128xf32, #tpu.memory_space<vmem>>, %arg5: memref<1x128xf32, #tpu.memory_space<vmem>>, %arg6: memref<1152x128xf32, #tpu.memory_space<vmem>>, %arg7: memref<1x128xf32, #tpu.memory_space<vmem>>, %arg8: memref<4608x128xf32, #tpu.memory_space<vmem>>, %arg9: memref<1x128xf32, #tpu.memory_space<vmem>>, %arg10: memref<128x128xf32, #tpu.memory_space<vmem>>, %arg11: memref<1x128xf32, #tpu.memory_space<vmem>>, %arg12: memref<128x128xf32, #tpu.memory_space<vmem>>, %arg13: memref<1x128xf32, #tpu.memory_space<vmem>>, %arg14: memref<1x1x128xf32, #tpu.memory_space<vmem>>, %arg15: memref<1x10x10x4xf32, #tpu.memory_space<vmem>>, %arg16: memref<1x10x10x64xf32, #tpu.memory_space<vmem>>, %arg17: memref<1x8x8x128xf32, #tpu.memory_space<vmem>>, %arg18: memref<1x4608xf32, #tpu.memory_space<vmem>>) attributes {dimension_semantics = [#tpu.dimension_semantics<parallel>], iteration_bounds = array<i64: 2>, scalar_prefetch = 0 : i64, scratch_operands = 4 : i64, tpu.core_type = #tpu.core_type<tc>, window_params = [{transform_indices = @transform_0, window_bounds = array<i64: 1, 8, 8, 4>}, {pipeline_mode = #tpu.pipeline_mode<synchronous>, transform_indices = @transform_1, window_bounds = array<i64: 3, 3, 4, 64>}, {pipeline_mode = #tpu.pipeline_mode<synchronous>, transform_indices = @transform_2, window_bounds = array<i64: 1, 64>}, {pipeline_mode = #tpu.pipeline_mode<synchronous>, transform_indices = @transform_3, window_bounds = array<i64: 576, 128>}, {pipeline_mode = #tpu.pipeline_mode<synchronous>, transform_indices = @transform_4, window_bounds = array<i64: 1, 128>}, {pipeline_mode = #tpu.pipeline_mode<synchronous>, transform_indices = @transform_5, window_bounds = array<i64: 1152, 128>}, {pipeline_mode = #tpu.pipeline_mode<synchronous>, transform_indices = @transform_6, window_bounds = array<i64: 1, 128>}, {pipeline_mode = #tpu.pipeline_mode<synchronous>, transform_indices = @transform_7, window_bounds = array<i64: 4608, 128>}, {pipeline_mode = #tpu.pipeline_mode<synchronous>, transform_indices = @transform_8, window_bounds = array<i64: 1, 128>}, {pipeline_mode = #tpu.pipeline_mode<synchronous>, transform_indices = @transform_9, window_bounds = array<i64: 128, 128>}, {pipeline_mode = #tpu.pipeline_mode<synchronous>, transform_indices = @transform_10, window_bounds = array<i64: 1, 128>}, {pipeline_mode = #tpu.pipeline_mode<synchronous>, transform_indices = @transform_11, window_bounds = array<i64: 128, 128>}, {pipeline_mode = #tpu.pipeline_mode<synchronous>, transform_indices = @transform_12, window_bounds = array<i64: 1, 128>}, {transform_indices = @transform_13, window_bounds = array<i64: 1, 1, 128>}]} {
    %cst = arith.constant 0.000000e+00 : f32
    %0 = vector.broadcast %cst : f32 to vector<1x10x10x4xf32>
    %c0 = arith.constant 0 : index
    %c0_0 = arith.constant 0 : index
    %c0_1 = arith.constant 0 : index
    %c0_2 = arith.constant 0 : index
    %1 = vector.load %arg15[%c0, %c0_0, %c0_1, %c0_2] : memref<1x10x10x4xf32, #tpu.memory_space<vmem>>, vector<1x10x10x4xf32>
    tpu.vector_store %arg15[%c0, %c0_0, %c0_1, %c0_2], %0 {strides = array<i32>} : memref<1x10x10x4xf32, #tpu.memory_space<vmem>>, vector<1x10x10x4xf32>,
    %c0_3 = arith.constant 0 : index
    %c0_4 = arith.constant 0 : index
    %c0_5 = arith.constant 0 : index
    %c0_6 = arith.constant 0 : index
    %2 = vector.load %arg1[%c0_3, %c0_4, %c0_5, %c0_6] : memref<1x8x8x4xf32, #tpu.memory_space<vmem>>, vector<1x8x8x4xf32>
    %c0_7 = arith.constant 0 : index
    %c1 = arith.constant 1 : index
    %c1_8 = arith.constant 1 : index
    %c0_9 = arith.constant 0 : index
    %3 = vector.load %arg15[%c0_7, %c1, %c1_8, %c0_9] : memref<1x10x10x4xf32, #tpu.memory_space<vmem>>, vector<1x8x8x4xf32>
    tpu.vector_store %arg15[%c0_7, %c1, %c1_8, %c0_9], %2 {strides = array<i32>} : memref<1x10x10x4xf32, #tpu.memory_space<vmem>>, vector<1x8x8x4xf32>,
    %cst_10 = arith.constant 0.000000e+00 : f32
    %4 = vector.broadcast %cst_10 : f32 to vector<64x64xf32>
    %c0_11 = arith.constant 0 : index
    %c0_12 = arith.constant 0 : index
    %c0_13 = arith.constant 0 : index
    %c0_14 = arith.constant 0 : index
    %5 = vector.load %arg15[%c0_11, %c0_12, %c0_13, %c0_14] : memref<1x10x10x4xf32, #tpu.memory_space<vmem>>, vector<1x8x8x4xf32>
    %6 = vector.shape_cast %5 : vector<1x8x8x4xf32> to vector<64x4xf32>
    %c0_15 = arith.constant 0 : index
    %c0_16 = arith.constant 0 : index
    %c0_17 = arith.constant 0 : index
    %c0_18 = arith.constant 0 : index
    %7 = vector.load %arg2[%c0_15, %c0_16, %c0_17, %c0_18] : memref<3x3x4x64xf32, #tpu.memory_space<vmem>>, vector<1x1x4x64xf32>
    %8 = vector.shape_cast %7 : vector<1x1x4x64xf32> to vector<4x64xf32>
    %cst_19 = arith.constant dense<0.000000e+00> : vector<64x64xf32>
    %9 = tpu.matmul %6, %8, %cst_19 {dimension_numbers = #tpu.dot_dimension_numbers<[1], [0], [0], [1], [0, 0, 1, 1], [], []>} : vector<64x4xf32>, vector<4x64xf32>, vector<64x64xf32> -> vector<64x64xf32>
    %10 = arith.addf %4, %9 : vector<64x64xf32>
    %c0_20 = arith.constant 0 : index
    %c0_21 = arith.constant 0 : index
    %c1_22 = arith.constant 1 : index
    %c0_23 = arith.constant 0 : index
    %11 = vector.load %arg15[%c0_20, %c0_21, %c1_22, %c0_23] : memref<1x10x10x4xf32, #tpu.memory_space<vmem>>, vector<1x8x8x4xf32>
    %12 = vector.shape_cast %11 : vector<1x8x8x4xf32> to vector<64x4xf32>
    %c0_24 = arith.constant 0 : index
    %c1_25 = arith.constant 1 : index
    %c0_26 = arith.constant 0 : index
    %c0_27 = arith.constant 0 : index
    %13 = vector.load %arg2[%c0_24, %c1_25, %c0_26, %c0_27] : memref<3x3x4x64xf32, #tpu.memory_space<vmem>>, vector<1x1x4x64xf32>
    %14 = vector.shape_cast %13 : vector<1x1x4x64xf32> to vector<4x64xf32>
    %cst_28 = arith.constant dense<0.000000e+00> : vector<64x64xf32>
    %15 = tpu.matmul %12, %14, %cst_28 {dimension_numbers = #tpu.dot_dimension_numbers<[1], [0], [0], [1], [0, 0, 1, 1], [], []>} : vector<64x4xf32>, vector<4x64xf32>, vector<64x64xf32> -> vector<64x64xf32>
    %16 = arith.addf %10, %15 : vector<64x64xf32>
    %c0_29 = arith.constant 0 : index
    %c0_30 = arith.constant 0 : index
    %c2 = arith.constant 2 : index
    %c0_31 = arith.constant 0 : index
    %17 = vector.load %arg15[%c0_29, %c0_30, %c2, %c0_31] : memref<1x10x10x4xf32, #tpu.memory_space<vmem>>, vector<1x8x8x4xf32>
    %18 = vector.shape_cast %17 : vector<1x8x8x4xf32> to vector<64x4xf32>
    %c0_32 = arith.constant 0 : index
    %c2_33 = arith.constant 2 : index
    %c0_34 = arith.constant 0 : index
    %c0_35 = arith.constant 0 : index
    %19 = vector.load %arg2[%c0_32, %c2_33, %c0_34, %c0_35] : memref<3x3x4x64xf32, #tpu.memory_space<vmem>>, vector<1x1x4x64xf32>
    %20 = vector.shape_cast %19 : vector<1x1x4x64xf32> to vector<4x64xf32>
    %cst_36 = arith.constant dense<0.000000e+00> : vector<64x64xf32>
    %21 = tpu.matmul %18, %20, %cst_36 {dimension_numbers = #tpu.dot_dimension_numbers<[1], [0], [0], [1], [0, 0, 1, 1], [], []>} : vector<64x4xf32>, vector<4x64xf32>, vector<64x64xf32> -> vector<64x64xf32>
    %22 = arith.addf %16, %21 : vector<64x64xf32>
    %c0_37 = arith.constant 0 : index
    %c1_38 = arith.constant 1 : index
    %c0_39 = arith.constant 0 : index
    %c0_40 = arith.constant 0 : index
    %23 = vector.load %arg15[%c0_37, %c1_38, %c0_39, %c0_40] : memref<1x10x10x4xf32, #tpu.memory_space<vmem>>, vector<1x8x8x4xf32>
    %24 = vector.shape_cast %23 : vector<1x8x8x4xf32> to vector<64x4xf32>
    %c1_41 = arith.constant 1 : index
    %c0_42 = arith.constant 0 : index
    %c0_43 = arith.constant 0 : index
    %c0_44 = arith.constant 0 : index
    %25 = vector.load %arg2[%c1_41, %c0_42, %c0_43, %c0_44] : memref<3x3x4x64xf32, #tpu.memory_space<vmem>>, vector<1x1x4x64xf32>
    %26 = vector.shape_cast %25 : vector<1x1x4x64xf32> to vector<4x64xf32>
    %cst_45 = arith.constant dense<0.000000e+00> : vector<64x64xf32>
    %27 = tpu.matmul %24, %26, %cst_45 {dimension_numbers = #tpu.dot_dimension_numbers<[1], [0], [0], [1], [0, 0, 1, 1], [], []>} : vector<64x4xf32>, vector<4x64xf32>, vector<64x64xf32> -> vector<64x64xf32>
    %28 = arith.addf %22, %27 : vector<64x64xf32>
    %c0_46 = arith.constant 0 : index
    %c1_47 = arith.constant 1 : index
    %c1_48 = arith.constant 1 : index
    %c0_49 = arith.constant 0 : index
    %29 = vector.load %arg15[%c0_46, %c1_47, %c1_48, %c0_49] : memref<1x10x10x4xf32, #tpu.memory_space<vmem>>, vector<1x8x8x4xf32>
    %30 = vector.shape_cast %29 : vector<1x8x8x4xf32> to vector<64x4xf32>
    %c1_50 = arith.constant 1 : index
    %c1_51 = arith.constant 1 : index
    %c0_52 = arith.constant 0 : index
    %c0_53 = arith.constant 0 : index
    %31 = vector.load %arg2[%c1_50, %c1_51, %c0_52, %c0_53] : memref<3x3x4x64xf32, #tpu.memory_space<vmem>>, vector<1x1x4x64xf32>
    %32 = vector.shape_cast %31 : vector<1x1x4x64xf32> to vector<4x64xf32>
    %cst_54 = arith.constant dense<0.000000e+00> : vector<64x64xf32>
    %33 = tpu.matmul %30, %32, %cst_54 {dimension_numbers = #tpu.dot_dimension_numbers<[1], [0], [0], [1], [0, 0, 1, 1], [], []>} : vector<64x4xf32>, vector<4x64xf32>, vector<64x64xf32> -> vector<64x64xf32>
    %34 = arith.addf %28, %33 : vector<64x64xf32>
    %c0_55 = arith.constant 0 : index
    %c1_56 = arith.constant 1 : index
    %c2_57 = arith.constant 2 : index
    %c0_58 = arith.constant 0 : index
    %35 = vector.load %arg15[%c0_55, %c1_56, %c2_57, %c0_58] : memref<1x10x10x4xf32, #tpu.memory_space<vmem>>, vector<1x8x8x4xf32>
    %36 = vector.shape_cast %35 : vector<1x8x8x4xf32> to vector<64x4xf32>
    %c1_59 = arith.constant 1 : index
    %c2_60 = arith.constant 2 : index
    %c0_61 = arith.constant 0 : index
    %c0_62 = arith.constant 0 : index
    %37 = vector.load %arg2[%c1_59, %c2_60, %c0_61, %c0_62] : memref<3x3x4x64xf32, #tpu.memory_space<vmem>>, vector<1x1x4x64xf32>
    %38 = vector.shape_cast %37 : vector<1x1x4x64xf32> to vector<4x64xf32>
    %cst_63 = arith.constant dense<0.000000e+00> : vector<64x64xf32>
    %39 = tpu.matmul %36, %38, %cst_63 {dimension_numbers = #tpu.dot_dimension_numbers<[1], [0], [0], [1], [0, 0, 1, 1], [], []>} : vector<64x4xf32>, vector<4x64xf32>, vector<64x64xf32> -> vector<64x64xf32>
    %40 = arith.addf %34, %39 : vector<64x64xf32>
    %c0_64 = arith.constant 0 : index
    %c2_65 = arith.constant 2 : index
    %c0_66 = arith.constant 0 : index
    %c0_67 = arith.constant 0 : index
    %41 = vector.load %arg15[%c0_64, %c2_65, %c0_66, %c0_67] : memref<1x10x10x4xf32, #tpu.memory_space<vmem>>, vector<1x8x8x4xf32>
    %42 = vector.shape_cast %41 : vector<1x8x8x4xf32> to vector<64x4xf32>
    %c2_68 = arith.constant 2 : index
    %c0_69 = arith.constant 0 : index
    %c0_70 = arith.constant 0 : index
    %c0_71 = arith.constant 0 : index
    %43 = vector.load %arg2[%c2_68, %c0_69, %c0_70, %c0_71] : memref<3x3x4x64xf32, #tpu.memory_space<vmem>>, vector<1x1x4x64xf32>
    %44 = vector.shape_cast %43 : vector<1x1x4x64xf32> to vector<4x64xf32>
    %cst_72 = arith.constant dense<0.000000e+00> : vector<64x64xf32>
    %45 = tpu.matmul %42, %44, %cst_72 {dimension_numbers = #tpu.dot_dimension_numbers<[1], [0], [0], [1], [0, 0, 1, 1], [], []>} : vector<64x4xf32>, vector<4x64xf32>, vector<64x64xf32> -> vector<64x64xf32>
    %46 = arith.addf %40, %45 : vector<64x64xf32>
    %c0_73 = arith.constant 0 : index
    %c2_74 = arith.constant 2 : index
    %c1_75 = arith.constant 1 : index
    %c0_76 = arith.constant 0 : index
    %47 = vector.load %arg15[%c0_73, %c2_74, %c1_75, %c0_76] : memref<1x10x10x4xf32, #tpu.memory_space<vmem>>, vector<1x8x8x4xf32>
    %48 = vector.shape_cast %47 : vector<1x8x8x4xf32> to vector<64x4xf32>
    %c2_77 = arith.constant 2 : index
    %c1_78 = arith.constant 1 : index
    %c0_79 = arith.constant 0 : index
    %c0_80 = arith.constant 0 : index
    %49 = vector.load %arg2[%c2_77, %c1_78, %c0_79, %c0_80] : memref<3x3x4x64xf32, #tpu.memory_space<vmem>>, vector<1x1x4x64xf32>
    %50 = vector.shape_cast %49 : vector<1x1x4x64xf32> to vector<4x64xf32>
    %cst_81 = arith.constant dense<0.000000e+00> : vector<64x64xf32>
    %51 = tpu.matmul %48, %50, %cst_81 {dimension_numbers = #tpu.dot_dimension_numbers<[1], [0], [0], [1], [0, 0, 1, 1], [], []>} : vector<64x4xf32>, vector<4x64xf32>, vector<64x64xf32> -> vector<64x64xf32>
    %52 = arith.addf %46, %51 : vector<64x64xf32>
    %c0_82 = arith.constant 0 : index
    %c2_83 = arith.constant 2 : index
    %c2_84 = arith.constant 2 : index
    %c0_85 = arith.constant 0 : index
    %53 = vector.load %arg15[%c0_82, %c2_83, %c2_84, %c0_85] : memref<1x10x10x4xf32, #tpu.memory_space<vmem>>, vector<1x8x8x4xf32>
    %54 = vector.shape_cast %53 : vector<1x8x8x4xf32> to vector<64x4xf32>
    %c2_86 = arith.constant 2 : index
    %c2_87 = arith.constant 2 : index
    %c0_88 = arith.constant 0 : index
    %c0_89 = arith.constant 0 : index
    %55 = vector.load %arg2[%c2_86, %c2_87, %c0_88, %c0_89] : memref<3x3x4x64xf32, #tpu.memory_space<vmem>>, vector<1x1x4x64xf32>
    %56 = vector.shape_cast %55 : vector<1x1x4x64xf32> to vector<4x64xf32>
    %cst_90 = arith.constant dense<0.000000e+00> : vector<64x64xf32>
    %57 = tpu.matmul %54, %56, %cst_90 {dimension_numbers = #tpu.dot_dimension_numbers<[1], [0], [0], [1], [0, 0, 1, 1], [], []>} : vector<64x4xf32>, vector<4x64xf32>, vector<64x64xf32> -> vector<64x64xf32>
    %58 = arith.addf %52, %57 : vector<64x64xf32>
    %c0_91 = arith.constant 0 : index
    %c0_92 = arith.constant 0 : index
    %59 = vector.load %arg3[%c0_91, %c0_92] : memref<1x64xf32, #tpu.memory_space<vmem>>, vector<1x64xf32>
    %60 = vector.broadcast %59 : vector<1x64xf32> to vector<64x64xf32>
    %61 = arith.addf %58, %60 : vector<64x64xf32>
    %cst_93 = arith.constant 0.000000e+00 : f32
    %62 = vector.broadcast %cst_93 : f32 to vector<64x64xf32>
    %63 = arith.maximumf %61, %62 : vector<64x64xf32>
    %cst_94 = arith.constant 0.000000e+00 : f32
    %64 = vector.broadcast %cst_94 : f32 to vector<1x10x10x64xf32>
    %c0_95 = arith.constant 0 : index
    %c0_96 = arith.constant 0 : index
    %c0_97 = arith.constant 0 : index
    %c0_98 = arith.constant 0 : index
    %65 = vector.load %arg16[%c0_95, %c0_96, %c0_97, %c0_98] : memref<1x10x10x64xf32, #tpu.memory_space<vmem>>, vector<1x10x10x64xf32>
    tpu.vector_store %arg16[%c0_95, %c0_96, %c0_97, %c0_98], %64 {strides = array<i32>} : memref<1x10x10x64xf32, #tpu.memory_space<vmem>>, vector<1x10x10x64xf32>,
    %66 = vector.shape_cast %63 : vector<64x64xf32> to vector<1x8x8x64xf32>
    %c0_99 = arith.constant 0 : index
    %c1_100 = arith.constant 1 : index
    %c1_101 = arith.constant 1 : index
    %c0_102 = arith.constant 0 : index
    %67 = vector.load %arg16[%c0_99, %c1_100, %c1_101, %c0_102] : memref<1x10x10x64xf32, #tpu.memory_space<vmem>>, vector<1x8x8x64xf32>
    tpu.vector_store %arg16[%c0_99, %c1_100, %c1_101, %c0_102], %66 {strides = array<i32>} : memref<1x10x10x64xf32, #tpu.memory_space<vmem>>, vector<1x8x8x64xf32>,
    %c0_103 = arith.constant 0 : index
    %c0_104 = arith.constant 0 : index
    %c0_105 = arith.constant 0 : index
    %c0_106 = arith.constant 0 : index
    %68 = vector.load %arg16[%c0_103, %c0_104, %c0_105, %c0_106] : memref<1x10x10x64xf32, #tpu.memory_space<vmem>>, vector<1x8x8x64xf32>
    %c0_107 = arith.constant 0 : index
    %c0_108 = arith.constant 0 : index
    %c1_109 = arith.constant 1 : index
    %c0_110 = arith.constant 0 : index
    %69 = vector.load %arg16[%c0_107, %c0_108, %c1_109, %c0_110] : memref<1x10x10x64xf32, #tpu.memory_space<vmem>>, vector<1x8x8x64xf32>
    %c0_111 = arith.constant 0 : index
    %c0_112 = arith.constant 0 : index
    %c2_113 = arith.constant 2 : index
    %c0_114 = arith.constant 0 : index
    %70 = vector.load %arg16[%c0_111, %c0_112, %c2_113, %c0_114] : memref<1x10x10x64xf32, #tpu.memory_space<vmem>>, vector<1x8x8x64xf32>
    %c0_115 = arith.constant 0 : index
    %c1_116 = arith.constant 1 : index
    %c0_117 = arith.constant 0 : index
    %c0_118 = arith.constant 0 : index
    %71 = vector.load %arg16[%c0_115, %c1_116, %c0_117, %c0_118] : memref<1x10x10x64xf32, #tpu.memory_space<vmem>>, vector<1x8x8x64xf32>
    %c0_119 = arith.constant 0 : index
    %c1_120 = arith.constant 1 : index
    %c1_121 = arith.constant 1 : index
    %c0_122 = arith.constant 0 : index
    %72 = vector.load %arg16[%c0_119, %c1_120, %c1_121, %c0_122] : memref<1x10x10x64xf32, #tpu.memory_space<vmem>>, vector<1x8x8x64xf32>
    %c0_123 = arith.constant 0 : index
    %c1_124 = arith.constant 1 : index
    %c2_125 = arith.constant 2 : index
    %c0_126 = arith.constant 0 : index
    %73 = vector.load %arg16[%c0_123, %c1_124, %c2_125, %c0_126] : memref<1x10x10x64xf32, #tpu.memory_space<vmem>>, vector<1x8x8x64xf32>
    %c0_127 = arith.constant 0 : index
    %c2_128 = arith.constant 2 : index
    %c0_129 = arith.constant 0 : index
    %c0_130 = arith.constant 0 : index
    %74 = vector.load %arg16[%c0_127, %c2_128, %c0_129, %c0_130] : memref<1x10x10x64xf32, #tpu.memory_space<vmem>>, vector<1x8x8x64xf32>
    %c0_131 = arith.constant 0 : index
    %c2_132 = arith.constant 2 : index
    %c1_133 = arith.constant 1 : index
    %c0_134 = arith.constant 0 : index
    %75 = vector.load %arg16[%c0_131, %c2_132, %c1_133, %c0_134] : memref<1x10x10x64xf32, #tpu.memory_space<vmem>>, vector<1x8x8x64xf32>
    %c0_135 = arith.constant 0 : index
    %c2_136 = arith.constant 2 : index
    %c2_137 = arith.constant 2 : index
    %c0_138 = arith.constant 0 : index
    %76 = vector.load %arg16[%c0_135, %c2_136, %c2_137, %c0_138] : memref<1x10x10x64xf32, #tpu.memory_space<vmem>>, vector<1x8x8x64xf32>
    %77 = tpu.concatenate %68, %69, %70, %71, %72, %73, %74, %75, %76 in 3 : vector<1x8x8x64xf32>, vector<1x8x8x64xf32>, vector<1x8x8x64xf32>, vector<1x8x8x64xf32>, vector<1x8x8x64xf32>, vector<1x8x8x64xf32>, vector<1x8x8x64xf32>, vector<1x8x8x64xf32>, vector<1x8x8x64xf32> -> vector<1x8x8x576xf32>
    %78 = vector.shape_cast %77 : vector<1x8x8x576xf32> to vector<64x576xf32>
    %c0_139 = arith.constant 0 : index
    %c0_140 = arith.constant 0 : index
    %79 = vector.load %arg4[%c0_139, %c0_140] : memref<576x128xf32, #tpu.memory_space<vmem>>, vector<576x128xf32>
    %cst_141 = arith.constant dense<0.000000e+00> : vector<64x128xf32>
    %80 = tpu.matmul %78, %79, %cst_141 {dimension_numbers = #tpu.dot_dimension_numbers<[1], [0], [0], [1], [0, 0, 1, 1], [], []>} : vector<64x576xf32>, vector<576x128xf32>, vector<64x128xf32> -> vector<64x128xf32>
    %c0_142 = arith.constant 0 : index
    %c0_143 = arith.constant 0 : index
    %81 = vector.load %arg5[%c0_142, %c0_143] : memref<1x128xf32, #tpu.memory_space<vmem>>, vector<1x128xf32>
    %82 = vector.broadcast %81 : vector<1x128xf32> to vector<64x128xf32>
    %83 = arith.addf %80, %82 : vector<64x128xf32>
    %cst_144 = arith.constant 0.000000e+00 : f32
    %84 = vector.broadcast %cst_144 : f32 to vector<64x128xf32>
    %85 = arith.maximumf %83, %84 : vector<64x128xf32>
    %86 = vector.shape_cast %85 : vector<64x128xf32> to vector<1x8x8x128xf32>
    %c0_145 = arith.constant 0 : index
    %c0_146 = arith.constant 0 : index
    %c0_147 = arith.constant 0 : index
    %c0_148 = arith.constant 0 : index
    %87 = vector.load %arg17[%c0_145, %c0_146, %c0_147, %c0_148] : memref<1x8x8x128xf32, #tpu.memory_space<vmem>>, vector<1x8x8x128xf32>
    tpu.vector_store %arg17[%c0_145, %c0_146, %c0_147, %c0_148], %86 {strides = array<i32>} : memref<1x8x8x128xf32, #tpu.memory_space<vmem>>, vector<1x8x8x128xf32>,
    %c0_149 = arith.constant 0 : index
    %c0_150 = arith.constant 0 : index
    %c0_151 = arith.constant 0 : index
    %c0_152 = arith.constant 0 : index
    %88 = vector.load %arg17[%c0_149, %c0_150, %c0_151, %c0_152] : memref<1x8x8x128xf32, #tpu.memory_space<vmem>>, vector<1x6x6x128xf32>
    %c0_153 = arith.constant 0 : index
    %c0_154 = arith.constant 0 : index
    %c1_155 = arith.constant 1 : index
    %c0_156 = arith.constant 0 : index
    %89 = vector.load %arg17[%c0_153, %c0_154, %c1_155, %c0_156] : memref<1x8x8x128xf32, #tpu.memory_space<vmem>>, vector<1x6x6x128xf32>
    %c0_157 = arith.constant 0 : index
    %c0_158 = arith.constant 0 : index
    %c2_159 = arith.constant 2 : index
    %c0_160 = arith.constant 0 : index
    %90 = vector.load %arg17[%c0_157, %c0_158, %c2_159, %c0_160] : memref<1x8x8x128xf32, #tpu.memory_space<vmem>>, vector<1x6x6x128xf32>
    %c0_161 = arith.constant 0 : index
    %c1_162 = arith.constant 1 : index
    %c0_163 = arith.constant 0 : index
    %c0_164 = arith.constant 0 : index
    %91 = vector.load %arg17[%c0_161, %c1_162, %c0_163, %c0_164] : memref<1x8x8x128xf32, #tpu.memory_space<vmem>>, vector<1x6x6x128xf32>
    %c0_165 = arith.constant 0 : index
    %c1_166 = arith.constant 1 : index
    %c1_167 = arith.constant 1 : index
    %c0_168 = arith.constant 0 : index
    %92 = vector.load %arg17[%c0_165, %c1_166, %c1_167, %c0_168] : memref<1x8x8x128xf32, #tpu.memory_space<vmem>>, vector<1x6x6x128xf32>
    %c0_169 = arith.constant 0 : index
    %c1_170 = arith.constant 1 : index
    %c2_171 = arith.constant 2 : index
    %c0_172 = arith.constant 0 : index
    %93 = vector.load %arg17[%c0_169, %c1_170, %c2_171, %c0_172] : memref<1x8x8x128xf32, #tpu.memory_space<vmem>>, vector<1x6x6x128xf32>
    %c0_173 = arith.constant 0 : index
    %c2_174 = arith.constant 2 : index
    %c0_175 = arith.constant 0 : index
    %c0_176 = arith.constant 0 : index
    %94 = vector.load %arg17[%c0_173, %c2_174, %c0_175, %c0_176] : memref<1x8x8x128xf32, #tpu.memory_space<vmem>>, vector<1x6x6x128xf32>
    %c0_177 = arith.constant 0 : index
    %c2_178 = arith.constant 2 : index
    %c1_179 = arith.constant 1 : index
    %c0_180 = arith.constant 0 : index
    %95 = vector.load %arg17[%c0_177, %c2_178, %c1_179, %c0_180] : memref<1x8x8x128xf32, #tpu.memory_space<vmem>>, vector<1x6x6x128xf32>
    %c0_181 = arith.constant 0 : index
    %c2_182 = arith.constant 2 : index
    %c2_183 = arith.constant 2 : index
    %c0_184 = arith.constant 0 : index
    %96 = vector.load %arg17[%c0_181, %c2_182, %c2_183, %c0_184] : memref<1x8x8x128xf32, #tpu.memory_space<vmem>>, vector<1x6x6x128xf32>
    %97 = tpu.concatenate %88, %89, %90, %91, %92, %93, %94, %95, %96 in 3 : vector<1x6x6x128xf32>, vector<1x6x6x128xf32>, vector<1x6x6x128xf32>, vector<1x6x6x128xf32>, vector<1x6x6x128xf32>, vector<1x6x6x128xf32>, vector<1x6x6x128xf32>, vector<1x6x6x128xf32>, vector<1x6x6x128xf32> -> vector<1x6x6x1152xf32>
    %98 = vector.shape_cast %97 : vector<1x6x6x1152xf32> to vector<36x1152xf32>
    %c0_185 = arith.constant 0 : index
    %c0_186 = arith.constant 0 : index
    %99 = vector.load %arg6[%c0_185, %c0_186] : memref<1152x128xf32, #tpu.memory_space<vmem>>, vector<1152x128xf32>
    %cst_187 = arith.constant dense<0.000000e+00> : vector<36x128xf32>
    %100 = tpu.matmul %98, %99, %cst_187 {dimension_numbers = #tpu.dot_dimension_numbers<[1], [0], [0], [1], [0, 0, 1, 1], [], []>} : vector<36x1152xf32>, vector<1152x128xf32>, vector<36x128xf32> -> vector<36x128xf32>
    %c0_188 = arith.constant 0 : index
    %c0_189 = arith.constant 0 : index
    %101 = vector.load %arg7[%c0_188, %c0_189] : memref<1x128xf32, #tpu.memory_space<vmem>>, vector<1x128xf32>
    %102 = vector.broadcast %101 : vector<1x128xf32> to vector<36x128xf32>
    %103 = arith.addf %100, %102 : vector<36x128xf32>
    %cst_190 = arith.constant 0.000000e+00 : f32
    %104 = vector.broadcast %cst_190 : f32 to vector<36x128xf32>
    %105 = arith.maximumf %103, %104 : vector<36x128xf32>
    %106 = vector.shape_cast %105 : vector<36x128xf32> to vector<1x6x6x128xf32>
    %107 = vector.extract_strided_slice %106 {offsets = [0, 0, 0, 0], sizes = [1, 1, 1, 128], strides = [1, 1, 1, 1]} : vector<1x6x6x128xf32> to vector<1x1x1x128xf32>
    %108 = vector.shape_cast %107 : vector<1x1x1x128xf32> to vector<1x128xf32>
    %c0_191 = arith.constant 0 : index
    %c0_192 = arith.constant 0 : index
    %109 = vector.load %arg18[%c0_191, %c0_192] : memref<1x4608xf32, #tpu.memory_space<vmem>>, vector<1x128xf32>
    tpu.vector_store %arg18[%c0_191, %c0_192], %108 {strides = array<i32>} : memref<1x4608xf32, #tpu.memory_space<vmem>>, vector<1x128xf32>,
    %110 = vector.extract_strided_slice %106 {offsets = [0, 0, 1, 0], sizes = [1, 1, 1, 128], strides = [1, 1, 1, 1]} : vector<1x6x6x128xf32> to vector<1x1x1x128xf32>
    %111 = vector.shape_cast %110 : vector<1x1x1x128xf32> to vector<1x128xf32>
    %c0_193 = arith.constant 0 : index
    %c128 = arith.constant 128 : index
    %112 = vector.load %arg18[%c0_193, %c128] : memref<1x4608xf32, #tpu.memory_space<vmem>>, vector<1x128xf32>
    tpu.vector_store %arg18[%c0_193, %c128], %111 {strides = array<i32>} : memref<1x4608xf32, #tpu.memory_space<vmem>>, vector<1x128xf32>,
    %113 = vector.extract_strided_slice %106 {offsets = [0, 0, 2, 0], sizes = [1, 1, 1, 128], strides = [1, 1, 1, 1]} : vector<1x6x6x128xf32> to vector<1x1x1x128xf32>
    %114 = vector.shape_cast %113 : vector<1x1x1x128xf32> to vector<1x128xf32>
    %c0_194 = arith.constant 0 : index
    %c256 = arith.constant 256 : index
    %115 = vector.load %arg18[%c0_194, %c256] : memref<1x4608xf32, #tpu.memory_space<vmem>>, vector<1x128xf32>
    tpu.vector_store %arg18[%c0_194, %c256], %114 {strides = array<i32>} : memref<1x4608xf32, #tpu.memory_space<vmem>>, vector<1x128xf32>,
    %116 = vector.extract_strided_slice %106 {offsets = [0, 0, 3, 0], sizes = [1, 1, 1, 128], strides = [1, 1, 1, 1]} : vector<1x6x6x128xf32> to vector<1x1x1x128xf32>
    %117 = vector.shape_cast %116 : vector<1x1x1x128xf32> to vector<1x128xf32>
    %c0_195 = arith.constant 0 : index
    %c384 = arith.constant 384 : index
    %118 = vector.load %arg18[%c0_195, %c384] : memref<1x4608xf32, #tpu.memory_space<vmem>>, vector<1x128xf32>
    tpu.vector_store %arg18[%c0_195, %c384], %117 {strides = array<i32>} : memref<1x4608xf32, #tpu.memory_space<vmem>>, vector<1x128xf32>,
    %119 = vector.extract_strided_slice %106 {offsets = [0, 0, 4, 0], sizes = [1, 1, 1, 128], strides = [1, 1, 1, 1]} : vector<1x6x6x128xf32> to vector<1x1x1x128xf32>
    %120 = vector.shape_cast %119 : vector<1x1x1x128xf32> to vector<1x128xf32>
    %c0_196 = arith.constant 0 : index
    %c512 = arith.constant 512 : index
    %121 = vector.load %arg18[%c0_196, %c512] : memref<1x4608xf32, #tpu.memory_space<vmem>>, vector<1x128xf32>
    tpu.vector_store %arg18[%c0_196, %c512], %120 {strides = array<i32>} : memref<1x4608xf32, #tpu.memory_space<vmem>>, vector<1x128xf32>,
    %122 = vector.extract_strided_slice %106 {offsets = [0, 0, 5, 0], sizes = [1, 1, 1, 128], strides = [1, 1, 1, 1]} : vector<1x6x6x128xf32> to vector<1x1x1x128xf32>
    %123 = vector.shape_cast %122 : vector<1x1x1x128xf32> to vector<1x128xf32>
    %c0_197 = arith.constant 0 : index
    %c640 = arith.constant 640 : index
    %124 = vector.load %arg18[%c0_197, %c640] : memref<1x4608xf32, #tpu.memory_space<vmem>>, vector<1x128xf32>
    tpu.vector_store %arg18[%c0_197, %c640], %123 {strides = array<i32>} : memref<1x4608xf32, #tpu.memory_space<vmem>>, vector<1x128xf32>,
    %125 = vector.extract_strided_slice %106 {offsets = [0, 1, 0, 0], sizes = [1, 1, 1, 128], strides = [1, 1, 1, 1]} : vector<1x6x6x128xf32> to vector<1x1x1x128xf32>
    %126 = vector.shape_cast %125 : vector<1x1x1x128xf32> to vector<1x128xf32>
    %c0_198 = arith.constant 0 : index
    %c768 = arith.constant 768 : index
    %127 = vector.load %arg18[%c0_198, %c768] : memref<1x4608xf32, #tpu.memory_space<vmem>>, vector<1x128xf32>
    tpu.vector_store %arg18[%c0_198, %c768], %126 {strides = array<i32>} : memref<1x4608xf32, #tpu.memory_space<vmem>>, vector<1x128xf32>,
    %128 = vector.extract_strided_slice %106 {offsets = [0, 1, 1, 0], sizes = [1, 1, 1, 128], strides = [1, 1, 1, 1]} : vector<1x6x6x128xf32> to vector<1x1x1x128xf32>
    %129 = vector.shape_cast %128 : vector<1x1x1x128xf32> to vector<1x128xf32>
    %c0_199 = arith.constant 0 : index
    %c896 = arith.constant 896 : index
    %130 = vector.load %arg18[%c0_199, %c896] : memref<1x4608xf32, #tpu.memory_space<vmem>>, vector<1x128xf32>
    tpu.vector_store %arg18[%c0_199, %c896], %129 {strides = array<i32>} : memref<1x4608xf32, #tpu.memory_space<vmem>>, vector<1x128xf32>,
    %131 = vector.extract_strided_slice %106 {offsets = [0, 1, 2, 0], sizes = [1, 1, 1, 128], strides = [1, 1, 1, 1]} : vector<1x6x6x128xf32> to vector<1x1x1x128xf32>
    %132 = vector.shape_cast %131 : vector<1x1x1x128xf32> to vector<1x128xf32>
    %c0_200 = arith.constant 0 : index
    %c1024 = arith.constant 1024 : index
    %133 = vector.load %arg18[%c0_200, %c1024] : memref<1x4608xf32, #tpu.memory_space<vmem>>, vector<1x128xf32>
    tpu.vector_store %arg18[%c0_200, %c1024], %132 {strides = array<i32>} : memref<1x4608xf32, #tpu.memory_space<vmem>>, vector<1x128xf32>,
    %134 = vector.extract_strided_slice %106 {offsets = [0, 1, 3, 0], sizes = [1, 1, 1, 128], strides = [1, 1, 1, 1]} : vector<1x6x6x128xf32> to vector<1x1x1x128xf32>
    %135 = vector.shape_cast %134 : vector<1x1x1x128xf32> to vector<1x128xf32>
    %c0_201 = arith.constant 0 : index
    %c1152 = arith.constant 1152 : index
    %136 = vector.load %arg18[%c0_201, %c1152] : memref<1x4608xf32, #tpu.memory_space<vmem>>, vector<1x128xf32>
    tpu.vector_store %arg18[%c0_201, %c1152], %135 {strides = array<i32>} : memref<1x4608xf32, #tpu.memory_space<vmem>>, vector<1x128xf32>,
    %137 = vector.extract_strided_slice %106 {offsets = [0, 1, 4, 0], sizes = [1, 1, 1, 128], strides = [1, 1, 1, 1]} : vector<1x6x6x128xf32> to vector<1x1x1x128xf32>
    %138 = vector.shape_cast %137 : vector<1x1x1x128xf32> to vector<1x128xf32>
    %c0_202 = arith.constant 0 : index
    %c1280 = arith.constant 1280 : index
    %139 = vector.load %arg18[%c0_202, %c1280] : memref<1x4608xf32, #tpu.memory_space<vmem>>, vector<1x128xf32>
    tpu.vector_store %arg18[%c0_202, %c1280], %138 {strides = array<i32>} : memref<1x4608xf32, #tpu.memory_space<vmem>>, vector<1x128xf32>,
    %140 = vector.extract_strided_slice %106 {offsets = [0, 1, 5, 0], sizes = [1, 1, 1, 128], strides = [1, 1, 1, 1]} : vector<1x6x6x128xf32> to vector<1x1x1x128xf32>
    %141 = vector.shape_cast %140 : vector<1x1x1x128xf32> to vector<1x128xf32>
    %c0_203 = arith.constant 0 : index
    %c1408 = arith.constant 1408 : index
    %142 = vector.load %arg18[%c0_203, %c1408] : memref<1x4608xf32, #tpu.memory_space<vmem>>, vector<1x128xf32>
    tpu.vector_store %arg18[%c0_203, %c1408], %141 {strides = array<i32>} : memref<1x4608xf32, #tpu.memory_space<vmem>>, vector<1x128xf32>,
    %143 = vector.extract_strided_slice %106 {offsets = [0, 2, 0, 0], sizes = [1, 1, 1, 128], strides = [1, 1, 1, 1]} : vector<1x6x6x128xf32> to vector<1x1x1x128xf32>
    %144 = vector.shape_cast %143 : vector<1x1x1x128xf32> to vector<1x128xf32>
    %c0_204 = arith.constant 0 : index
    %c1536 = arith.constant 1536 : index
    %145 = vector.load %arg18[%c0_204, %c1536] : memref<1x4608xf32, #tpu.memory_space<vmem>>, vector<1x128xf32>
    tpu.vector_store %arg18[%c0_204, %c1536], %144 {strides = array<i32>} : memref<1x4608xf32, #tpu.memory_space<vmem>>, vector<1x128xf32>,
    %146 = vector.extract_strided_slice %106 {offsets = [0, 2, 1, 0], sizes = [1, 1, 1, 128], strides = [1, 1, 1, 1]} : vector<1x6x6x128xf32> to vector<1x1x1x128xf32>
    %147 = vector.shape_cast %146 : vector<1x1x1x128xf32> to vector<1x128xf32>
    %c0_205 = arith.constant 0 : index
    %c1664 = arith.constant 1664 : index
    %148 = vector.load %arg18[%c0_205, %c1664] : memref<1x4608xf32, #tpu.memory_space<vmem>>, vector<1x128xf32>
    tpu.vector_store %arg18[%c0_205, %c1664], %147 {strides = array<i32>} : memref<1x4608xf32, #tpu.memory_space<vmem>>, vector<1x128xf32>,
    %149 = vector.extract_strided_slice %106 {offsets = [0, 2, 2, 0], sizes = [1, 1, 1, 128], strides = [1, 1, 1, 1]} : vector<1x6x6x128xf32> to vector<1x1x1x128xf32>
    %150 = vector.shape_cast %149 : vector<1x1x1x128xf32> to vector<1x128xf32>
    %c0_206 = arith.constant 0 : index
    %c1792 = arith.constant 1792 : index
    %151 = vector.load %arg18[%c0_206, %c1792] : memref<1x4608xf32, #tpu.memory_space<vmem>>, vector<1x128xf32>
    tpu.vector_store %arg18[%c0_206, %c1792], %150 {strides = array<i32>} : memref<1x4608xf32, #tpu.memory_space<vmem>>, vector<1x128xf32>,
    %152 = vector.extract_strided_slice %106 {offsets = [0, 2, 3, 0], sizes = [1, 1, 1, 128], strides = [1, 1, 1, 1]} : vector<1x6x6x128xf32> to vector<1x1x1x128xf32>
    %153 = vector.shape_cast %152 : vector<1x1x1x128xf32> to vector<1x128xf32>
    %c0_207 = arith.constant 0 : index
    %c1920 = arith.constant 1920 : index
    %154 = vector.load %arg18[%c0_207, %c1920] : memref<1x4608xf32, #tpu.memory_space<vmem>>, vector<1x128xf32>
    tpu.vector_store %arg18[%c0_207, %c1920], %153 {strides = array<i32>} : memref<1x4608xf32, #tpu.memory_space<vmem>>, vector<1x128xf32>,
    %155 = vector.extract_strided_slice %106 {offsets = [0, 2, 4, 0], sizes = [1, 1, 1, 128], strides = [1, 1, 1, 1]} : vector<1x6x6x128xf32> to vector<1x1x1x128xf32>
    %156 = vector.shape_cast %155 : vector<1x1x1x128xf32> to vector<1x128xf32>
    %c0_208 = arith.constant 0 : index
    %c2048 = arith.constant 2048 : index
    %157 = vector.load %arg18[%c0_208, %c2048] : memref<1x4608xf32, #tpu.memory_space<vmem>>, vector<1x128xf32>
    tpu.vector_store %arg18[%c0_208, %c2048], %156 {strides = array<i32>} : memref<1x4608xf32, #tpu.memory_space<vmem>>, vector<1x128xf32>,
    %158 = vector.extract_strided_slice %106 {offsets = [0, 2, 5, 0], sizes = [1, 1, 1, 128], strides = [1, 1, 1, 1]} : vector<1x6x6x128xf32> to vector<1x1x1x128xf32>
    %159 = vector.shape_cast %158 : vector<1x1x1x128xf32> to vector<1x128xf32>
    %c0_209 = arith.constant 0 : index
    %c2176 = arith.constant 2176 : index
    %160 = vector.load %arg18[%c0_209, %c2176] : memref<1x4608xf32, #tpu.memory_space<vmem>>, vector<1x128xf32>
    tpu.vector_store %arg18[%c0_209, %c2176], %159 {strides = array<i32>} : memref<1x4608xf32, #tpu.memory_space<vmem>>, vector<1x128xf32>,
    %161 = vector.extract_strided_slice %106 {offsets = [0, 3, 0, 0], sizes = [1, 1, 1, 128], strides = [1, 1, 1, 1]} : vector<1x6x6x128xf32> to vector<1x1x1x128xf32>
    %162 = vector.shape_cast %161 : vector<1x1x1x128xf32> to vector<1x128xf32>
    %c0_210 = arith.constant 0 : index
    %c2304 = arith.constant 2304 : index
    %163 = vector.load %arg18[%c0_210, %c2304] : memref<1x4608xf32, #tpu.memory_space<vmem>>, vector<1x128xf32>
    tpu.vector_store %arg18[%c0_210, %c2304], %162 {strides = array<i32>} : memref<1x4608xf32, #tpu.memory_space<vmem>>, vector<1x128xf32>,
    %164 = vector.extract_strided_slice %106 {offsets = [0, 3, 1, 0], sizes = [1, 1, 1, 128], strides = [1, 1, 1, 1]} : vector<1x6x6x128xf32> to vector<1x1x1x128xf32>
    %165 = vector.shape_cast %164 : vector<1x1x1x128xf32> to vector<1x128xf32>
    %c0_211 = arith.constant 0 : index
    %c2432 = arith.constant 2432 : index
    %166 = vector.load %arg18[%c0_211, %c2432] : memref<1x4608xf32, #tpu.memory_space<vmem>>, vector<1x128xf32>
    tpu.vector_store %arg18[%c0_211, %c2432], %165 {strides = array<i32>} : memref<1x4608xf32, #tpu.memory_space<vmem>>, vector<1x128xf32>,
    %167 = vector.extract_strided_slice %106 {offsets = [0, 3, 2, 0], sizes = [1, 1, 1, 128], strides = [1, 1, 1, 1]} : vector<1x6x6x128xf32> to vector<1x1x1x128xf32>
    %168 = vector.shape_cast %167 : vector<1x1x1x128xf32> to vector<1x128xf32>
    %c0_212 = arith.constant 0 : index
    %c2560 = arith.constant 2560 : index
    %169 = vector.load %arg18[%c0_212, %c2560] : memref<1x4608xf32, #tpu.memory_space<vmem>>, vector<1x128xf32>
    tpu.vector_store %arg18[%c0_212, %c2560], %168 {strides = array<i32>} : memref<1x4608xf32, #tpu.memory_space<vmem>>, vector<1x128xf32>,
    %170 = vector.extract_strided_slice %106 {offsets = [0, 3, 3, 0], sizes = [1, 1, 1, 128], strides = [1, 1, 1, 1]} : vector<1x6x6x128xf32> to vector<1x1x1x128xf32>
    %171 = vector.shape_cast %170 : vector<1x1x1x128xf32> to vector<1x128xf32>
    %c0_213 = arith.constant 0 : index
    %c2688 = arith.constant 2688 : index
    %172 = vector.load %arg18[%c0_213, %c2688] : memref<1x4608xf32, #tpu.memory_space<vmem>>, vector<1x128xf32>
    tpu.vector_store %arg18[%c0_213, %c2688], %171 {strides = array<i32>} : memref<1x4608xf32, #tpu.memory_space<vmem>>, vector<1x128xf32>,
    %173 = vector.extract_strided_slice %106 {offsets = [0, 3, 4, 0], sizes = [1, 1, 1, 128], strides = [1, 1, 1, 1]} : vector<1x6x6x128xf32> to vector<1x1x1x128xf32>
    %174 = vector.shape_cast %173 : vector<1x1x1x128xf32> to vector<1x128xf32>
    %c0_214 = arith.constant 0 : index
    %c2816 = arith.constant 2816 : index
    %175 = vector.load %arg18[%c0_214, %c2816] : memref<1x4608xf32, #tpu.memory_space<vmem>>, vector<1x128xf32>
    tpu.vector_store %arg18[%c0_214, %c2816], %174 {strides = array<i32>} : memref<1x4608xf32, #tpu.memory_space<vmem>>, vector<1x128xf32>,
    %176 = vector.extract_strided_slice %106 {offsets = [0, 3, 5, 0], sizes = [1, 1, 1, 128], strides = [1, 1, 1, 1]} : vector<1x6x6x128xf32> to vector<1x1x1x128xf32>
    %177 = vector.shape_cast %176 : vector<1x1x1x128xf32> to vector<1x128xf32>
    %c0_215 = arith.constant 0 : index
    %c2944 = arith.constant 2944 : index
    %178 = vector.load %arg18[%c0_215, %c2944] : memref<1x4608xf32, #tpu.memory_space<vmem>>, vector<1x128xf32>
    tpu.vector_store %arg18[%c0_215, %c2944], %177 {strides = array<i32>} : memref<1x4608xf32, #tpu.memory_space<vmem>>, vector<1x128xf32>,
    %179 = vector.extract_strided_slice %106 {offsets = [0, 4, 0, 0], sizes = [1, 1, 1, 128], strides = [1, 1, 1, 1]} : vector<1x6x6x128xf32> to vector<1x1x1x128xf32>
    %180 = vector.shape_cast %179 : vector<1x1x1x128xf32> to vector<1x128xf32>
    %c0_216 = arith.constant 0 : index
    %c3072 = arith.constant 3072 : index
    %181 = vector.load %arg18[%c0_216, %c3072] : memref<1x4608xf32, #tpu.memory_space<vmem>>, vector<1x128xf32>
    tpu.vector_store %arg18[%c0_216, %c3072], %180 {strides = array<i32>} : memref<1x4608xf32, #tpu.memory_space<vmem>>, vector<1x128xf32>,
    %182 = vector.extract_strided_slice %106 {offsets = [0, 4, 1, 0], sizes = [1, 1, 1, 128], strides = [1, 1, 1, 1]} : vector<1x6x6x128xf32> to vector<1x1x1x128xf32>
    %183 = vector.shape_cast %182 : vector<1x1x1x128xf32> to vector<1x128xf32>
    %c0_217 = arith.constant 0 : index
    %c3200 = arith.constant 3200 : index
    %184 = vector.load %arg18[%c0_217, %c3200] : memref<1x4608xf32, #tpu.memory_space<vmem>>, vector<1x128xf32>
    tpu.vector_store %arg18[%c0_217, %c3200], %183 {strides = array<i32>} : memref<1x4608xf32, #tpu.memory_space<vmem>>, vector<1x128xf32>,
    %185 = vector.extract_strided_slice %106 {offsets = [0, 4, 2, 0], sizes = [1, 1, 1, 128], strides = [1, 1, 1, 1]} : vector<1x6x6x128xf32> to vector<1x1x1x128xf32>
    %186 = vector.shape_cast %185 : vector<1x1x1x128xf32> to vector<1x128xf32>
    %c0_218 = arith.constant 0 : index
    %c3328 = arith.constant 3328 : index
    %187 = vector.load %arg18[%c0_218, %c3328] : memref<1x4608xf32, #tpu.memory_space<vmem>>, vector<1x128xf32>
    tpu.vector_store %arg18[%c0_218, %c3328], %186 {strides = array<i32>} : memref<1x4608xf32, #tpu.memory_space<vmem>>, vector<1x128xf32>,
    %188 = vector.extract_strided_slice %106 {offsets = [0, 4, 3, 0], sizes = [1, 1, 1, 128], strides = [1, 1, 1, 1]} : vector<1x6x6x128xf32> to vector<1x1x1x128xf32>
    %189 = vector.shape_cast %188 : vector<1x1x1x128xf32> to vector<1x128xf32>
    %c0_219 = arith.constant 0 : index
    %c3456 = arith.constant 3456 : index
    %190 = vector.load %arg18[%c0_219, %c3456] : memref<1x4608xf32, #tpu.memory_space<vmem>>, vector<1x128xf32>
    tpu.vector_store %arg18[%c0_219, %c3456], %189 {strides = array<i32>} : memref<1x4608xf32, #tpu.memory_space<vmem>>, vector<1x128xf32>,
    %191 = vector.extract_strided_slice %106 {offsets = [0, 4, 4, 0], sizes = [1, 1, 1, 128], strides = [1, 1, 1, 1]} : vector<1x6x6x128xf32> to vector<1x1x1x128xf32>
    %192 = vector.shape_cast %191 : vector<1x1x1x128xf32> to vector<1x128xf32>
    %c0_220 = arith.constant 0 : index
    %c3584 = arith.constant 3584 : index
    %193 = vector.load %arg18[%c0_220, %c3584] : memref<1x4608xf32, #tpu.memory_space<vmem>>, vector<1x128xf32>
    tpu.vector_store %arg18[%c0_220, %c3584], %192 {strides = array<i32>} : memref<1x4608xf32, #tpu.memory_space<vmem>>, vector<1x128xf32>,
    %194 = vector.extract_strided_slice %106 {offsets = [0, 4, 5, 0], sizes = [1, 1, 1, 128], strides = [1, 1, 1, 1]} : vector<1x6x6x128xf32> to vector<1x1x1x128xf32>
    %195 = vector.shape_cast %194 : vector<1x1x1x128xf32> to vector<1x128xf32>
    %c0_221 = arith.constant 0 : index
    %c3712 = arith.constant 3712 : index
    %196 = vector.load %arg18[%c0_221, %c3712] : memref<1x4608xf32, #tpu.memory_space<vmem>>, vector<1x128xf32>
    tpu.vector_store %arg18[%c0_221, %c3712], %195 {strides = array<i32>} : memref<1x4608xf32, #tpu.memory_space<vmem>>, vector<1x128xf32>,
    %197 = vector.extract_strided_slice %106 {offsets = [0, 5, 0, 0], sizes = [1, 1, 1, 128], strides = [1, 1, 1, 1]} : vector<1x6x6x128xf32> to vector<1x1x1x128xf32>
    %198 = vector.shape_cast %197 : vector<1x1x1x128xf32> to vector<1x128xf32>
    %c0_222 = arith.constant 0 : index
    %c3840 = arith.constant 3840 : index
    %199 = vector.load %arg18[%c0_222, %c3840] : memref<1x4608xf32, #tpu.memory_space<vmem>>, vector<1x128xf32>
    tpu.vector_store %arg18[%c0_222, %c3840], %198 {strides = array<i32>} : memref<1x4608xf32, #tpu.memory_space<vmem>>, vector<1x128xf32>,
    %200 = vector.extract_strided_slice %106 {offsets = [0, 5, 1, 0], sizes = [1, 1, 1, 128], strides = [1, 1, 1, 1]} : vector<1x6x6x128xf32> to vector<1x1x1x128xf32>
    %201 = vector.shape_cast %200 : vector<1x1x1x128xf32> to vector<1x128xf32>
    %c0_223 = arith.constant 0 : index
    %c3968 = arith.constant 3968 : index
    %202 = vector.load %arg18[%c0_223, %c3968] : memref<1x4608xf32, #tpu.memory_space<vmem>>, vector<1x128xf32>
    tpu.vector_store %arg18[%c0_223, %c3968], %201 {strides = array<i32>} : memref<1x4608xf32, #tpu.memory_space<vmem>>, vector<1x128xf32>,
    %203 = vector.extract_strided_slice %106 {offsets = [0, 5, 2, 0], sizes = [1, 1, 1, 128], strides = [1, 1, 1, 1]} : vector<1x6x6x128xf32> to vector<1x1x1x128xf32>
    %204 = vector.shape_cast %203 : vector<1x1x1x128xf32> to vector<1x128xf32>
    %c0_224 = arith.constant 0 : index
    %c4096 = arith.constant 4096 : index
    %205 = vector.load %arg18[%c0_224, %c4096] : memref<1x4608xf32, #tpu.memory_space<vmem>>, vector<1x128xf32>
    tpu.vector_store %arg18[%c0_224, %c4096], %204 {strides = array<i32>} : memref<1x4608xf32, #tpu.memory_space<vmem>>, vector<1x128xf32>,
    %206 = vector.extract_strided_slice %106 {offsets = [0, 5, 3, 0], sizes = [1, 1, 1, 128], strides = [1, 1, 1, 1]} : vector<1x6x6x128xf32> to vector<1x1x1x128xf32>
    %207 = vector.shape_cast %206 : vector<1x1x1x128xf32> to vector<1x128xf32>
    %c0_225 = arith.constant 0 : index
    %c4224 = arith.constant 4224 : index
    %208 = vector.load %arg18[%c0_225, %c4224] : memref<1x4608xf32, #tpu.memory_space<vmem>>, vector<1x128xf32>
    tpu.vector_store %arg18[%c0_225, %c4224], %207 {strides = array<i32>} : memref<1x4608xf32, #tpu.memory_space<vmem>>, vector<1x128xf32>,
    %209 = vector.extract_strided_slice %106 {offsets = [0, 5, 4, 0], sizes = [1, 1, 1, 128], strides = [1, 1, 1, 1]} : vector<1x6x6x128xf32> to vector<1x1x1x128xf32>
    %210 = vector.shape_cast %209 : vector<1x1x1x128xf32> to vector<1x128xf32>
    %c0_226 = arith.constant 0 : index
    %c4352 = arith.constant 4352 : index
    %211 = vector.load %arg18[%c0_226, %c4352] : memref<1x4608xf32, #tpu.memory_space<vmem>>, vector<1x128xf32>
    tpu.vector_store %arg18[%c0_226, %c4352], %210 {strides = array<i32>} : memref<1x4608xf32, #tpu.memory_space<vmem>>, vector<1x128xf32>,
    %212 = vector.extract_strided_slice %106 {offsets = [0, 5, 5, 0], sizes = [1, 1, 1, 128], strides = [1, 1, 1, 1]} : vector<1x6x6x128xf32> to vector<1x1x1x128xf32>
    %213 = vector.shape_cast %212 : vector<1x1x1x128xf32> to vector<1x128xf32>
    %c0_227 = arith.constant 0 : index
    %c4480 = arith.constant 4480 : index
    %214 = vector.load %arg18[%c0_227, %c4480] : memref<1x4608xf32, #tpu.memory_space<vmem>>, vector<1x128xf32>
    tpu.vector_store %arg18[%c0_227, %c4480], %213 {strides = array<i32>} : memref<1x4608xf32, #tpu.memory_space<vmem>>, vector<1x128xf32>,
    %c0_228 = arith.constant 0 : index
    %c0_229 = arith.constant 0 : index
    %215 = vector.load %arg18[%c0_228, %c0_229] : memref<1x4608xf32, #tpu.memory_space<vmem>>, vector<1x4608xf32>
    %c0_230 = arith.constant 0 : index
    %c0_231 = arith.constant 0 : index
    %216 = vector.load %arg8[%c0_230, %c0_231] : memref<4608x128xf32, #tpu.memory_space<vmem>>, vector<4608x128xf32>
    %cst_232 = arith.constant dense<0.000000e+00> : vector<1x128xf32>
    %217 = tpu.matmul %215, %216, %cst_232 {dimension_numbers = #tpu.dot_dimension_numbers<[1], [0], [0], [1], [0, 0, 1, 1], [], []>} : vector<1x4608xf32>, vector<4608x128xf32>, vector<1x128xf32> -> vector<1x128xf32>
    %c0_233 = arith.constant 0 : index
    %c0_234 = arith.constant 0 : index
    %218 = vector.load %arg9[%c0_233, %c0_234] : memref<1x128xf32, #tpu.memory_space<vmem>>, vector<1x128xf32>
    %219 = arith.addf %217, %218 : vector<1x128xf32>
    %cst_235 = arith.constant 0.000000e+00 : f32
    %220 = vector.broadcast %cst_235 : f32 to vector<1x128xf32>
    %221 = arith.maximumf %219, %220 : vector<1x128xf32>
    %c0_236 = arith.constant 0 : index
    %c0_237 = arith.constant 0 : index
    %222 = vector.load %arg10[%c0_236, %c0_237] : memref<128x128xf32, #tpu.memory_space<vmem>>, vector<128x128xf32>
    %cst_238 = arith.constant dense<0.000000e+00> : vector<1x128xf32>
    %223 = tpu.matmul %221, %222, %cst_238 {dimension_numbers = #tpu.dot_dimension_numbers<[1], [0], [0], [1], [0, 0, 1, 1], [], []>} : vector<1x128xf32>, vector<128x128xf32>, vector<1x128xf32> -> vector<1x128xf32>
    %c0_239 = arith.constant 0 : index
    %c0_240 = arith.constant 0 : index
    %224 = vector.load %arg11[%c0_239, %c0_240] : memref<1x128xf32, #tpu.memory_space<vmem>>, vector<1x128xf32>
    %225 = arith.addf %223, %224 : vector<1x128xf32>
    %cst_241 = arith.constant 0.000000e+00 : f32
    %226 = vector.broadcast %cst_241 : f32 to vector<1x128xf32>
    %227 = arith.maximumf %225, %226 : vector<1x128xf32>
    %c0_242 = arith.constant 0 : index
    %c0_243 = arith.constant 0 : index
    %228 = vector.load %arg12[%c0_242, %c0_243] : memref<128x128xf32, #tpu.memory_space<vmem>>, vector<128x128xf32>
    %cst_244 = arith.constant dense<0.000000e+00> : vector<1x128xf32>
    %229 = tpu.matmul %227, %228, %cst_244 {dimension_numbers = #tpu.dot_dimension_numbers<[1], [0], [0], [1], [0, 0, 1, 1], [], []>} : vector<1x128xf32>, vector<128x128xf32>, vector<1x128xf32> -> vector<1x128xf32>
    %c0_245 = arith.constant 0 : index
    %c0_246 = arith.constant 0 : index
    %230 = vector.load %arg13[%c0_245, %c0_246] : memref<1x128xf32, #tpu.memory_space<vmem>>, vector<1x128xf32>
    %231 = arith.addf %229, %230 : vector<1x128xf32>
    %232 = vector.shape_cast %231 : vector<1x128xf32> to vector<1x1x128xf32>
    %c0_247 = arith.constant 0 : index
    %c0_248 = arith.constant 0 : index
    %c0_249 = arith.constant 0 : index
    %233 = vector.load %arg14[%c0_247, %c0_248, %c0_249] : memref<1x1x128xf32, #tpu.memory_space<vmem>>, vector<1x1x128xf32>
    tpu.vector_store %arg14[%c0_247, %c0_248, %c0_249], %232 {strides = array<i32>} : memref<1x1x128xf32, #tpu.memory_space<vmem>>, vector<1x1x128xf32>,
    return
  }
  func.func @transform_0(%arg0: i32) -> (i32, i32, i32, i32) {
    %c0_i32 = arith.constant 0 : i32
    %c0_i32_0 = arith.constant 0 : i32
    %c0_i32_1 = arith.constant 0 : i32
    %c0_i32_2 = arith.constant 0 : i32
    return %arg0, %c0_i32, %c0_i32_0, %c0_i32_1 : i32, i32, i32, i32
  }
  func.func @transform_1(%arg0: i32) -> (i32, i32, i32, i32) {
    %c0_i32 = arith.constant 0 : i32
    %c0_i32_0 = arith.constant 0 : i32
    %c0_i32_1 = arith.constant 0 : i32
    %c0_i32_2 = arith.constant 0 : i32
    %c0_i32_3 = arith.constant 0 : i32
    return %c0_i32, %c0_i32_0, %c0_i32_1, %c0_i32_2 : i32, i32, i32, i32
  }
  func.func @transform_2(%arg0: i32) -> (i32, i32) {
    %c0_i32 = arith.constant 0 : i32
    %c0_i32_0 = arith.constant 0 : i32
    %c0_i32_1 = arith.constant 0 : i32
    return %c0_i32, %c0_i32_0 : i32, i32
  }
  func.func @transform_3(%arg0: i32) -> (i32, i32) {
    %c0_i32 = arith.constant 0 : i32
    %c0_i32_0 = arith.constant 0 : i32
    %c0_i32_1 = arith.constant 0 : i32
    return %c0_i32, %c0_i32_0 : i32, i32
  }
  func.func @transform_4(%arg0: i32) -> (i32, i32) {
    %c0_i32 = arith.constant 0 : i32
    %c0_i32_0 = arith.constant 0 : i32
    %c0_i32_1 = arith.constant 0 : i32
    return %c0_i32, %c0_i32_0 : i32, i32
  }
  func.func @transform_5(%arg0: i32) -> (i32, i32) {
    %c0_i32 = arith.constant 0 : i32
    %c0_i32_0 = arith.constant 0 : i32
    %c0_i32_1 = arith.constant 0 : i32
    return %c0_i32, %c0_i32_0 : i32, i32
  }
  func.func @transform_6(%arg0: i32) -> (i32, i32) {
    %c0_i32 = arith.constant 0 : i32
    %c0_i32_0 = arith.constant 0 : i32
    %c0_i32_1 = arith.constant 0 : i32
    return %c0_i32, %c0_i32_0 : i32, i32
  }
  func.func @transform_7(%arg0: i32) -> (i32, i32) {
    %c0_i32 = arith.constant 0 : i32
    %c0_i32_0 = arith.constant 0 : i32
    %c0_i32_1 = arith.constant 0 : i32
    return %c0_i32, %c0_i32_0 : i32, i32
  }
  func.func @transform_8(%arg0: i32) -> (i32, i32) {
    %c0_i32 = arith.constant 0 : i32
    %c0_i32_0 = arith.constant 0 : i32
    %c0_i32_1 = arith.constant 0 : i32
    return %c0_i32, %c0_i32_0 : i32, i32
  }
  func.func @transform_9(%arg0: i32) -> (i32, i32) {
    %c0_i32 = arith.constant 0 : i32
    %c0_i32_0 = arith.constant 0 : i32
    %c0_i32_1 = arith.constant 0 : i32
    return %c0_i32, %c0_i32_0 : i32, i32
  }
  func.func @transform_10(%arg0: i32) -> (i32, i32) {
    %c0_i32 = arith.constant 0 : i32
    %c0_i32_0 = arith.constant 0 : i32
    %c0_i32_1 = arith.constant 0 : i32
    return %c0_i32, %c0_i32_0 : i32, i32
  }
  func.func @transform_11(%arg0: i32) -> (i32, i32) {
    %c0_i32 = arith.constant 0 : i32
    %c0_i32_0 = arith.constant 0 : i32
    %c0_i32_1 = arith.constant 0 : i32
    return %c0_i32, %c0_i32_0 : i32, i32
  }
  func.func @transform_12(%arg0: i32) -> (i32, i32) {
    %c0_i32 = arith.constant 0 : i32
    %c0_i32_0 = arith.constant 0 : i32
    %c0_i32_1 = arith.constant 0 : i32
    return %c0_i32, %c0_i32_0 : i32, i32
  }
  func.func @transform_13(%arg0: i32) -> (i32, i32, i32) {
    %c0_i32 = arith.constant 0 : i32
    %c0_i32_0 = arith.constant 0 : i32
    %c0_i32_1 = arith.constant 0 : i32
    return %arg0, %c0_i32, %c0_i32_0 : i32, i32, i32
  }
}

</mosaic_0001>

<bundles_post_ra>
// kernel: dqn_forward.1
= control target key start
LH: loop header
LB: loop body
LE: loop exit
PB: predicated region body
PF: predicated region fallthrough
CT: control target
= control target key end

     0   :  { %s10485_s0 = inlined_call_operand.vmem [shape: f32[2,8,8,4], index: 0, kind: input, shape index: {}]   ;;  %s10486_s1 = inlined_call_operand.hbm [shape: f32[3,3,4,64], index: 1, kind: input, shape index: {}]   ;;  %s10487_s2 = inlined_call_operand.hbm [shape: f32[1,64], index: 2, kind: input, shape index: {}]   ;;  %s10488_s3 = inlined_call_operand.hbm [shape: f32[576,128], index: 3, kind: input, shape index: {}]   ;;  %s10489_s4 = inlined_call_operand.hbm [shape: f32[1,128], index: 4, kind: input, shape index: {}]   ;;  %s10490_s5 = inlined_call_operand.hbm [shape: f32[1152,128], index: 5, kind: input, shape index: {}]   ;;  %s10491_s6 = inlined_call_operand.hbm [shape: f32[1,128], index: 6, kind: input, shape index: {}]   ;;  %s10492_s7 = inlined_call_operand.hbm [shape: f32[4608,128], index: 7, kind: input, shape index: {}]   ;;  %s10493_s8 = inlined_call_operand.hbm [shape: f32[1,128], index: 8, kind: input, shape index: {}]   ;;  %s10494_s9 = inlined_call_operand.hbm [shape: f32[128,128], index: 9, kind: input, shape index: {}]   ;;  %s10495_s10 = inlined_call_operand.hbm [shape: f32[1,128], index: 10, kind: input, shape index: {}]   ;;  %s10496_s11 = inlined_call_operand.vmem [shape: f32[128,128], index: 11, kind: input, shape index: {}]   ;;  %s10497_s12 = inlined_call_operand.vmem [shape: f32[1,128], index: 12, kind: input, shape index: {}]   ;;  %s10498_s13 = inlined_call_operand.hbm [shape: f32[2,1,128], index: 13, kind: output, shape index: {}]  }
   0x1   :  { %10506 = sst [smem:[#allocation35_spill]] %s10487_s2 }
   0x2   :  { %18 = vsyncpa [#allocation7], 0 }
   0x3   :  { %19 = vsyncpa [#allocation10], 0 }
   0x4   :  { %20 = vsyncpa [#allocation13], 0 }
   0x5   :  { %21 = vsyncpa [#allocation16], 0 }
   0x6   :  { %22 = vsyncpa [#allocation19], 0 }
   0x7   :  { %23 = vsyncpa [#allocation22], 0 }
   0x8   :  { %24 = vsyncpa [#allocation8], 0 }
   0x9   :  { %26 = vsyncpa [#allocation8 + $0x1], 0  ;;  %s9204_s25 = smov 0   ;;  %s9206_s26 = smov 0  }
   0xa   :  { %s9208_s27 = smov 0   ;;  %s9210_s28 = smov 0  }
   0xb LB: > { %10507 = sst [smem:[#allocation31_spill]] %s9108_s27  ;;  %s9225_s29 = sadd.s32 4294967295, %s9112_s28   ;;  %s9112_s28 = sphi %s9210_s28, %s10535_s28   ;;  %s9108_s27 = sphi %s9208_s27, %s10537_s27   ;;  %s9104_s26 = sphi %s9206_s26, %s10539_s26   ;;  %s9100_s25 = sphi %s9204_s25, %s10538_s25  }
   0xc   : > { %s7012_s30 = sadd.s32 4294967294, %s9112_s28   ;;  %s9229_s14 = sadd.s32 1, %s9112_s28  }
   0xd   : > { %10508 = sst [smem:[#allocation32_spill]] %s9229_s14  ;;  %s317_s15 = sadd.s32 1, %s9108_s27 }
   0xe   : > { %s314_s16 = ssub.s32 %s9112_s28, %s9229_s14  ;;  %p327_p0 = scmp.ne.s32.totalorder %s9108_s27, %s9104_s26 }
   0xf   : > { %p315_p1 = scmp.eq.s32.totalorder %s314_s16, 0  ;;  %p328_p2 = scmp.eq.s32.totalorder %s9225_s29, 1 }
  0x10   : > { %p333_p3 = scmp.ne.s32.totalorder %s9104_s26, %s9100_s25  ;;  %p334_p4 = scmp.eq.s32.totalorder %s7012_s30, 1 }
  0x11   : > { %s9240_s17 = scalar_select %p315_p1, %s9108_s27, %s317_s15  }
  0x12   : > { %p9242_p5 = por %p328_p2, %p327_p0  ;;  %p9246_p6 = por %p334_p4, %p333_p3 }
  0x13   : > { %10509 = sst [smem:[#allocation33_spill]] %s9240_s17  ;;  %p7013_p7 = scmp.ge.s32.totalorder %s9112_s28, 1 }
  0x14   : > { %s10510_s18 = scalar_select %p9242_p5, 1, 0 }
  0x15   : > { %s10511_s19 = scalar_select %p9246_p6, 1, 0 }
  0x16   : > { %p341_p8 = scmp.lt.s32.totalorder %s9112_s28, 3  ;;  %p10502_p9 = scmp.eq.s32.totalorder %s9225_s29, 0 }
  0x17   : > { %10512 = sst [smem:[#allocation34_spill]] %s10511_s19  ;;  %s9114_s21 = smov [#allocation9]  }
  0x18   : > { %p9253_p10 = pnand %p7013_p7, %p341_p8  ;;  %s367_s22 = sshll.u32 %s9114_s21, 4  ;;  %s368_s22 = int_to_ptr.vmem [resolvable:$true] %s367_s22 }
  0x19   : > { %s9115_s23 = smov [#allocation12]   ;;  %s9116_s15 = smov [#allocation15]  }
  0x1a   : > { %s10513_s20 = scalar_select %p9253_p10, 1, 0 }
  0x1b   : > { %p8555_p11 = pneg %p9253_p10  ;;  %s391_s24 = sshll.u32 %s9115_s23, 4  ;;  %s392_s24 = int_to_ptr.vmem [resolvable:$true] %s391_s24 }
  0x1c   : > { %s415_s16 = sshll.u32 %s9116_s15, 4  ;;  %s8779_s21 = scalar_lea.vmem %s368_s22, 16  ;;  %s9265_s16 = int_to_ptr.vmem [resolvable:$true] %s415_s16 }
  0x1d   : > { %p9261_p12 = pnand %p10502_p9, %p8555_p11  ;;  %p8780_p0 = scmp.ne.s32.totalorder %s368_s22, %s8779_s21 }
  0x1e   : > { %s8786_s23 = scalar_lea.vmem %s368_s22, 32  ;;  %p8787_p3 = scmp.lt.s32.totalorder %s368_s22, %s368_s22 }
  0x1f   : > { %p9269_p13 = pneg %p9261_p12  ;;  %p8788_p4 = scmp.lt.s32.totalorder %s8786_s23, %s8779_s21 }
  0x21   : > { %p8782_p1 = pnand %p8780_p0, %p9269_p13  ;;  %p8789_p7 = por %p8788_p4, %p8787_p3 }
  0x23   : > { %p8783_p2 = pneg %p8782_p1 }
  0x25   : > { %p8790_p8 = pnand %p8789_p7, %p8783_p2 }
  0x27   : > { %8793 = shalt.err (!%p8790_p8)
}
  0x28   : > { %s10516_s2 = sld [smem:[#allocation35_spill]]  ;;  %s8805_s14 = scalar_lea.vmem %s392_s24, 16 }
  0x29   : > { %p8806_p11 = scmp.ne.s32.totalorder %s392_s24, %s8805_s14  ;;  %s8812_s19 = scalar_lea.vmem %s392_s24, 32 }
  0x2a   : > { %p8813_p0 = scmp.lt.s32.totalorder %s392_s24, %s392_s24  ;;  %p8814_p1 = scmp.lt.s32.totalorder %s8812_s19, %s8805_s14 }
  0x2b   : > { %p8808_p9 = pnand %p8806_p11, %p9269_p13 }
  0x2c   : > { %p8815_p5 = por %p8814_p1, %p8813_p0 }
  0x2d   : > { %p8809_p6 = pneg %p8808_p9 }
  0x2e   : > { %8561 = dma.hbm_to_vmem [thread:$0]  (!%p9261_p12), %s10516_s2, 16, %s368_s22, [#allocation10]  }
  0x2f   : > { %p8816_p10 = pnand %p8815_p5, %p8809_p6 }
  0x31   : > { %8819 = shalt.err (!%p8816_p10)
}
  0x32   : > { %8567 = dma.hbm_to_vmem [thread:$0]  (!%p9261_p12), %s10489_s4, 16, %s392_s24, [#allocation13]  }
  0x33   : > { %s8831_s27 = scalar_lea.vmem %s9265_s16, 16  ;;  %s8838_s14 = scalar_lea.vmem %s9265_s16, 32 }
  0x34   : > { %p8832_p2 = scmp.ne.s32.totalorder %s9265_s16, %s8831_s27  ;;  %p8839_p5 = scmp.lt.s32.totalorder %s9265_s16, %s9265_s16 }
  0x35   : > { %p8840_p6 = scmp.lt.s32.totalorder %s8838_s14, %s8831_s27 }
  0x36   : > { %p8834_p9 = pnand %p8832_p2, %p9269_p13 }
  0x37   : > { %p8841_p10 = por %p8840_p6, %p8839_p5 }
  0x38   : > { %p8835_p3 = pneg %p8834_p9 }
  0x3a   : > { %p8842_p4 = pnand %p8841_p10, %p8835_p3 }
  0x3c   : > { %8845 = shalt.err (!%p8842_p4)
}
  0x3d   : > { %8573 = dma.hbm_to_vmem [thread:$0]  (!%p9261_p12), %s10491_s6, 16, %s9265_s16, [#allocation16]  }
  0x3e   : > { %s9117_s24 = smov [#allocation18]   ;;  %s9118_s21 = smov [#allocation6]  }
  0x3f   : > { %s439_s15 = sshll.u32 %s9117_s24, 4  ;;  %s353_s23 = sshll.u32 %s9118_s21, 4  ;;  %s440_s15 = int_to_ptr.vmem [resolvable:$true] %s439_s15  ;;  %s354_s23 = int_to_ptr.vmem [resolvable:$true] %s353_s23 }
  0x40   : > { %s8857_s2 = scalar_lea.vmem %s440_s15, 16  ;;  %s8864_s27 = scalar_lea.vmem %s440_s15, 32 }
  0x41   : > { %p8858_p7 = scmp.ne.s32.totalorder %s440_s15, %s8857_s2  ;;  %p8865_p0 = scmp.lt.s32.totalorder %s440_s15, %s440_s15 }
  0x42   : > { %p8866_p1 = scmp.lt.s32.totalorder %s8864_s27, %s8857_s2 }
  0x43   : > { %p8860_p8 = pnand %p8858_p7, %p9269_p13 }
  0x44   : > { %p8867_p2 = por %p8866_p1, %p8865_p0 }
  0x45   : > { %p8861_p11 = pneg %p8860_p8 }
  0x47   : > { %p8868_p9 = pnand %p8867_p2, %p8861_p11 }
  0x49   : > { %8871 = shalt.err (!%p8868_p9)
}
  0x4a   : > { %8579 = dma.hbm_to_vmem [thread:$0]  (!%p9261_p12), %s10493_s8, 16, %s440_s15, [#allocation19]  }
  0x4b   : > { %s8883_s19 = scalar_lea.vmem %s354_s23, 576  ;;  %p8891_p10 = scmp.lt.s32.totalorder %s354_s23, %s354_s23 }
  0x4c   : > { %p8884_p3 = scmp.ne.s32.totalorder %s354_s23, %s8883_s19  ;;  %p8892_p4 = scmp.lt.s32.totalorder %s8883_s19, %s8883_s19 }
  0x4e   : > { %p8886_p5 = pnand %p8884_p3, %p9269_p13  ;;  %p8893_p7 = por %p8892_p4, %p8891_p10 }
  0x50   : > { %p8887_p6 = pneg %p8886_p5 }
  0x52   : > { %p8894_p8 = pnand %p8893_p7, %p8887_p6 }
  0x54   : > { %8897 = shalt.err (!%p8894_p8)
}
  0x55   : > { %s9119_s2 = smov 64   ;;  %s9120_s22 = smov 4  }
  0x56   : > { %8558 = dma.hbm_to_vmem [thread:$0]  (!%p9261_p12), %s10486_s1, 576, %s354_s23, [#allocation7], %s9119_s2, %s9119_s2, %s9120_s22  }
  0x57   : > { %s9121_s15 = smov [#allocation11]  }
  0x58   : > { %s377_s27 = sshll.u32 %s9121_s15, 4  ;;  %s378_s27 = int_to_ptr.vmem [resolvable:$true] %s377_s27 }
  0x59   : > { %s8909_s14 = scalar_lea.vmem %s378_s27, 9216  ;;  %p8917_p2 = scmp.lt.s32.totalorder %s378_s27, %s378_s27 }
  0x5a   : > { %p8910_p11 = scmp.ne.s32.totalorder %s378_s27, %s8909_s14  ;;  %p8918_p9 = scmp.lt.s32.totalorder %s8909_s14, %s8909_s14 }
  0x5c   : > { %p8912_p0 = pnand %p8910_p11, %p9269_p13  ;;  %p8919_p3 = por %p8918_p9, %p8917_p2 }
  0x5e   : > { %p8913_p1 = pneg %p8912_p0 }
  0x60   : > { %p8920_p5 = pnand %p8919_p3, %p8913_p1 }
  0x62   : > { %8923 = shalt.err (!%p8920_p5)
}
  0x63   : > { %s9122_s16 = smov 128   ;;  %s9123_s19 = smov 8  }
  0x64   : > { %8564 = dma.hbm_to_vmem [thread:$0]  (!%p9261_p12), %s10488_s3, 9216, %s378_s27, [#allocation10], %s9122_s16, %s9122_s16, %s9123_s19  }
  0x65   : > { %s9124_s22 = smov [#allocation14]   ;;  %s9125_s21 = smov [#allocation17]  }
  0x66   : > { %s401_s24 = sshll.u32 %s9124_s22, 4  ;;  %s425_s15 = sshll.u32 %s9125_s21, 4  ;;  %s402_s24 = int_to_ptr.vmem [resolvable:$true] %s401_s24  ;;  %s426_s15 = int_to_ptr.vmem [resolvable:$true] %s425_s15 }
  0x67   : > { %s8935_s14 = scalar_lea.vmem %s402_s24, 18432  ;;  %p8943_p7 = scmp.lt.s32.totalorder %s402_s24, %s402_s24 }
  0x68   : > { %p8936_p6 = scmp.ne.s32.totalorder %s402_s24, %s8935_s14  ;;  %p8944_p8 = scmp.lt.s32.totalorder %s8935_s14, %s8935_s14 }
  0x6a   : > { %p8938_p10 = pnand %p8936_p6, %p9269_p13  ;;  %p8945_p11 = por %p8944_p8, %p8943_p7 }
  0x6c   : > { %p8939_p4 = pneg %p8938_p10 }
  0x6e   : > { %p8946_p0 = pnand %p8945_p11, %p8939_p4 }
  0x70   : > { %8949 = shalt.err (!%p8946_p0)
}
  0x71   : > { %8570 = dma.hbm_to_vmem [thread:$0]  (!%p9261_p12), %s10490_s5, 18432, %s402_s24, [#allocation13], %s9122_s16, %s9122_s16, %s9123_s19  }
  0x72   : > { %s8961_s2 = scalar_lea.vmem %s426_s15, 73728  ;;  %p8969_p3 = scmp.lt.s32.totalorder %s426_s15, %s426_s15 }
  0x73   : > { %p8962_p1 = scmp.ne.s32.totalorder %s426_s15, %s8961_s2  ;;  %p8970_p5 = scmp.lt.s32.totalorder %s8961_s2, %s8961_s2 }
  0x75   : > { %p8964_p2 = pnand %p8962_p1, %p9269_p13  ;;  %p8971_p6 = por %p8970_p5, %p8969_p3 }
  0x77   : > { %p8965_p9 = pneg %p8964_p2 }
  0x79   : > { %p8972_p10 = pnand %p8971_p6, %p8965_p9 }
  0x7b   : > { %8975 = shalt.err (!%p8972_p10)
}
  0x7c   : > { %8576 = dma.hbm_to_vmem [thread:$0]  (!%p9261_p12), %s10492_s7, 73728, %s426_s15, [#allocation16], %s9122_s16, %s9122_s16, %s9123_s19  }
  0x7d   : > { %s9126_s24 = smov [#allocation20]   ;;  %s9127_s27 = smov [#allocation21]  }
  0x7e   : > { %s449_s14 = sshll.u32 %s9126_s24, 4  ;;  %s463_s23 = sshll.u32 %s9127_s27, 4  ;;  %s450_s14 = int_to_ptr.vmem [resolvable:$true] %s449_s14  ;;  %s464_s23 = int_to_ptr.vmem [resolvable:$true] %s463_s23 }
  0x7f   : > { %s8987_s2 = scalar_lea.vmem %s450_s14, 2048  ;;  %p8995_p11 = scmp.lt.s32.totalorder %s450_s14, %s450_s14 }
  0x80   : > { %p8988_p4 = scmp.ne.s32.totalorder %s450_s14, %s8987_s2  ;;  %p8996_p0 = scmp.lt.s32.totalorder %s8987_s2, %s8987_s2 }
  0x82   : > { %p8990_p7 = pnand %p8988_p4, %p9269_p13  ;;  %p8997_p1 = por %p8996_p0, %p8995_p11 }
  0x84   : > { %p8991_p8 = pneg %p8990_p7 }
  0x86   : > { %p8998_p2 = pnand %p8997_p1, %p8991_p8 }
  0x88   : > { %9001 = shalt.err (!%p8998_p2)
}
  0x89   : > { %8582 = dma.hbm_to_vmem [thread:$0]  (!%p9261_p12), %s10494_s9, 2048, %s450_s14, [#allocation19], %s9122_s16, %s9122_s16, %s9123_s19  }
  0x8a   : > { %s9013_s21 = scalar_lea.vmem %s464_s23, 16  ;;  %s9020_s24 = scalar_lea.vmem %s464_s23, 32 }
  0x8b   : > { %p9014_p9 = scmp.ne.s32.totalorder %s464_s23, %s9013_s21  ;;  %p9021_p6 = scmp.lt.s32.totalorder %s464_s23, %s464_s23 }
  0x8c   : > { %p9022_p10 = scmp.lt.s32.totalorder %s9020_s24, %s9013_s21 }
  0x8d   : > { %p9016_p3 = pnand %p9014_p9, %p9269_p13 }
  0x8e   : > { %p9023_p4 = por %p9022_p10, %p9021_p6 }
  0x8f   : > { %p9017_p5 = pneg %p9016_p3 }
  0x91   : > { %p9024_p7 = pnand %p9023_p4, %p9017_p5 }
  0x93   : > { %9027 = shalt.err (!%p9024_p7)
}
  0x94   : > { %8585 = dma.hbm_to_vmem [thread:$0]  (!%p9261_p12), %s10495_s10, 16, %s464_s23, [#allocation22]  }
  0x95   : > { %p10517_p8 = scmp.ne.s32.totalorder %s10513_s20, 0 }
  0x96   : > { %p10518_p11 = scmp.eq.s32.totalorder (!%p10517_p8), %s9225_s29, 0 }
  0x97   : > { %490 = sbr.rel (%p10517_p8) target bundleno = 2005 (0x7d5), region = 72 }
  0x9c   : > { %9071 = dma.done.wait (%p10518_p11), [#allocation7], 576   ;;  %p10519_p13 = pmov %p10518_p11 }
  0x9d   : > { %p10520_p0 = pmov %p10518_p11 }
  0x9e   : > { %9073 = vsyncadd (%p10519_p13), [#allocation7], 4294966720 }
  0x9f   : > { %9075 = dma.done.wait (%p10520_p0), [#allocation10], 9232   ;;  %p10521_p1 = pmov %p10520_p0 }
  0xa0   : > { %p10522_p2 = pmov %p10520_p0 }
  0xa1   : > { %9077 = vsyncadd (%p10521_p1), [#allocation10], 4294958064 }
  0xa2   : > { %9079 = dma.done.wait (%p10522_p2), [#allocation13], 18448   ;;  %p10523_p12 = pmov %p10520_p0 }
  0xa3   : > { %p10524_p9 = pmov %p10520_p0 }
  0xa4   : > { %9081 = vsyncadd (%p10523_p12), [#allocation13], 4294948848 }
  0xa5   : > { %9083 = dma.done.wait (%p10524_p9), [#allocation16], 73744   ;;  %p10525_p3 = pmov %p10520_p0 }
  0xa6   : > { %p10526_p5 = pmov %p10520_p0 }
  0xa7   : > { %9085 = vsyncadd (%p10525_p3), [#allocation16], 4294893552 }
  0xa8   : > { %9087 = dma.done.wait (%p10526_p5), [#allocation19], 2064   ;;  %p10527_p6 = pmov %p10520_p0 }
  0xa9   : > { %p10528_p10 = pmov %p10520_p0 }
  0xaa   : > { %9089 = vsyncadd (%p10527_p6), [#allocation19], 4294965232 }
  0xab   : > { %9091 = dma.done.wait (%p10528_p10), [#allocation22], 16   ;;  %p10529_p4 = pmov %p10520_p0 }
  0xac   : > { %vm574_vm0 = vcmask 31744   ;;  %vm576_vm1 = vcmask 25600   ;;  %v9128_v0 = vmov 0.0   ;;  %p569_p7 = scmp.lt.s32.totalorder %s9225_s29, 1  ;;  %vm656_vm2 = vcmask 1043456   ;;  %v2266_v48 = vld [vmem:[#allocation11 + $0xf8] sm:$0xff] }
  0xad   : > { %9093 = vsyncadd (%p10529_p4), [#allocation22], 4294967280  ;;  %575 = vst.msk [vmem:[#allocation2] sm:$0xff] %vm574_vm0, %v9128_v0  ;;  %v631_v1 = vld [vmem:[#allocation6 + $0x4] sm:$0xf]  ;;  %vm1971_vm3 = vcmask 523264  }
  0xae   : > { %577 = vst.msk [vmem:[#allocation2 + $0x8] sm:$0x3] %vm576_vm1, %v9128_v0  ;;  %579 = vst.msk [vmem:[#allocation2 + $0x18] sm:$0x3] %vm576_vm1, %v9128_v0  ;;  %s570_s17 = scalar_select %p569_p7, %s9225_s29, 1  ;;  %8511 = vmatprep.subr.msk.mxu1 %vm656_vm2, %v631_v1  ;;  %8240 = vmatprep.subr.msk.mxu0 %vm656_vm2, %v631_v1  ;;  %vm1973_vm4 = vcmask 517120  }
  0xaf   : > { %578 = vst.msk [vmem:[#allocation2 + $0x10] sm:$0xff] %vm574_vm0, %v9128_v0  ;;  %580 = vst.msk [vmem:[#allocation2 + $0x20] sm:$0xff] %vm574_vm0, %v9128_v0  ;;  %v621_v3 = vld [vmem:[#allocation6] sm:$0xf]  ;;  %8512 = vmatpush3.msk.msra.mxu1 %vm656_vm2, %v631_v1  ;;  %8241 = vmatpush3.msk.msra.mxu0 %vm656_vm2, %v631_v1  ;;  %v906_v7 = vld [vmem:[#allocation6 + $0x8] sm:$0xf] }
  0xb0   : > { %581 = vst.msk [vmem:[#allocation2 + $0x28] sm:$0x3] %vm576_vm1, %v9128_v0  ;;  %583 = vst.msk [vmem:[#allocation2 + $0x38] sm:$0x3] %vm576_vm1, %v9128_v0  ;;  %s7157_s20 = sshll.u32 %s570_s17, 6  ;;  %8254 = vmatprep.subr.msk.mxu1 %vm656_vm2, %v621_v3  ;;  %8268 = vmatprep.subr.msk.mxu0 %vm656_vm2, %v906_v7  ;;  %v2250_v49 = vld [vmem:[#allocation11 + $0x78] sm:$0xff] }
  0xb1   : > { %582 = vst.msk [vmem:[#allocation2 + $0x30] sm:$0xff] %vm574_vm0, %v9128_v0  ;;  %584 = vst.msk [vmem:[#allocation2 + $0x40] sm:$0xff] %vm574_vm0, %v9128_v0  ;;  %s573_s19 = scalar_lea.vmem %s10485_s0, %s7157_s20  ;;  %v1056_v16 = vld [vmem:[#allocation6 + $0xc] sm:$0xf]  ;;  %v1206_v19 = vld [vmem:[#allocation6 + $0x10] sm:$0xf] }
  0xb2   : > { %585 = vst.msk [vmem:[#allocation2 + $0x48] sm:$0x3] %vm576_vm1, %v9128_v0  ;;  %587 = vst.msk [vmem:[#allocation2 + $0x58] sm:$0x3] %vm576_vm1, %v9128_v0  ;;  %v599_v2 = vld [vmem:[%s573_s19 + $0x18] sm:$0xff]  ;;  %v596_v5 = vld [vmem:[%s573_s19] sm:$0xff] }
  0xb3   : > { %586 = vst.msk [vmem:[#allocation2 + $0x50] sm:$0xff] %vm574_vm0, %v9128_v0  ;;  %588 = vst.msk [vmem:[#allocation2 + $0x60] sm:$0xff] %vm574_vm0, %v9128_v0  ;;  %v600_v6 = vld [vmem:[%s573_s19 + $0x20] sm:$0xff]  ;;  %v597_v8 = vld [vmem:[%s573_s19 + $0x8] sm:$0xff]  ;;  %s9129_s14 = smov 64   ;;  %vm9131_vm5 = vmmov 0  }
  0xb4   : > { %589 = vst.msk [vmem:[#allocation2 + $0x68] sm:$0x3] %vm576_vm1, %v9128_v0  ;;  %591 = vst.msk [vmem:[#allocation2 + $0x78] sm:$0x3] %vm576_vm1, %v9128_v0  ;;  %v601_v9 = vld [vmem:[%s573_s19 + $0x28] sm:$0xff]  ;;  %v598_v10 = vld [vmem:[%s573_s19 + $0x10] sm:$0xff] }
  0xb5   : > { %590 = vst.msk [vmem:[#allocation2 + $0x70] sm:$0xff] %vm574_vm0, %v9128_v0  ;;  %592 = vst.msk [vmem:[#allocation2 + $0x80] sm:$0xff] %vm574_vm0, %v9128_v0  ;;  %v622_v4 = vld [vmem:[#allocation2 + $0x1] sm:$0xff]  ;;  %v602_v11 = vld [vmem:[%s573_s19 + $0x30] sm:$0xff]  ;;  %s567_s2 = sand.u32 1, %s9104_s26   ;;  %s7154_s30 = sshll.u32 %s9225_s29, 4 }
  0xb6   : > { %593 = vst.msk [vmem:[#allocation2 + $0x88] sm:$0x3] %vm576_vm1, %v9128_v0  ;;  %595 = vst.msk [vmem:[#allocation2 + $0x98] sm:$0x3] %vm576_vm1, %v9128_v0  ;;  %8242 = vmatprep.mubr.msk.f32.mxu0 %vm574_vm0, %v622_v4  ;;  %v603_v12 = vld [vmem:[%s573_s19 + $0x38] sm:$0xff]  ;;  %v613_v22 = vld [vmem:[#allocation2] sm:$0xff]  ;;  %s10450_s15 = scalar_lea.hbm %s10498_s13, %s7154_s30 }
  0xb7   : > { %594 = vst.msk [vmem:[#allocation2 + $0x90] sm:$0xff] %vm574_vm0, %v9128_v0  ;;  %608 = vst.msk [vmem:[#allocation2 + $0x41] sm:$0xff] %vm574_vm0, %v599_v2  ;;  %v897_v23 = vld [vmem:[#allocation2 + $0x2] sm:$0xff]  ;;  %v1356_v28 = vld [vmem:[#allocation6 + $0x14] sm:$0xf]  ;;  %s568_s16 = scalar_lea.vmem [#allocation23], %s567_s2 }
  0xb8   : > { %605 = vst.msk [vmem:[#allocation2 + $0x11] sm:$0xff] %vm574_vm0, %v596_v5  ;;  %609 = vst.msk [vmem:[#allocation2 + $0x51] sm:$0xff] %vm574_vm0, %v600_v6  ;;  %v1507_v29 = vld [vmem:[#allocation6 + $0x18] sm:$0xf]  ;;  %v1657_v40 = vld [vmem:[#allocation6 + $0x1c] sm:$0xf] }
  0xb9   : > { %606 = vst.msk [vmem:[#allocation2 + $0x21] sm:$0xff] %vm574_vm0, %v597_v8  ;;  %610 = vst.msk [vmem:[#allocation2 + $0x61] sm:$0xff] %vm574_vm0, %v601_v9  ;;  %v1807_v41 = vld [vmem:[#allocation6 + $0x20] sm:$0xf]  ;;  %v2265_v50 = vld [vmem:[#allocation11 + $0xf0] sm:$0xff]  ;;  %s6859_s19 = sshll.u32 %s568_s16, 4  ;;  %s6860_s19 = int_to_ptr.vmem [resolvable:$true] %s6859_s19 }
  0xba   : > { %607 = vst.msk [vmem:[#allocation2 + $0x31] sm:$0xff] %vm574_vm0, %v598_v10  ;;  %611 = vst.msk [vmem:[#allocation2 + $0x71] sm:$0xff] %vm574_vm0, %v602_v11  ;;  %v2249_v51 = vld [vmem:[#allocation11 + $0x70] sm:$0xff]  ;;  %v2264_v52 = vld [vmem:[#allocation11 + $0xe8] sm:$0xff]  ;;  %s6847_s22 = scalar_lea.sflag [#allocation8], %s567_s2  ;;  %s9028_s21 = scalar_lea.vmem %s6860_s19, 16 }
  0xbb   : > { %612 = vst.msk [vmem:[#allocation2 + $0x81] sm:$0xff] %vm574_vm0, %v603_v12  ;;  %v2248_v53 = vld [vmem:[#allocation11 + $0x68] sm:$0xff]  ;;  %v2263_v54 = vld [vmem:[#allocation11 + $0xe0] sm:$0xff]  ;;  %v2298_v56 = vld [vmem:[#allocation11 + $0x1f8] sm:$0xff]  ;;  %p9029_p8 = scmp.ne.s32.totalorder %s6860_s19, %s9028_s21  ;;  %p10532_p11 = scmp.ne.s32.totalorder %s10510_s18, 0 }
  0xbc   : > { %1977 = vst.msk [vmem:[#allocation3 + $0x20] sm:$0xff] %vm1971_vm3, %v9128_v0  ;;  %1972 = vst.msk [vmem:[#allocation3] sm:$0xff] %vm1971_vm3, %v9128_v0  ;;  %v2247_v55 = vld [vmem:[#allocation11 + $0x60] sm:$0xff]  ;;  %v2262_v57 = vld [vmem:[#allocation11 + $0xd8] sm:$0xff]  ;;  %s9133_s24 = smov [#allocation23]  }
  0xbd   : > { %1978 = vst.msk [vmem:[#allocation3 + $0x28] sm:$0x3] %vm1973_vm4, %v9128_v0  ;;  %1974 = vst.msk [vmem:[#allocation3 + $0x8] sm:$0x3] %vm1973_vm4, %v9128_v0  ;;  %v2282_v58 = vld [vmem:[#allocation11 + $0x178] sm:$0xff]  ;;  %v2297_v60 = vld [vmem:[#allocation11 + $0x1f0] sm:$0xff]  ;;  %p9030_p13 = pnand %p9029_p8, %p10532_p11 }
  0xbe   : > { %v9447_v13 = vld [vmem:[#allocation2 + $0x41] sm:$0xff]  ;;  %v1505_v45 = vld [vmem:[#allocation2 + $0x90] sm:$0xff]  ;;  %1975 = vst.msk [vmem:[#allocation3 + $0x10] sm:$0xff] %vm1971_vm3, %v9128_v0  ;;  %1979 = vst.msk [vmem:[#allocation3 + $0x30] sm:$0xff] %vm1971_vm3, %v9128_v0  ;;  %s9032_s29 = sshll.u32 %s9133_s24, 4  ;;  %s9033_s29 = int_to_ptr.vmem [resolvable:$false] %s9032_s29 }
  0xbf   : > { %8248 = vmatprep.mubr.msk.f32.mxu1 %vm574_vm0, %v9447_v13  ;;  %v623_v14 = vld [vmem:[#allocation2 + $0x11] sm:$0xff]  ;;  %v617_v32 = vld [vmem:[#allocation2 + $0x40] sm:$0xff]  ;;  %1976 = vst.msk [vmem:[#allocation3 + $0x18] sm:$0x3] %vm1973_vm4, %v9128_v0  ;;  %1980 = vst.msk [vmem:[#allocation3 + $0x38] sm:$0x3] %vm1973_vm4, %v9128_v0  ;;  %p9031_p0 = pneg %p9030_p13  ;;  %p9035_p1 = scmp.lt.s32.totalorder %s6860_s19, %s9033_s29 }
  0xc0   : > { %v9451_v15 = vld [vmem:[#allocation2 + $0x51] sm:$0xff]  ;;  %8243 = vmatmul.mubr.msk.f32.vlgmr.msra.gmra.mxu0 %vm574_vm0, %v623_v14  ;;  %v9456_v17 = vld [vmem:[#allocation2 + $0x21] sm:$0xff]  ;;  %1981 = vst.msk [vmem:[#allocation3 + $0x40] sm:$0xff] %vm1971_vm3, %v9128_v0  ;;  %1983 = vst.msk [vmem:[#allocation3 + $0x50] sm:$0xff] %vm1971_vm3, %v9128_v0  ;;  %s9034_s27 = scalar_lea.vmem %s9033_s29, 32 }
  0xc1   : > { %8249 = vmatmul.mubr.msk.f32.vlgmr.msra.gmra.mxu1 %vm574_vm0, %v9451_v15  ;;  %v9458_v18 = vld [vmem:[#allocation2 + $0x61] sm:$0xff]  ;;  %8269 = vmatpush3.msk.msra.mxu0 %vm656_vm2, %v906_v7  ;;  %v9462_v20 = vld [vmem:[#allocation2 + $0x31] sm:$0xff]  ;;  %1982 = vst.msk [vmem:[#allocation3 + $0x48] sm:$0x3] %vm1973_vm4, %v9128_v0  ;;  %1984 = vst.msk [vmem:[#allocation3 + $0x58] sm:$0x3] %vm1973_vm4, %v9128_v0  ;;  %p9036_p2 = scmp.lt.s32.totalorder %s9034_s27, %s9028_s21 }
  0xc2   : > { %8255 = vmatpush3.msk.msra.mxu1 %vm656_vm2, %v621_v3  ;;  %v9464_v21 = vld [vmem:[#allocation2 + $0x71] sm:$0xff]  ;;  %8245 = vmatprep.mubr.msk.f32.mxu0 %vm574_vm0, %v9456_v17  ;;  %v615_v26 = vld [vmem:[#allocation2 + $0x20] sm:$0xff]  ;;  %1985 = vst.msk [vmem:[#allocation3 + $0x60] sm:$0xff] %vm1971_vm3, %v9128_v0  ;;  %1987 = vst.msk [vmem:[#allocation3 + $0x70] sm:$0xff] %vm1971_vm3, %v9128_v0 }
  0xc3   : > { %8251 = vmatprep.mubr.msk.f32.mxu1 %vm574_vm0, %v9458_v18  ;;  %8282 = vmatprep.subr.msk.mxu1 %vm656_vm2, %v1056_v16  ;;  %v614_v24 = vld [vmem:[#allocation2 + $0x10] sm:$0xff]  ;;  %v9478_v27 = vld [vmem:[#allocation2 + $0x22] sm:$0xff]  ;;  %1986 = vst.msk [vmem:[#allocation3 + $0x68] sm:$0x3] %vm1973_vm4, %v9128_v0  ;;  %1988 = vst.msk [vmem:[#allocation3 + $0x78] sm:$0x3] %vm1973_vm4, %v9128_v0  ;;  %p9037_p12 = por %p9036_p2, %p9035_p1 }
  0xc4   : > { %8296 = vmatprep.subr.msk.mxu0 %vm656_vm2, %v1206_v19  ;;  %8246 = vmatmul.mubr.msk.f32.gmra.mxu0 %vm574_vm0, %v9462_v20  ;;  %v898_v25 = vld [vmem:[#allocation2 + $0x12] sm:$0xff]  ;;  %v9489_v33 = vld [vmem:[#allocation2 + $0x42] sm:$0xff]  ;;  %1989 = vst.msk [vmem:[#allocation3 + $0x80] sm:$0xff] %vm1971_vm3, %v9128_v0  ;;  %1991 = vst.msk [vmem:[#allocation3 + $0x90] sm:$0xff] %vm1971_vm3, %v9128_v0 }
  0xc5   : > { %8252 = vmatmul.mubr.msk.f32.gmra.mxu1 %vm574_vm0, %v9464_v21  ;;  %8270 = vmatprep.mubr.msk.f32.mxu0 %vm574_vm0, %v897_v23  ;;  %v616_v30 = vld [vmem:[#allocation2 + $0x30] sm:$0xff]  ;;  %v619_v36 = vld [vmem:[#allocation2 + $0x60] sm:$0xff]  ;;  %1990 = vst.msk [vmem:[#allocation3 + $0x88] sm:$0x3] %vm1973_vm4, %v9128_v0  ;;  %1992 = vst.msk [vmem:[#allocation3 + $0x98] sm:$0x3] %vm1973_vm4, %v9128_v0  ;;  %p9038_p9 = pnand %p9037_p12, %p9031_p0 }
  0xc6   : > { %8256 = vmatprep.mubr.msk.f32.mxu1 %vm574_vm0, %v613_v22  ;;  %v9484_v31 = vld [vmem:[#allocation2 + $0x32] sm:$0xff]  ;;  %v903_v37 = vld [vmem:[#allocation2 + $0x62] sm:$0xff]  ;;  %v2281_v61 = vld [vmem:[#allocation11 + $0x170] sm:$0xff] }
  0xc7   : > { %v618_v34 = vld [vmem:[#allocation2 + $0x50] sm:$0xff]  ;;  %v1054_v42 = vld [vmem:[#allocation2 + $0x80] sm:$0xff] }
  0xc8   : > { %8271 = vmatmul.mubr.msk.f32.vlgmr.msra.gmra.mxu0 %vm574_vm0, %v898_v25  ;;  %v902_v35 = vld [vmem:[#allocation2 + $0x52] sm:$0xff]  ;;  %v1204_v43 = vld [vmem:[#allocation2 + $0x81] sm:$0xff]  ;;  %v2295_v3 = vld [vmem:[#allocation11 + $0x1e0] sm:$0xff] }
  0xc9   : > { %8257 = vmatmul.mubr.msk.f32.vlgmr.msra.gmra.mxu1 %vm574_vm0, %v614_v24  ;;  %8297 = vmatpush3.msk.msra.mxu0 %vm656_vm2, %v1206_v19  ;;  %v620_v38 = vld [vmem:[#allocation2 + $0x70] sm:$0xff]  ;;  %v1354_v44 = vld [vmem:[#allocation2 + $0x82] sm:$0xff]  ;;  %v2261_v62 = vld [vmem:[#allocation11 + $0xd0] sm:$0xff] }
  0xca   : > { %8283 = vmatpush3.msk.msra.mxu1 %vm656_vm2, %v1056_v16  ;;  %8259 = vmatprep.mubr.msk.f32.mxu1 %vm574_vm0, %v615_v26  ;;  %v904_v39 = vld [vmem:[#allocation2 + $0x72] sm:$0xff]  ;;  %v2246_v59 = vld [vmem:[#allocation11 + $0x58] sm:$0xff]  ;;  %v2245_v1 = vld [vmem:[#allocation11 + $0x50] sm:$0xff] }
  0xcb   : > { %8273 = vmatprep.mubr.msk.f32.mxu0 %vm574_vm0, %v9478_v27  ;;  %8310 = vmatprep.subr.msk.mxu1 %vm656_vm2, %v1356_v28  ;;  %v1655_v46 = vld [vmem:[#allocation2 + $0x91] sm:$0xff]  ;;  %v2294_v7 = vld [vmem:[#allocation11 + $0x1d8] sm:$0xff]  ;;  %v2293_v11 = vld [vmem:[#allocation11 + $0x1d0] sm:$0xff] }
  0xcc   : > { %8324 = vmatprep.subr.msk.mxu0 %vm656_vm2, %v1507_v29  ;;  %8274 = vmatmul.mubr.msk.f32.gmra.mxu0 %vm574_vm0, %v9484_v31  ;;  %v1805_v47 = vld [vmem:[#allocation2 + $0x92] sm:$0xff]  ;;  %v2279_v5 = vld [vmem:[#allocation11 + $0x160] sm:$0xff]  ;;  %v2278_v9 = vld [vmem:[#allocation11 + $0x158] sm:$0xff] }
  0xcd   : > { %8260 = vmatmul.mubr.msk.f32.gmra.mxu1 %vm574_vm0, %v616_v30  ;;  %8276 = vmatprep.mubr.msk.f32.mxu0 %vm574_vm0, %v9489_v33  ;;  %v2296_v63 = vld [vmem:[#allocation11 + $0x1e8] sm:$0xff]  ;;  %v2259_v8 = vld [vmem:[#allocation11 + $0xc0] sm:$0xff]  ;;  %v2258_v12 = vld [vmem:[#allocation11 + $0xb8] sm:$0xff] }
  0xce   : > { %8262 = vmatprep.mubr.msk.f32.mxu1 %vm574_vm0, %v617_v32  ;;  %v2280_v2 = vld [vmem:[#allocation11 + $0x168] sm:$0xff]  ;;  %v2243_v10 = vld [vmem:[#allocation11 + $0x40] sm:$0xff]  ;;  %v2257_v16 = vld [vmem:[#allocation11 + $0xb0] sm:$0xff] }
  0xcf   : > { %v2260_v4 = vld [vmem:[#allocation11 + $0xc8] sm:$0xff]  ;;  %v2255_v22 = vld [vmem:[#allocation11 + $0xa0] sm:$0xff] }
  0xd0   : > { %8277 = vmatmul.mubr.msk.f32.gmra.mxu0 %vm574_vm0, %v902_v35  ;;  %v2244_v6 = vld [vmem:[#allocation11 + $0x48] sm:$0xff] }
  0xd1   : > { %8263 = vmatmul.mubr.msk.f32.gmra.mxu1 %vm574_vm0, %v618_v34  ;;  %8279 = vmatprep.mubr.msk.f32.mxu0 %vm574_vm0, %v903_v37 }
  0xd2   : > { %8265 = vmatprep.mubr.msk.f32.mxu1 %vm574_vm0, %v619_v36 }
  0xd4   : > { %8280 = vmatmul.mubr.msk.f32.gmra.mxu0 %vm574_vm0, %v904_v39 }
  0xd5   : > { %8266 = vmatmul.mubr.msk.f32.gmra.mxu1 %vm574_vm0, %v620_v38  ;;  %8298 = vmatprep.mubr.msk.f32.mxu0 %vm574_vm0, %v623_v14  ;;  %v2242_v14 = vld [vmem:[#allocation11 + $0x38] sm:$0xff] }
  0xd6   : > { %8284 = vmatprep.mubr.msk.f32.mxu1 %vm574_vm0, %v614_v24 }
  0xd8   : > { %8299 = vmatmul.mubr.msk.f32.vlgmr.msra.gmra.mxu0 %vm574_vm0, %v9456_v17 }
  0xd9   : > { %8285 = vmatmul.mubr.msk.f32.vlgmr.msra.gmra.mxu1 %vm574_vm0, %v615_v26  ;;  %8325 = vmatpush3.msk.msra.mxu0 %vm656_vm2, %v1507_v29  ;;  %v2238_v29 = vld [vmem:[#allocation11 + $0x18] sm:$0xff] }
  0xda   : > { %8311 = vmatpush3.msk.msra.mxu1 %vm656_vm2, %v1356_v28  ;;  %8287 = vmatprep.mubr.msk.f32.mxu1 %vm574_vm0, %v616_v30 }
  0xdb   : > { %8301 = vmatprep.mubr.msk.f32.mxu0 %vm574_vm0, %v9462_v20  ;;  %8338 = vmatprep.subr.msk.mxu1 %vm656_vm2, %v1657_v40 }
  0xdc   : > { %8352 = vmatprep.subr.msk.mxu0 %vm656_vm2, %v1807_v41  ;;  %8302 = vmatmul.mubr.msk.f32.gmra.mxu0 %vm574_vm0, %v9447_v13 }
  0xdd   : > { %8288 = vmatmul.mubr.msk.f32.gmra.mxu1 %vm574_vm0, %v617_v32  ;;  %8304 = vmatprep.mubr.msk.f32.mxu0 %vm574_vm0, %v9451_v15 }
  0xde   : > { %8290 = vmatprep.mubr.msk.f32.mxu1 %vm574_vm0, %v618_v34 }
  0xe0   : > { %8305 = vmatmul.mubr.msk.f32.gmra.mxu0 %vm574_vm0, %v9458_v18 }
  0xe1   : > { %8291 = vmatmul.mubr.msk.f32.gmra.mxu1 %vm574_vm0, %v619_v36  ;;  %8307 = vmatprep.mubr.msk.f32.mxu0 %vm574_vm0, %v9464_v21 }
  0xe2   : > { %8293 = vmatprep.mubr.msk.f32.mxu1 %vm574_vm0, %v620_v38 }
  0xe4   : > { %8308 = vmatmul.mubr.msk.f32.gmra.mxu0 %vm574_vm0, %v1204_v43 }
  0xe5   : > { %8294 = vmatmul.mubr.msk.f32.gmra.mxu1 %vm574_vm0, %v1054_v42  ;;  %8326 = vmatprep.mubr.msk.f32.mxu0 %vm574_vm0, %v615_v26  ;;  %v2254_v26 = vld [vmem:[#allocation11 + $0x98] sm:$0xff] }
  0xe6   : > { %8312 = vmatprep.mubr.msk.f32.mxu1 %vm574_vm0, %v898_v25  ;;  %v2239_v25 = vld [vmem:[#allocation11 + $0x20] sm:$0xff] }
  0xe8   : > { %8327 = vmatmul.mubr.msk.f32.vlgmr.msra.gmra.mxu0 %vm574_vm0, %v616_v30  ;;  %v2253_v30 = vld [vmem:[#allocation11 + $0x90] sm:$0xff] }
  0xe9   : > { %8313 = vmatmul.mubr.msk.f32.vlgmr.msra.gmra.mxu1 %vm574_vm0, %v9478_v27  ;;  %8353 = vmatpush3.msk.msra.mxu0 %vm656_vm2, %v1807_v41 }
  0xea   : > { %8339 = vmatpush3.msk.msra.mxu1 %vm656_vm2, %v1657_v40  ;;  %8315 = vmatprep.mubr.msk.f32.mxu1 %vm574_vm0, %v9484_v31 }
  0xeb   : > { %8329 = vmatprep.mubr.msk.f32.mxu0 %vm574_vm0, %v617_v32  ;;  %7239 = vmatprep.subr.mxu1 %v2266_v48 }
  0xec   : > { %8330 = vmatmul.mubr.msk.f32.gmra.mxu0 %vm574_vm0, %v618_v34  ;;  %7295 = vmatprep.subr.mxu0 %v2298_v56  ;;  %v2252_v34 = vld [vmem:[#allocation11 + $0x88] sm:$0xff] }
  0xed   : > { %8316 = vmatmul.mubr.msk.f32.gmra.mxu1 %vm574_vm0, %v9489_v33  ;;  %8332 = vmatprep.mubr.msk.f32.mxu0 %vm574_vm0, %v619_v36 }
  0xee   : > { %8318 = vmatprep.mubr.msk.f32.mxu1 %vm574_vm0, %v902_v35 }
  0xf0   : > { %8333 = vmatmul.mubr.msk.f32.gmra.mxu0 %vm574_vm0, %v620_v38 }
  0xf1   : > { %8319 = vmatmul.mubr.msk.f32.gmra.mxu1 %vm574_vm0, %v903_v37  ;;  %8335 = vmatprep.mubr.msk.f32.mxu0 %vm574_vm0, %v1054_v42 }
  0xf2   : > { %8321 = vmatprep.mubr.msk.f32.mxu1 %vm574_vm0, %v904_v39 }
  0xf4   : > { %8336 = vmatmul.mubr.msk.f32.gmra.mxu0 %vm574_vm0, %v1505_v45 }
  0xf5   : > { %8322 = vmatmul.mubr.msk.f32.gmra.mxu1 %vm574_vm0, %v1354_v44  ;;  %8354 = vmatprep.mubr.msk.f32.mxu0 %vm574_vm0, %v9478_v27 }
  0xf6   : > { %8340 = vmatprep.mubr.msk.f32.mxu1 %vm574_vm0, %v9456_v17  ;;  %v2241_v17 = vld [vmem:[#allocation11 + $0x30] sm:$0xff] }
  0xf8   : > { %8355 = vmatmul.mubr.msk.f32.vlgmr.msra.gmra.mxu0 %vm574_vm0, %v9484_v31 }
  0xf9   : > { %8341 = vmatmul.mubr.msk.f32.vlgmr.msra.gmra.mxu1 %vm574_vm0, %v9462_v20  ;;  %8357 = vmatprep.mubr.msk.f32.mxu0 %vm574_vm0, %v9489_v33  ;;  %v2237_v33 = vld [vmem:[#allocation11 + $0x10] sm:$0xff] }
  0xfa   : > { %8343 = vmatprep.mubr.msk.f32.mxu1 %vm574_vm0, %v9447_v13  ;;  %7240 = vmatpush3.msra.mxu1 %v2250_v49  ;;  %v2277_v13 = vld [vmem:[#allocation11 + $0x150] sm:$0xff] }
  0xfb   : > { %7241 = vmatprep.subr.mxu1 %v2265_v50  ;;  %7296 = vmatpush3.msra.mxu0 %v2282_v58 }
  0xfc   : > { %8358 = vmatmul.mubr.msk.f32.gmra.mxu0 %vm574_vm0, %v902_v35  ;;  %7242 = vmatpush3.msra.mxu1 %v2249_v51 }
  0xfd   : > { %8344 = vmatmul.mubr.msk.f32.gmra.mxu1 %vm574_vm0, %v9451_v15  ;;  %8360 = vmatprep.mubr.msk.f32.mxu0 %vm574_vm0, %v903_v37  ;;  %v2292_v15 = vld [vmem:[#allocation11 + $0x1c8] sm:$0xff] }
  0xfe   : > { %8346 = vmatprep.mubr.msk.f32.mxu1 %vm574_vm0, %v9458_v18  ;;  %7243 = vmatprep.subr.mxu1 %v2264_v52  ;;  %v2256_v18 = vld [vmem:[#allocation11 + $0xa8] sm:$0xff] }
  0xff   : > { %7244 = vmatpush3.msra.mxu1 %v2248_v53  ;;  %7297 = vmatprep.subr.mxu0 %v2297_v60 }
 0x100   : > { %8361 = vmatmul.mubr.msk.f32.gmra.mxu0 %vm574_vm0, %v904_v39  ;;  %7245 = vmatprep.subr.mxu1 %v2263_v54 }
 0x101   : > { %8347 = vmatmul.mubr.msk.f32.gmra.mxu1 %vm574_vm0, %v9464_v21  ;;  %8363 = vmatprep.mubr.msk.f32.mxu0 %vm574_vm0, %v1354_v44  ;;  %v2240_v21 = vld [vmem:[#allocation11 + $0x28] sm:$0xff] }
 0x102   : > { %8349 = vmatprep.mubr.msk.f32.mxu1 %vm574_vm0, %v1204_v43  ;;  %7246 = vmatpush3.msra.mxu1 %v2247_v55 }
 0x103   : > { %7247 = vmatprep.subr.mxu1 %v2262_v57  ;;  %7298 = vmatpush3.msra.mxu0 %v2281_v61 }
 0x104   : > { %8364 = vmatmul.mubr.msk.f32.gmra.mxu0 %vm574_vm0, %v1805_v47  ;;  %7248 = vmatpush3.msra.mxu1 %v2246_v59 }
 0x105   : > { %8350 = vmatmul.mubr.msk.f32.gmra.mxu1 %vm574_vm0, %v1655_v46  ;;  %7299 = vmatprep.subr.mxu0 %v2296_v63 }
 0x106   : > { %7249 = vmatprep.subr.mxu1 %v2261_v62  ;;  %7300 = vmatpush3.msra.mxu0 %v2280_v2 }
 0x107   : > { %7250 = vmatpush3.msra.mxu1 %v2245_v1  ;;  %7301 = vmatprep.subr.mxu0 %v2295_v3 }
 0x108   : > { %7251 = vmatprep.subr.mxu1 %v2260_v4  ;;  %7302 = vmatpush3.msra.mxu0 %v2279_v5 }
 0x109   : > { %7252 = vmatpush3.msra.mxu1 %v2244_v6  ;;  %7303 = vmatprep.subr.mxu0 %v2294_v7 }
 0x10a   : > { %7253 = vmatprep.subr.mxu1 %v2259_v8  ;;  %7304 = vmatpush3.msra.mxu0 %v2278_v9 }
 0x10b   : > { %7254 = vmatpush3.msra.mxu1 %v2243_v10  ;;  %7305 = vmatprep.subr.mxu0 %v2293_v11 }
 0x10c   : > { %7255 = vmatprep.subr.mxu1 %v2258_v12  ;;  %7306 = vmatpush3.msra.mxu0 %v2277_v13 }
 0x10d   : > { %7256 = vmatpush3.msra.mxu1 %v2242_v14  ;;  %7307 = vmatprep.subr.mxu0 %v2292_v15 }
 0x10e   : > { %7257 = vmatprep.subr.mxu1 %v2257_v16 }
 0x10f   : > { %7258 = vmatpush3.msra.mxu1 %v2241_v17 }
 0x110   : > { %7259 = vmatprep.subr.mxu1 %v2256_v18 }
 0x111   : > { %7260 = vmatpush3.msra.mxu1 %v2240_v21 }
 0x112   : > { %7261 = vmatprep.subr.mxu1 %v2255_v22 }
 0x113   : > { %7262 = vmatpush3.msra.mxu1 %v2239_v25 }
 0x114   : > { %7263 = vmatprep.subr.mxu1 %v2254_v26 }
 0x115   : > { %7264 = vmatpush3.msra.mxu1 %v2238_v29 }
 0x116   : > { %7265 = vmatprep.subr.mxu1 %v2253_v30 }
 0x117   : > { %7266 = vmatpush3.msra.mxu1 %v2237_v33 }
 0x118   : > { %7267 = vmatprep.subr.mxu1 %v2252_v34 }
 0x180   : > { %v8244_v19 = vpop.f32.mrf.mxu0 }
 0x181   : > { %v9617_v20 = vpop.f32.mrf.mxu1 }
 0x182   : > { %v726_v23 = vpop.f32.mrf.mxu0 }
 0x183   : > { %v9619_v24 = vpop.f32.mrf.mxu1 }
 0x184   : > { %v8247_v27 = vpop.f32.mrf.mxu0 }
 0x185   : > { %v9621_v28 = vpop.f32.mrf.mxu1 }
 0x186   : > { %v736_v31 = vpop.f32.mrf.mxu0 }
 0x187   : > { %v9623_v32 = vpop.f32.mrf.mxu1 }
 0x188   : > { %v8272_v36 = vpop.f32.mrf.mxu0 }
 0x189   : > { %v8258_v35 = vpop.f32.mrf.mxu1 }
 0x18a   : > { %v1000_v38 = vpop.f32.mrf.mxu0  ;;  %v864_v4 = vadd.f32 %v8258_v35, %v8244_v19 }
 0x18b   : > { %v858_v37 = vpop.f32.mrf.mxu1 }
 0x18c   : > { %v8275_v40 = vpop.f32.mrf.mxu0  ;;  %v859_v7 = vadd.f32 %v858_v37, %v726_v23  ;;  %v1040_v10 = vadd.f32 %v8272_v36, %v864_v4 }
 0x18d   : > { %v8261_v39 = vpop.f32.mrf.mxu1 }
 0x18e   : > { %v1010_v42 = vpop.f32.mrf.mxu0  ;;  %v874_v11 = vadd.f32 %v8261_v39, %v8247_v27  ;;  %v1039_v14 = vadd.f32 %v1000_v38, %v859_v7 }
 0x18f   : > { %v868_v41 = vpop.f32.mrf.mxu1 }
 0x190   : > { %v8278_v44 = vpop.f32.mrf.mxu0  ;;  %v869_v15 = vadd.f32 %v868_v41, %v736_v31  ;;  %v1042_v22 = vadd.f32 %v8275_v40, %v874_v11 }
 0x191   : > { %v8264_v43 = vpop.f32.mrf.mxu1 }
 0x192   : > { %v1020_v46 = vpop.f32.mrf.mxu0  ;;  %v884_v17 = vadd.f32 %v8264_v43, %v9617_v20  ;;  %v1041_v23 = vadd.f32 %v1010_v42, %v869_v15 }
 0x193   : > { %v878_v45 = vpop.f32.mrf.mxu1 }
 0x194   : > { %v8281_v48 = vpop.f32.mrf.mxu0  ;;  %v879_v19 = vadd.f32 %v878_v45, %v9619_v24  ;;  %v1044_v34 = vadd.f32 %v8278_v44, %v884_v17 }
 0x195   : > { %v8267_v47 = vpop.f32.mrf.mxu1 }
 0x196   : > { %v1030_v50 = vpop.f32.mrf.mxu0  ;;  %v894_v27 = vadd.f32 %v8267_v47, %v9621_v28  ;;  %v1043_v20 = vadd.f32 %v1020_v46, %v879_v19 }
 0x197   : > { %v888_v49 = vpop.f32.mrf.mxu1 }
 0x198   : > { %v8300_v52 = vpop.f32.mrf.mxu0  ;;  %v889_v39 = vadd.f32 %v888_v49, %v9623_v32  ;;  %v1046_v42 = vadd.f32 %v8281_v48, %v894_v27  ;;  %v2291_v27 = vld [vmem:[#allocation11 + $0x1c0] sm:$0xff] }
 0x199   : > { %v8286_v51 = vpop.f32.mrf.mxu1 }
 0x19a   : > { %v1300_v54 = vpop.f32.mrf.mxu0  ;;  %v1190_v16 = vadd.f32 %v8286_v51, %v1040_v10 }
 0x19b   : > { %v1150_v53 = vpop.f32.mrf.mxu1 }
 0x19c   : > { %v8303_v56 = vpop.f32.mrf.mxu0  ;;  %v1189_v25 = vadd.f32 %v1150_v53, %v1039_v14  ;;  %v1340_v30 = vadd.f32 %v8300_v52, %v1190_v16 }
 0x19d   : > { %v8289_v55 = vpop.f32.mrf.mxu1 }
 0x19e   : > { %v1310_v58 = vpop.f32.mrf.mxu0  ;;  %v1192_v33 = vadd.f32 %v8289_v55, %v1042_v22  ;;  %v1339_v31 = vadd.f32 %v1300_v54, %v1189_v25  ;;  %v1045_v54 = vadd.f32 %v1030_v50, %v889_v39 }
 0x19f   : > { %v1160_v57 = vpop.f32.mrf.mxu1 }
 0x1a0   : > { %v8306_v60 = vpop.f32.mrf.mxu0  ;;  %v1191_v37 = vadd.f32 %v1160_v57, %v1041_v23  ;;  %v1342_v24 = vadd.f32 %v8303_v56, %v1192_v33  ;;  %v2236_v33 = vld [vmem:[#allocation11 + $0x8] sm:$0xff] }
 0x1a1   : > { %v8292_v59 = vpop.f32.mrf.mxu1  ;;  %7268 = vmatpush3.msra.mxu1 %v2236_v33 }
 0x1a2   : > { %v1320_v62 = vpop.f32.mrf.mxu0  ;;  %v1194_v40 = vadd.f32 %v8292_v59, %v1044_v34  ;;  %v1341_v28 = vadd.f32 %v1310_v58, %v1191_v37  ;;  %v2251_v34 = vld [vmem:[#allocation11 + $0x80] sm:$0xff] }
 0x1a3   : > { %v1170_v61 = vpop.f32.mrf.mxu1  ;;  %v2235_v37 = vld [vmem:[#allocation11] sm:$0xff]  ;;  %7269 = vmatprep.subr.mxu1 %v2251_v34 }
 0x1a4   : > { %v9625_v1 = vpop.f32.mrf.mxu0  ;;  %v1193_v51 = vadd.f32 %v1170_v61, %v1043_v20  ;;  %v1344_v55 = vadd.f32 %v8306_v60, %v1194_v40  ;;  %v2290_v20 = vld [vmem:[#allocation11 + $0x1b8] sm:$0xff]  ;;  %7270 = vmatpush3.msra.mxu1 %v2235_v37 }
 0x1a5   : > { %v8295_v63 = vpop.f32.mrf.mxu1 }
 0x1a6   : > { %v9627_v3 = vpop.f32.mrf.mxu0  ;;  %v1196_v57 = vadd.f32 %v8295_v63, %v1046_v42 }
 0x1a7   : > { %v1180_v2 = vpop.f32.mrf.mxu1 }
 0x1a8   : > { %v8328_v6 = vpop.f32.mrf.mxu0  ;;  %v1195_v7 = vadd.f32 %v1180_v2, %v1045_v54 }
 0x1a9   : > { %v8314_v5 = vpop.f32.mrf.mxu1 }
 0x1aa   : > { %v1601_v9 = vpop.f32.mrf.mxu0  ;;  %v1490_v38 = vadd.f32 %v8314_v5, %v1340_v30  ;;  %v1343_v5 = vadd.f32 %v1320_v62, %v1193_v51  ;;  %v1345_v62 = vadd.f32 %v9627_v3, %v1195_v7 }
 0x1ab   : > { %v1450_v8 = vpop.f32.mrf.mxu1 }
 0x1ac   : > { %v8331_v13 = vpop.f32.mrf.mxu0  ;;  %v1489_v45 = vadd.f32 %v1450_v8, %v1339_v31  ;;  %v1641_v47 = vadd.f32 %v8328_v6, %v1490_v38  ;;  %v9637_v8 = vld [vmem:[#allocation9] ss:$0 sm:$0xff]  ;;  %v1346_v6 = vadd.f32 %v9625_v1, %v1196_v57  ;;  %v2276_v1 = vld [vmem:[#allocation11 + $0x148] sm:$0xff]  ;;  %v2275_v38 = vld [vmem:[#allocation11 + $0x140] sm:$0xff] }
 0x1ad   : > { %v8317_v12 = vpop.f32.mrf.mxu1  ;;  %7308 = vmatpush3.msra.mxu0 %v2276_v1  ;;  %v2268_v1 = vld [vmem:[#allocation11 + $0x108] sm:$0xff] }
 0x1ae   : > { %v1611_v21 = vpop.f32.mrf.mxu0  ;;  %v1492_v53 = vadd.f32 %v8317_v12, %v1342_v24  ;;  %v1640_v32 = vadd.f32 %v1601_v9, %v1489_v45  ;;  %7309 = vmatprep.subr.mxu0 %v2291_v27 }
 0x1af   : > { %v1460_v18 = vpop.f32.mrf.mxu1  ;;  %7310 = vmatpush3.msra.mxu0 %v2275_v38 }
 0x1b0   : > { %v8334_v29 = vpop.f32.mrf.mxu0  ;;  %v1491_v49 = vadd.f32 %v1460_v18, %v1341_v28  ;;  %v1643_v10 = vadd.f32 %v8331_v13, %v1492_v53  ;;  %7311 = vmatprep.subr.mxu0 %v2290_v20  ;;  %v2289_v53 = vld [vmem:[#allocation11 + $0x1b0] sm:$0xff] }
 0x1b1   : > { %v8320_v26 = vpop.f32.mrf.mxu1 }
 0x1b2   : > { %v1621_v36 = vpop.f32.mrf.mxu0  ;;  %v1494_v56 = vadd.f32 %v8320_v26, %v1344_v55  ;;  %v1642_v12 = vadd.f32 %v1611_v21, %v1491_v49 }
 0x1b3   : > { %v1470_v35 = vpop.f32.mrf.mxu1 }
 0x1b4   : > { %v9633_v43 = vpop.f32.mrf.mxu0  ;;  %v1493_v50 = vadd.f32 %v1470_v35, %v1343_v5  ;;  %v1645_v2 = vadd.f32 %v8334_v29, %v1494_v56 }
 0x1b5   : > { %v8323_v41 = vpop.f32.mrf.mxu1 }
 0x1b6   : > { %v9635_v44 = vpop.f32.mrf.mxu0  ;;  %v1496_v16 = vadd.f32 %v8323_v41, %v1346_v6  ;;  %v1644_v26 = vadd.f32 %v1621_v36, %v1493_v50  ;;  %v9646_v41 = vld [vmem:[#allocation11 + $0x238] sm:$0xff]  ;;  %v2287_v6 = vld [vmem:[#allocation11 + $0x1a0] sm:$0xff] }
 0x1b7   : > { %v1480_v52 = vpop.f32.mrf.mxu1  ;;  %8366 = vmatprep.subr.mxu1 %v9646_v41  ;;  %v2271_v50 = vld [vmem:[#allocation11 + $0x120] sm:$0xff] }
 0x1b8   : > { %v8356_v4 = vpop.f32.mrf.mxu0  ;;  %v1495_v23 = vadd.f32 %v1480_v52, %v1345_v62  ;;  %v1647_v36 = vadd.f32 %v9633_v43, %v1496_v16  ;;  %v2274_v52 = vld [vmem:[#allocation11 + $0x138] sm:$0xff]  ;;  %v2285_v16 = vld [vmem:[#allocation11 + $0x190] sm:$0xff] }
 0x1b9   : > { %v8342_v46 = vpop.f32.mrf.mxu1  ;;  %7312 = vmatpush3.msra.mxu0 %v2274_v52 }
 0x1ba   : > { %v1791_v59 = vadd.f32 %v8342_v46, %v1641_v47  ;;  %v1901_v61 = vpop.f32.mrf.mxu0  ;;  %v1646_v28 = vadd.f32 %v9635_v44, %v1495_v23  ;;  %7313 = vmatprep.subr.mxu0 %v2289_v53  ;;  %v2283_v23 = vld [vmem:[#allocation11 + $0x180] sm:$0xff] }
 0x1bb   : > { %v1751_v48 = vpop.f32.mrf.mxu1 }
 0x1bc   : > { %v1941_v11 = vadd.f32 %v8356_v4, %v1791_v59  ;;  %v1790_v58 = vadd.f32 %v1751_v48, %v1640_v32  ;;  %v8359_v63 = vpop.f32.mrf.mxu0  ;;  %v2273_v4 = vld [vmem:[#allocation11 + $0x130] sm:$0xff]  ;;  %v2288_v32 = vld [vmem:[#allocation11 + $0x1a8] sm:$0xff] }
 0x1bd   : > { %v8345_v60 = vpop.f32.mrf.mxu1  ;;  %7314 = vmatpush3.msra.mxu0 %v2273_v4  ;;  %v2272_v48 = vld [vmem:[#allocation11 + $0x128] sm:$0xff] }
 0x1be   : > { %v1956_v9 = vadd.f32 %v9637_v8, %v1941_v11  ;;  %v1940_v14 = vadd.f32 %v1901_v61, %v1790_v58  ;;  %v1793_v15 = vadd.f32 %v8345_v60, %v1643_v10  ;;  %v1911_v18 = vpop.f32.mrf.mxu0  ;;  %7315 = vmatprep.subr.mxu0 %v2288_v32  ;;  %v2010_v61 = vld [vmem:[#allocation3 + $0x1] sm:$0xff] }
 0x1bf   : > { %v1761_v17 = vpop.f32.mrf.mxu1  ;;  %7316 = vmatpush3.msra.mxu0 %v2272_v48 }
 0x1c0   : > { %v1964_v22 = vmax.f32 %v1956_v9, 0.0  ;;  %v1955_v13 = vadd.f32 %v9637_v8, %v1940_v14  ;;  %v1792_v25 = vadd.f32 %v1761_v17, %v1642_v12  ;;  %v1943_v19 = vadd.f32 %v8359_v63, %v1793_v15  ;;  %v8362_v21 = vpop.f32.mrf.mxu0  ;;  %7317 = vmatprep.subr.mxu0 %v2287_v6  ;;  %v2286_v14 = vld [vmem:[#allocation11 + $0x198] sm:$0xff]  ;;  %v2269_v17 = vld [vmem:[#allocation11 + $0x110] sm:$0xff] }
 0x1c1   : > { %v8348_v30 = vpop.f32.mrf.mxu1  ;;  %7318 = vmatpush3.msra.mxu0 %v2271_v50  ;;  %v2270_v15 = vld [vmem:[#allocation11 + $0x118] sm:$0xff]  ;;  %v2305_v50 = vld [vmem:[#allocation11 + $0x230] sm:$0xff] }
 0x1c2   : > { %1995 = vst.msk [vmem:[#allocation3 + $0x21] sm:$0xff] %vm1971_vm3, %v1964_v22  ;;  %v1963_v3 = vmax.f32 %v1955_v13, 0.0  ;;  %v1958_v29 = vadd.f32 %v9637_v8, %v1943_v19  ;;  %v1795_v35 = vadd.f32 %v8348_v30, %v1645_v2  ;;  %v1942_v31 = vadd.f32 %v1911_v18, %v1792_v25  ;;  %v1921_v40 = vpop.f32.mrf.mxu0  ;;  %7319 = vmatprep.subr.mxu0 %v2286_v14  ;;  %v2284_v19 = vld [vmem:[#allocation11 + $0x188] sm:$0xff]  ;;  %v2267_v30 = vld [vmem:[#allocation11 + $0x100] sm:$0xff] }
 0x1c3   : > { %v1771_v39 = vpop.f32.mrf.mxu1  ;;  %7320 = vmatpush3.msra.mxu0 %v2270_v15  ;;  %v2304_v14 = vld [vmem:[#allocation11 + $0x228] sm:$0xff] }
 0x1c4   : > { %1994 = vst.msk [vmem:[#allocation3 + $0x11] sm:$0xff] %vm1971_vm3, %v1963_v3  ;;  %v1966_v24 = vmax.f32 %v1958_v29, 0.0  ;;  %v1957_v45 = vadd.f32 %v9637_v8, %v1942_v31  ;;  %v1794_v42 = vadd.f32 %v1771_v39, %v1644_v26  ;;  %v1945_v51 = vadd.f32 %v8362_v21, %v1795_v35  ;;  %v8365_v43 = vpop.f32.mrf.mxu0  ;;  %7321 = vmatprep.subr.mxu0 %v2285_v16 }
 0x1c5   : > { %v8351_v47 = vpop.f32.mrf.mxu1  ;;  %7322 = vmatpush3.msra.mxu0 %v2269_v17 }
 0x1c6   : > { %1997 = vst.msk [vmem:[#allocation3 + $0x41] sm:$0xff] %vm1971_vm3, %v1966_v24  ;;  %v1965_v54 = vmax.f32 %v1957_v45, 0.0  ;;  %v1960_v55 = vadd.f32 %v9637_v8, %v1945_v51  ;;  %v1797_v57 = vadd.f32 %v8351_v47, %v1647_v36  ;;  %v1944_v46 = vadd.f32 %v1921_v40, %v1794_v42  ;;  %v1931_v59 = vpop.f32.mrf.mxu0  ;;  %7323 = vmatprep.subr.mxu0 %v2284_v19 }
 0x1c7   : > { %v1781_v49 = vpop.f32.mrf.mxu1  ;;  %7324 = vmatpush3.msra.mxu0 %v2268_v1 }
 0x1c8   : > { %1996 = vst.msk [vmem:[#allocation3 + $0x31] sm:$0xff] %vm1971_vm3, %v1965_v54  ;;  %v1968_v44 = vmax.f32 %v1960_v55, 0.0  ;;  %v1959_v5 = vadd.f32 %v9637_v8, %v1944_v46  ;;  %v1796_v7 = vadd.f32 %v1781_v49, %v1646_v28  ;;  %v1947_v56 = vadd.f32 %v8365_v43, %v1797_v57  ;;  %7325 = vmatprep.subr.mxu0 %v2283_v23 }
 0x1c9   : > { %v9667_v18 = vld [vmem:[#allocation3 + $0x21] sm:$0xff]  ;;  %7326 = vmatpush3.msra.mxu0 %v2267_v30 }
 0x1ca   : > { %1999 = vst.msk [vmem:[#allocation3 + $0x61] sm:$0xff] %vm1971_vm3, %v1968_v44  ;;  %v1967_v10 = vmax.f32 %v1959_v5, 0.0  ;;  %v1962_v11 = vadd.f32 %v9637_v8, %v1947_v56  ;;  %v1946_v58 = vadd.f32 %v1931_v59, %v1796_v7  ;;  %v9671_v22 = vld [vmem:[#allocation3 + $0x20] sm:$0xff]  ;;  %v2066_v59 = vld [vmem:[#allocation3 + $0x91] sm:$0xff] }
 0x1cb   : > { %v9658_v60 = vld [vmem:[#allocation3 + $0x10] sm:$0xff]  ;;  %v9719_v51 = vld [vmem:[#allocation3 + $0x22] sm:$0xff] }
 0x1cc   : > { %1998 = vst.msk [vmem:[#allocation3 + $0x51] sm:$0xff] %vm1971_vm3, %v1967_v10  ;;  %v1970_v63 = vmax.f32 %v1962_v11, 0.0  ;;  %v1961_v12 = vadd.f32 %v9637_v8, %v1946_v58  ;;  %v8662_v9 = vpack.i.bf16 %v2010_v61, %v9658_v60  ;;  %v9663_v62 = vld [vmem:[#allocation3 + $0x11] sm:$0xff]  ;;  %v2018_v7 = vld [vmem:[#allocation3 + $0x2] sm:$0xff] }
 0x1cd   : > { %v8667_v25 = vpack.i.bf16 %v9663_v62, %v9671_v22  ;;  %v9682_v21 = vld [vmem:[#allocation3 + $0x40] sm:$0xff]  ;;  %v2042_v39 = vld [vmem:[#allocation3 + $0x12] sm:$0xff] }
 0x1ce   : > { %2001 = vst.msk [vmem:[#allocation3 + $0x81] sm:$0xff] %vm1971_vm3, %v1970_v63  ;;  %v1969_v2 = vmax.f32 %v1961_v12, 0.0  ;;  %8663 = vrot.lane.b32.xlu0 %v8662_v9, %s9129_s14  ;;  %v9684_v33 = vld [vmem:[#allocation3 + $0x41] sm:$0xff] }
 0x1cf   : > { %v9669_v8 = vld [vmem:[#allocation3 + $0x30] sm:$0xff]  ;;  %v9729_v43 = vld [vmem:[#allocation3 + $0x42] sm:$0xff] }
 0x1d0   : > { %2000 = vst.msk [vmem:[#allocation3 + $0x71] sm:$0xff] %vm1971_vm3, %v1969_v2  ;;  %v8672_v13 = vpack.i.bf16 %v9667_v18, %v9669_v8  ;;  %v9678_v26 = vld [vmem:[#allocation3 + $0x31] sm:$0xff]  ;;  %v2002_v56 = vld [vmem:[#allocation3] sm:$0xff] }
 0x1d1   : > { %v8677_v27 = vpack.i.bf16 %v9678_v26, %v9682_v21  ;;  %v9696_v35 = vld [vmem:[#allocation3 + $0x60] sm:$0xff]  ;;  %v9715_v42 = vld [vmem:[#allocation3 + $0x32] sm:$0xff] }
 0x1d2   : > { %8673 = vrot.lane.b32.xlu1 %v8672_v13, %s9129_s14  ;;  %8668 = vrot.lane.b32.xlu0 %v8667_v25, %s9129_s14  ;;  %v9704_v20 = vld [vmem:[#allocation3 + $0x61] sm:$0xff]  ;;  %v8712_v28 = vpack.i.bf16 %v9715_v42, %v9684_v33  ;;  %v2303_v25 = vld [vmem:[#allocation11 + $0x220] sm:$0xff] }
 0x1d3   : > { %v9686_v34 = vld [vmem:[#allocation3 + $0x50] sm:$0xff]  ;;  %v8692_v40 = vpack.i.bf16 %v2042_v39, %v9704_v20  ;;  %v9739_v57 = vld [vmem:[#allocation3 + $0x62] sm:$0xff] }
 0x1d4   : > { %v8682_v3 = vpack.i.bf16 %v9684_v33, %v9686_v34  ;;  %v9692_v29 = vld [vmem:[#allocation3 + $0x51] sm:$0xff] }
 0x1d5   : > { %v8687_v37 = vpack.i.bf16 %v9692_v29, %v9696_v35  ;;  %v9706_v36 = vld [vmem:[#allocation3 + $0x80] sm:$0xff]  ;;  %v9725_v47 = vld [vmem:[#allocation3 + $0x52] sm:$0xff]  ;;  %v8717_v53 = vpack.i.bf16 %v9729_v43, %v9692_v29 }
 0x1d6   : > { %8678 = vrot.lane.b32.xlu1 %v8677_v27, %s9129_s14  ;;  %8683 = vrot.lane.b32.xlu0 %v8682_v3, %s9129_s14  ;;  %v8702_v24 = vpack.i.bf16 %v9678_v26, %v9706_v36  ;;  %v8722_v54 = vpack.i.bf16 %v9725_v47, %v9704_v20  ;;  %v9741_v46 = vld [vmem:[#allocation3 + $0x81] sm:$0xff] }
 0x1d7   : > { %v9698_v31 = vld [vmem:[#allocation3 + $0x70] sm:$0xff]  ;;  %v9747_v49 = vld [vmem:[#allocation3 + $0x82] sm:$0xff]  ;;  %v2301_v3 = vld [vmem:[#allocation11 + $0x210] sm:$0xff] }
 0x1d8   : > { %v8697_v38 = vpack.i.bf16 %v9667_v18, %v9698_v31  ;;  %v9713_v45 = vld [vmem:[#allocation3 + $0x71] sm:$0xff]  ;;  %v8737_v44 = vpack.i.bf16 %v9747_v49, %v2066_v59 }
 0x1d9   : > { %v8707_v52 = vpack.i.bf16 %v9719_v51, %v9713_v45  ;;  %v9735_v55 = vld [vmem:[#allocation3 + $0x72] sm:$0xff]  ;;  %v8727_v4 = vpack.i.bf16 %v9739_v57, %v9713_v45 }
 0x1da   : > { %8688 = vrot.lane.b32.xlu1 %v8687_v37, %s9129_s14  ;;  %8698 = vrot.lane.b32.xlu0 %v8697_v38, %s9129_s14  ;;  %v8732_v32 = vpack.i.bf16 %v9735_v55, %v9741_v46 }
 0x1de   : > { %8693 = vrot.lane.b32.xlu1 %v8692_v40, %s9129_s14  ;;  %8703 = vrot.lane.b32.xlu0 %v8702_v24, %s9129_s14  ;;  %v2300_v40 = vld [vmem:[#allocation11 + $0x208] sm:$0xff] }
 0x1e2   : > { %8708 = vrot.lane.b32.xlu1 %v8707_v52, %s9129_s14  ;;  %8713 = vrot.lane.b32.xlu0 %v8712_v28, %s9129_s14 }
 0x1e6   : > { %8718 = vrot.lane.b32.xlu1 %v8717_v53, %s9129_s14  ;;  %8723 = vrot.lane.b32.xlu0 %v8722_v54, %s9129_s14 }
 0x1ea   : > { %8728 = vrot.lane.b32.xlu1 %v8727_v4, %s9129_s14  ;;  %8733 = vrot.lane.b32.xlu0 %v8732_v32, %s9129_s14  ;;  %v2299_v4 = vld [vmem:[#allocation11 + $0x200] sm:$0xff] }
 0x1ee   : > { %8738 = vrot.lane.b32.xlu1 %v8737_v44, %s9129_s14 }
 0x240   : > { %v8664_v5 = vpop.permute.xlu0 %8663 }
 0x241   : > { %v8666_v48 = vunpack.i.h.bf16 %v8664_v5  ;;  %v8665_v61 = vunpack.i.l.bf16 %v8664_v5 }
 0x243   : > { %v2211_v10 = vsel %vm1971_vm3, %v2018_v7, %v8665_v61  ;;  %v2203_v11 = vsel %vm1971_vm3, %v2002_v56, %v8666_v48 }
 0x244   : > { %v8674_v58 = vpop.permute.xlu1 %8673  ;;  %2402 = vmatprep.mubr.f32.mxu1 %v2211_v10  ;;  %v8669_v6 = vpop.permute.xlu0 %8668 }
 0x245   : > { %v8675_v63 = vunpack.i.l.bf16 %v8674_v58  ;;  %v8671_v12 = vunpack.i.h.bf16 %v8669_v6  ;;  %v8670_v9 = vunpack.i.l.bf16 %v8669_v6  ;;  %2403 = vmatmul.mubr.f32.vlgmr.msra.gmra.mxu1 %v2203_v11  ;;  %v8676_v16 = vunpack.i.h.bf16 %v8674_v58 }
 0x246   : > { %8367 = vmatpush3.msra.mxu1 %v9646_v41  ;;  %v2302_v41 = vld [vmem:[#allocation11 + $0x218] sm:$0xff] }
 0x247   : > { %8368 = vmatprep.subr.mxu1 %v2305_v50  ;;  %v2212_v15 = vsel %vm1971_vm3, %v2042_v39, %v8670_v9  ;;  %v2204_v2 = vsel %vm1971_vm3, %v9658_v60, %v8671_v12  ;;  %v2213_v1 = vsel %vm1971_vm3, %v9719_v51, %v8675_v63  ;;  %v2205_v60 = vsel %vm1971_vm3, %v9671_v22, %v8676_v16 }
 0x248   : > { %v8679_v17 = vpop.permute.xlu1 %8678  ;;  %v8684_v13 = vpop.permute.xlu0 %8683  ;;  %2407 = vmatprep.mubr.f32.mxu1 %v2212_v15  ;;  %8369 = vmatpush3.msra.mxu1 %v2305_v50 }
 0x249   : > { %v8680_v19 = vunpack.i.l.bf16 %v8679_v17  ;;  %2408 = vmatmul.mubr.f32.gmra.mxu1 %v2204_v2  ;;  %8370 = vmatprep.subr.mxu1 %v2304_v14  ;;  %v8681_v23 = vunpack.i.h.bf16 %v8679_v17  ;;  %v8685_v37 = vunpack.i.l.bf16 %v8684_v13  ;;  %v8686_v52 = vunpack.i.h.bf16 %v8684_v13 }
 0x24a   : > { %2412 = vmatprep.mubr.f32.mxu1 %v2213_v1  ;;  %8371 = vmatpush3.msra.mxu1 %v2304_v14 }
 0x24b   : > { %8372 = vmatprep.subr.mxu1 %v2303_v25  ;;  %v2214_v39 = vsel %vm1971_vm3, %v9715_v42, %v8680_v19  ;;  %v2206_v54 = vsel %vm1971_vm3, %v9669_v8, %v8681_v23  ;;  %v2215_v5 = vsel %vm1971_vm3, %v9729_v43, %v8685_v37  ;;  %v2207_v10 = vsel %vm1971_vm3, %v9682_v21, %v8686_v52  ;;  %v3325_v52 = vld [vmem:[#allocation14 + $0xf0] sm:$0xff] }
 0x24c   : > { %v8689_v30 = vpop.permute.xlu1 %8688  ;;  %v8699_v27 = vpop.permute.xlu0 %8698  ;;  %8373 = vmatpush3.msra.mxu1 %v2303_v25 }
 0x24d   : > { %v8701_v38 = vunpack.i.h.bf16 %v8699_v27  ;;  %2413 = vmatmul.mubr.f32.gmra.mxu1 %v2205_v60  ;;  %8374 = vmatprep.subr.mxu1 %v2302_v41  ;;  %v8690_v32 = vunpack.i.l.bf16 %v8689_v30  ;;  %v8691_v56 = vunpack.i.h.bf16 %v8689_v30  ;;  %v8700_v11 = vunpack.i.l.bf16 %v8699_v27 }
 0x24e   : > { %2417 = vmatprep.mubr.f32.mxu1 %v2214_v39  ;;  %8375 = vmatpush3.msra.mxu1 %v2302_v41 }
 0x24f   : > { %v2227_v24 = vsel %vm1971_vm3, %v9671_v22, %v8701_v38  ;;  %8376 = vmatprep.subr.mxu1 %v2301_v3  ;;  %v2208_v14 = vsel %vm1971_vm3, %v9686_v34, %v8691_v56  ;;  %v2217_v17 = vsel %vm1971_vm3, %v9739_v57, %v8700_v11  ;;  %v3355_v56 = vld [vmem:[#allocation14 + $0x1e0] sm:$0xff]  ;;  %v3354_v11 = vld [vmem:[#allocation14 + $0x1d8] sm:$0xff] }
 0x250   : > { %v8694_v28 = vpop.permute.xlu1 %8693  ;;  %v8704_v53 = vpop.permute.xlu0 %8703  ;;  %2507 = vmatprep.mubr.f32.mxu0 %v2227_v24  ;;  %8377 = vmatpush3.msra.mxu1 %v2301_v3 }
 0x251   : > { %v8696_v59 = vunpack.i.h.bf16 %v8694_v28  ;;  %v8706_v44 = vunpack.i.h.bf16 %v8704_v53  ;;  %2418 = vmatmul.mubr.f32.gmra.mxu1 %v2206_v54  ;;  %8378 = vmatprep.subr.mxu1 %v2300_v40  ;;  %v8695_v12 = vunpack.i.l.bf16 %v8694_v28  ;;  %v8705_v15 = vunpack.i.l.bf16 %v8704_v53  ;;  %v3309_v28 = vld [vmem:[#allocation14 + $0x70] sm:$0xff]  ;;  %v3358_v53 = vld [vmem:[#allocation14 + $0x1f8] sm:$0xff] }
 0x252   : > { %2422 = vmatprep.mubr.f32.mxu1 %v2215_v5  ;;  %8379 = vmatpush3.msra.mxu1 %v2300_v40  ;;  %v3342_v54 = vld [vmem:[#allocation14 + $0x178] sm:$0xff] }
 0x253   : > { %v2219_v22 = vsel %vm1971_vm3, %v9663_v62, %v8696_v59  ;;  %v2228_v7 = vsel %vm1971_vm3, %v9669_v8, %v8706_v44  ;;  %8380 = vmatprep.subr.mxu1 %v2299_v4  ;;  %v2216_v62 = vsel %vm1971_vm3, %v9725_v47, %v8690_v32  ;;  %v2209_v1 = vsel %vm1971_vm3, %v9696_v35, %v8695_v12  ;;  %v3341_v32 = vld [vmem:[#allocation14 + $0x170] sm:$0xff]  ;;  %v3307_v59 = vld [vmem:[#allocation14 + $0x60] sm:$0xff]  ;;  %v3356_v44 = vld [vmem:[#allocation14 + $0x1e8] sm:$0xff] }
 0x254   : > { %v8709_v48 = vpop.permute.xlu1 %8708  ;;  %v8714_v61 = vpop.permute.xlu0 %8713  ;;  %2508 = vmatmul.mubr.f32.vlgmr.msra.gmra.mxu0 %v2219_v22  ;;  %8381 = vmatpush3.msra.mxu1 %v2299_v4  ;;  %v2218_v23 = vsel %vm1971_vm3, %v9735_v55, %v8705_v15  ;;  %v3357_v4 = vld [vmem:[#allocation14 + $0x1f0] sm:$0xff]  ;;  %v3322_v5 = vld [vmem:[#allocation14 + $0xd8] sm:$0xff]  ;;  %v3340_v22 = vld [vmem:[#allocation14 + $0x168] sm:$0xff] }
 0x255   : > { %v8711_v58 = vunpack.i.h.bf16 %v8709_v48  ;;  %v8715_v6 = vunpack.i.l.bf16 %v8714_v61  ;;  %2423 = vmatmul.mubr.f32.gmra.mxu1 %v2207_v10  ;;  %2512 = vmatprep.mubr.f32.mxu0 %v2228_v7  ;;  %v8716_v50 = vunpack.i.h.bf16 %v8714_v61  ;;  %v8710_v25 = vunpack.i.l.bf16 %v8709_v48  ;;  %v3306_v7 = vld [vmem:[#allocation14 + $0x58] sm:$0xff]  ;;  %v3321_v48 = vld [vmem:[#allocation14 + $0xd0] sm:$0xff]  ;;  %v3339_v61 = vld [vmem:[#allocation14 + $0x160] sm:$0xff] }
 0x256   : > { %2427 = vmatprep.mubr.f32.mxu1 %v2216_v62  ;;  %7414 = vmatprep.subr.mxu1 %v3358_v53  ;;  %v3305_v10 = vld [vmem:[#allocation14 + $0x50] sm:$0xff]  ;;  %v3304_v62 = vld [vmem:[#allocation14 + $0x48] sm:$0xff]  ;;  %v3303_v12 = vld [vmem:[#allocation14 + $0x40] sm:$0xff] }
 0x257   : > { %v2220_v8 = vsel %vm1971_vm3, %v9667_v18, %v8711_v58  ;;  %v2229_v63 = vsel %vm1971_vm3, %v9682_v21, %v8715_v6  ;;  %v2221_v18 = vsel %vm1971_vm3, %v9678_v26, %v8716_v50  ;;  %v3320_v58 = vld [vmem:[#allocation14 + $0xc8] sm:$0xff]  ;;  %v3338_v6 = vld [vmem:[#allocation14 + $0x158] sm:$0xff]  ;;  %v3353_v50 = vld [vmem:[#allocation14 + $0x1d0] sm:$0xff] }
 0x258   : > { %v8719_v9 = vpop.permute.xlu1 %8718  ;;  %2513 = vmatmul.mubr.f32.gmra.mxu0 %v2220_v8  ;;  %v8724_v16 = vpop.permute.xlu0 %8723  ;;  %v3319_v8 = vld [vmem:[#allocation14 + $0xc0] sm:$0xff]  ;;  %v3336_v15 = vld [vmem:[#allocation14 + $0x148] sm:$0xff] }
 0x259   : > { %v8720_v2 = vunpack.i.l.bf16 %v8719_v9  ;;  %2428 = vmatmul.mubr.f32.gmra.mxu1 %v2208_v14  ;;  %2517 = vmatprep.mubr.f32.mxu0 %v2229_v63  ;;  %v8721_v13 = vunpack.i.h.bf16 %v8719_v9  ;;  %v8725_v19 = vunpack.i.l.bf16 %v8724_v16  ;;  %v8726_v30 = vunpack.i.h.bf16 %v8724_v16  ;;  %v3337_v63 = vld [vmem:[#allocation14 + $0x150] sm:$0xff]  ;;  %v3352_v9 = vld [vmem:[#allocation14 + $0x1c8] sm:$0xff]  ;;  %v3318_v14 = vld [vmem:[#allocation14 + $0xb8] sm:$0xff] }
 0x25a   : > { %2432 = vmatprep.mubr.f32.mxu1 %v2217_v17  ;;  %v3351_v16 = vld [vmem:[#allocation14 + $0x1c0] sm:$0xff]  ;;  %v3317_v17 = vld [vmem:[#allocation14 + $0xb0] sm:$0xff] }
 0x25b   : > { %v2230_v21 = vsel %vm1971_vm3, %v9686_v34, %v8720_v2  ;;  %v2222_v26 = vsel %vm1971_vm3, %v9684_v33, %v8721_v13  ;;  %v2210_v34 = vsel %vm1971_vm3, %v9698_v31, %v8710_v25  ;;  %v2231_v60 = vsel %vm1971_vm3, %v9696_v35, %v8725_v19  ;;  %v3302_v2 = vld [vmem:[#allocation14 + $0x38] sm:$0xff]  ;;  %v3335_v13 = vld [vmem:[#allocation14 + $0x140] sm:$0xff]  ;;  %v3316_v25 = vld [vmem:[#allocation14 + $0xa8] sm:$0xff] }
 0x25c   : > { %2518 = vmatmul.mubr.f32.gmra.mxu0 %v2221_v18  ;;  %v8729_v41 = vpop.permute.xlu1 %8728  ;;  %v8734_v3 = vpop.permute.xlu0 %8733  ;;  %v2223_v38 = vsel %vm1971_vm3, %v9692_v29, %v8726_v30  ;;  %v3301_v18 = vld [vmem:[#allocation14 + $0x30] sm:$0xff]  ;;  %v3334_v19 = vld [vmem:[#allocation14 + $0x138] sm:$0xff] }
 0x25d   : > { %2433 = vmatmul.mubr.f32.gmra.mxu1 %v2209_v1  ;;  %2522 = vmatprep.mubr.f32.mxu0 %v2230_v21  ;;  %v8730_v27 = vunpack.i.l.bf16 %v8729_v41  ;;  %v8731_v37 = vunpack.i.h.bf16 %v8729_v41  ;;  %v8735_v39 = vunpack.i.l.bf16 %v8734_v3  ;;  %v8736_v35 = vunpack.i.h.bf16 %v8734_v3  ;;  %v3350_v21 = vld [vmem:[#allocation14 + $0x1b8] sm:$0xff]  ;;  %v3300_v1 = vld [vmem:[#allocation14 + $0x28] sm:$0xff]  ;;  %v3349_v41 = vld [vmem:[#allocation14 + $0x1b0] sm:$0xff] }
 0x25e   : > { %2437 = vmatprep.mubr.f32.mxu1 %v2218_v23  ;;  %v3315_v23 = vld [vmem:[#allocation14 + $0xa0] sm:$0xff]  ;;  %v3333_v30 = vld [vmem:[#allocation14 + $0x130] sm:$0xff]  ;;  %v3298_v3 = vld [vmem:[#allocation14 + $0x18] sm:$0xff] }
 0x25f   : > { %v2232_v33 = vsel %vm1971_vm3, %v9698_v31, %v8730_v27  ;;  %v2233_v29 = vsel %vm1971_vm3, %v9706_v36, %v8735_v39  ;;  %v2058_v31 = vld [vmem:[#allocation3 + $0x90] sm:$0xff] }
 0x260   : > { %2523 = vmatmul.mubr.f32.gmra.mxu0 %v2222_v26  ;;  %v8739_v40 = vpop.permute.xlu1 %8738  ;;  %v2074_v36 = vld [vmem:[#allocation3 + $0x92] sm:$0xff] }
 0x261   : > { %2438 = vmatmul.mubr.f32.gmra.mxu1 %v2210_v34  ;;  %2527 = vmatprep.mubr.f32.mxu0 %v2231_v60  ;;  %v8740_v24 = vunpack.i.l.bf16 %v8739_v40  ;;  %v3299_v26 = vld [vmem:[#allocation14 + $0x20] sm:$0xff]  ;;  %v3348_v27 = vld [vmem:[#allocation14 + $0x1a8] sm:$0xff]  ;;  %v3314_v34 = vld [vmem:[#allocation14 + $0x98] sm:$0xff] }
 0x262   : > { %8382 = vmatprep.mubr.msk.f32.mxu1 %vm1971_vm3, %v9719_v51  ;;  %v2224_v51 = vsel %vm1971_vm3, %v9704_v20, %v8731_v37  ;;  %v3332_v60 = vld [vmem:[#allocation14 + $0x128] sm:$0xff]  ;;  %v3347_v37 = vld [vmem:[#allocation14 + $0x1a0] sm:$0xff] }
 0x263   : > { %v2234_v20 = vsel %vm1971_vm3, %v2058_v31, %v8740_v24  ;;  %v3331_v39 = vld [vmem:[#allocation14 + $0x120] sm:$0xff]  ;;  %v3296_v24 = vld [vmem:[#allocation14 + $0x8] sm:$0xff] }
 0x264   : > { %2528 = vmatmul.mubr.f32.gmra.mxu0 %v2223_v38  ;;  %v3313_v38 = vld [vmem:[#allocation14 + $0x90] sm:$0xff]  ;;  %v3311_v31 = vld [vmem:[#allocation14 + $0x80] sm:$0xff] }
 0x265   : > { %2532 = vmatprep.mubr.f32.mxu0 %v2232_v33  ;;  %8383 = vmatmul.mubr.msk.f32.vlgmr.msra.gmra.mxu1 %vm1971_vm3, %v9715_v42  ;;  %v8741_v42 = vunpack.i.h.bf16 %v8739_v40  ;;  %v3297_v33 = vld [vmem:[#allocation14 + $0x10] sm:$0xff]  ;;  %v3346_v40 = vld [vmem:[#allocation14 + $0x198] sm:$0xff] }
 0x266   : > { %8385 = vmatprep.mubr.msk.f32.mxu1 %vm1971_vm3, %v9729_v43  ;;  %v2225_v43 = vsel %vm1971_vm3, %v9713_v45, %v8736_v35  ;;  %v3310_v45 = vld [vmem:[#allocation14 + $0x78] sm:$0xff]  ;;  %7415 = vmatpush3.msra.mxu1 %v3342_v54  ;;  %v3312_v35 = vld [vmem:[#allocation14 + $0x88] sm:$0xff] }
 0x267   : > { %7416 = vmatprep.subr.mxu1 %v3357_v4 }
 0x268   : > { %2533 = vmatmul.mubr.f32.gmra.mxu0 %v2224_v51  ;;  %7417 = vmatpush3.msra.mxu1 %v3341_v32  ;;  %v3330_v51 = vld [vmem:[#allocation14 + $0x118] sm:$0xff] }
 0x269   : > { %2537 = vmatprep.mubr.f32.mxu0 %v2233_v29  ;;  %8386 = vmatmul.mubr.msk.f32.gmra.mxu1 %vm1971_vm3, %v9725_v47  ;;  %v2226_v47 = vsel %vm1971_vm3, %v9741_v46, %v8741_v42  ;;  %v3323_v46 = vld [vmem:[#allocation14 + $0xe0] sm:$0xff]  ;;  %v3345_v29 = vld [vmem:[#allocation14 + $0x190] sm:$0xff] }
 0x26a   : > { %8388 = vmatprep.mubr.msk.f32.mxu1 %vm1971_vm3, %v9739_v57  ;;  %v3326_v57 = vld [vmem:[#allocation14 + $0xf8] sm:$0xff]  ;;  %7418 = vmatprep.subr.mxu1 %v3356_v44  ;;  %v3295_v42 = vld [vmem:[#allocation14] sm:$0xff] }
 0x26b   : > { %7367 = vmatprep.subr.mxu0 %v3326_v57  ;;  %7419 = vmatpush3.msra.mxu1 %v3340_v22  ;;  %v3343_v57 = vld [vmem:[#allocation14 + $0x180] sm:$0xff] }
 0x26c   : > { %2538 = vmatmul.mubr.f32.gmra.mxu0 %v2225_v43  ;;  %7420 = vmatprep.subr.mxu1 %v3355_v56  ;;  %v3329_v43 = vld [vmem:[#allocation14 + $0x110] sm:$0xff] }
 0x26d   : > { %2542 = vmatprep.mubr.f32.mxu0 %v2234_v20  ;;  %8389 = vmatmul.mubr.msk.f32.gmra.mxu1 %vm1971_vm3, %v9735_v55  ;;  %v3324_v55 = vld [vmem:[#allocation14 + $0xe8] sm:$0xff] }
 0x26e   : > { %8391 = vmatprep.mubr.msk.f32.mxu1 %vm1971_vm3, %v9747_v49  ;;  %7368 = vmatpush3.msra.mxu0 %v3310_v45  ;;  %v3308_v49 = vld [vmem:[#allocation14 + $0x68] sm:$0xff]  ;;  %v3327_v45 = vld [vmem:[#allocation14 + $0x100] sm:$0xff] }
 0x26f   : > { %7369 = vmatprep.subr.mxu0 %v3325_v52  ;;  %7421 = vmatpush3.msra.mxu1 %v3339_v61  ;;  %v3344_v20 = vld [vmem:[#allocation14 + $0x188] sm:$0xff]  ;;  %v3422_v52 = vld [vmem:[#allocation14 + $0x3f8] sm:$0xff] }
 0x270   : > { %2543 = vmatmul.mubr.f32.gmra.mxu0 %v2226_v47  ;;  %7422 = vmatprep.subr.mxu1 %v3354_v11  ;;  %v3328_v47 = vld [vmem:[#allocation14 + $0x108] sm:$0xff] }
 0x271   : > { %8392 = vmatmul.mubr.msk.f32.gmra.mxu1 %vm1971_vm3, %v2074_v36  ;;  %7370 = vmatpush3.msra.mxu0 %v3309_v28  ;;  %v3390_v36 = vld [vmem:[#allocation14 + $0x2f8] sm:$0xff] }
 0x272   : > { %7371 = vmatprep.subr.mxu0 %v3324_v55  ;;  %7423 = vmatpush3.msra.mxu1 %v3338_v6 }
 0x273   : > { %7372 = vmatpush3.msra.mxu0 %v3308_v49  ;;  %7424 = vmatprep.subr.mxu1 %v3353_v50 }
 0x274   : > { %7373 = vmatprep.subr.mxu0 %v3323_v46  ;;  %7425 = vmatpush3.msra.mxu1 %v3337_v63 }
 0x275   : > { %7374 = vmatpush3.msra.mxu0 %v3307_v59  ;;  %7426 = vmatprep.subr.mxu1 %v3352_v9 }
 0x276   : > { %7375 = vmatprep.subr.mxu0 %v3322_v5  ;;  %7427 = vmatpush3.msra.mxu1 %v3336_v15 }
 0x277   : > { %7376 = vmatpush3.msra.mxu0 %v3306_v7  ;;  %7428 = vmatprep.subr.mxu1 %v3351_v16 }
 0x278   : > { %7377 = vmatprep.subr.mxu0 %v3321_v48  ;;  %7429 = vmatpush3.msra.mxu1 %v3335_v13 }
 0x279   : > { %7378 = vmatpush3.msra.mxu0 %v3305_v10  ;;  %7430 = vmatprep.subr.mxu1 %v3350_v21 }
 0x27a   : > { %7379 = vmatprep.subr.mxu0 %v3320_v58  ;;  %7431 = vmatpush3.msra.mxu1 %v3334_v19 }
 0x27b   : > { %7380 = vmatpush3.msra.mxu0 %v3304_v62  ;;  %7432 = vmatprep.subr.mxu1 %v3349_v41 }
 0x27c   : > { %7381 = vmatprep.subr.mxu0 %v3319_v8  ;;  %7433 = vmatpush3.msra.mxu1 %v3333_v30 }
 0x27d   : > { %7382 = vmatpush3.msra.mxu0 %v3303_v12  ;;  %7434 = vmatprep.subr.mxu1 %v3348_v27  ;;  %v9829_v12 = vld [vmem:[#allocation12] ss:$0 sm:$0xff] }
 0x27e   : > { %7383 = vmatprep.subr.mxu0 %v3318_v14  ;;  %7435 = vmatpush3.msra.mxu1 %v3332_v60 }
 0x27f   : > { %7384 = vmatpush3.msra.mxu0 %v3302_v2  ;;  %7436 = vmatprep.subr.mxu1 %v3347_v37 }
 0x280   : > { %7385 = vmatprep.subr.mxu0 %v3317_v17  ;;  %7437 = vmatpush3.msra.mxu1 %v3331_v39 }
 0x281   : > { %7386 = vmatpush3.msra.mxu0 %v3301_v18  ;;  %7438 = vmatprep.subr.mxu1 %v3346_v40 }
 0x282   : > { %7387 = vmatprep.subr.mxu0 %v3316_v25  ;;  %7439 = vmatpush3.msra.mxu1 %v3330_v51  ;;  %v9130_v51 = vmov 1983009808  }
 0x283   : > { %7388 = vmatpush3.msra.mxu0 %v3300_v1  ;;  %7440 = vmatprep.subr.mxu1 %v3345_v29  ;;  %v2786_v29 = vlaneseq }
 0x284   : > { %7389 = vmatprep.subr.mxu0 %v3315_v23  ;;  %7441 = vmatpush3.msra.mxu1 %v3329_v43 }
 0x285   : > { %7390 = vmatpush3.msra.mxu0 %v3299_v26  ;;  %7442 = vmatprep.subr.mxu1 %v3344_v20  ;;  %vm10132_vm6 = vcmp.lt.s32.totalorder %v2786_v29, 128 }
 0x286   : > { %7391 = vmatprep.subr.mxu0 %v3314_v34  ;;  %7443 = vmatpush3.msra.mxu1 %v3328_v47 }
 0x287   : > { %7392 = vmatpush3.msra.mxu0 %v3298_v3  ;;  %7444 = vmatprep.subr.mxu1 %v3343_v57 }
 0x288   : > { %7393 = vmatprep.subr.mxu0 %v3313_v38  ;;  %7445 = vmatpush3.msra.mxu1 %v3327_v45 }
 0x289   : > { %7394 = vmatpush3.msra.mxu0 %v3297_v33  ;;  %7508 = vmatprep.subr.mxu1 %v3422_v52 }
 0x28a   : > { %7395 = vmatprep.subr.mxu0 %v3312_v35 }
 0x28b   : > { %7396 = vmatpush3.msra.mxu0 %v3296_v24  ;;  %v2784_v24 = vunpack.c.l.s4 %v9130_v51 }
 0x28c   : > { %7397 = vmatprep.subr.mxu0 %v3311_v31 }
 0x28d   : > { %7398 = vmatpush3.msra.mxu0 %v3295_v42 }
 0x28e   : > { %7461 = vmatprep.subr.mxu0 %v3390_v36 }
 0x305   : > { %v7271_v28 = vpop.f32.mrf.mxu1 }
 0x307   : > { %v7272_v53 = vpop.f32.mrf.mxu1 }
 0x308   : > { %v7273_v50 = vadd.f32 %v7272_v53, %v7271_v28 }
 0x309   : > { %v7274_v55 = vpop.f32.mrf.mxu1 }
 0x30a   : > { %v2405_v18 = vadd.f32 %v7273_v50, %v9829_v12 }
 0x30b   : > { %v7275_v54 = vpop.f32.mrf.mxu1 }
 0x30c   : > { %v7276_v58 = vadd.f32 %v7275_v54, %v7274_v55 }
 0x30d   : > { %v7277_v49 = vpop.f32.mrf.mxu1 }
 0x30e   : > { %v2410_v14 = vadd.f32 %v7276_v58, %v9829_v12 }
 0x30f   : > { %v7278_v4 = vpop.f32.mrf.mxu1 }
 0x310   : > { %v7279_v17 = vadd.f32 %v7278_v4, %v7277_v49 }
 0x311   : > { %v7280_v46 = vpop.f32.mrf.mxu1 }
 0x312   : > { %v2415_v34 = vadd.f32 %v7279_v17, %v9829_v12 }
 0x313   : > { %v7281_v32 = vpop.f32.mrf.mxu1 }
 0x314   : > { %v7327_v59 = vpop.f32.mrf.mxu0  ;;  %v7282_v15 = vadd.f32 %v7281_v32, %v7280_v46  ;;  %v2785_v46 = vunpack.c.0.s8 %v2784_v24  ;;  %v9838_v32 = vshrl.u32 %v2786_v29, 7 }
 0x315   : > { %v7283_v44 = vpop.f32.mrf.mxu1 }
 0x316   : > { %v7328_v5 = vpop.f32.mrf.mxu0  ;;  %v2420_v41 = vadd.f32 %v7282_v15, %v9829_v12 }
 0x317   : > { %v7284_v22 = vpop.f32.mrf.mxu1  ;;  %v7329_v2 = vadd.f32 %v7328_v5, %v7327_v59 }
 0x318   : > { %v7330_v7 = vpop.f32.mrf.mxu0  ;;  %v7285_v37 = vadd.f32 %v7284_v22, %v7283_v44 }
 0x319   : > { %v7286_v56 = vpop.f32.mrf.mxu1  ;;  %v2510_v27 = vadd.f32 %v7329_v2, %v2405_v18 }
 0x31a   : > { %v7331_v48 = vpop.f32.mrf.mxu0  ;;  %v2425_v28 = vadd.f32 %v7285_v37, %v9829_v12 }
 0x31b   : > { %v7287_v61 = vpop.f32.mrf.mxu1  ;;  %v7332_v8 = vadd.f32 %v7331_v48, %v7330_v7 }
 0x31c   : > { %v7333_v10 = vpop.f32.mrf.mxu0  ;;  %v7288_v60 = vadd.f32 %v7287_v61, %v7286_v56 }
 0x31d   : > { %v7289_v11 = vpop.f32.mrf.mxu1  ;;  %v2515_v19 = vadd.f32 %v7332_v8, %v2410_v14 }
 0x31e   : > { %v7334_v6 = vpop.f32.mrf.mxu0  ;;  %v2430_v47 = vadd.f32 %v7288_v60, %v9829_v12 }
 0x31f   : > { %v7290_v62 = vpop.f32.mrf.mxu1  ;;  %v7335_v23 = vadd.f32 %v7334_v6, %v7333_v10 }
 0x320   : > { %v7336_v63 = vpop.f32.mrf.mxu0  ;;  %v7291_v57 = vadd.f32 %v7290_v62, %v7289_v11 }
 0x321   : > { %v7292_v9 = vpop.f32.mrf.mxu1  ;;  %v2520_v36 = vadd.f32 %v7335_v23, %v2415_v34 }
 0x322   : > { %v7337_v16 = vpop.f32.mrf.mxu0  ;;  %v2435_v22 = vadd.f32 %v7291_v57, %v9829_v12 }
 0x323   : > { %v7293_v13 = vpop.f32.mrf.mxu1  ;;  %v7338_v21 = vadd.f32 %v7337_v16, %v7336_v63  ;;  %v9842_v63 = vsub.s32 %v2785_v46, %v9838_v32 }
 0x324   : > { %v7339_v25 = vpop.f32.mrf.mxu0  ;;  %v7294_v7 = vadd.f32 %v7293_v13, %v7292_v9 }
 0x325   : > { %v8384_v1 = vpop.f32.mrf.mxu1  ;;  %v2525_v40 = vadd.f32 %v7338_v21, %v2420_v41 }
 0x326   : > { %v2620_v30 = vadd.f32 %v8384_v1, %v2515_v19  ;;  %v7340_v26 = vpop.f32.mrf.mxu0  ;;  %v2440_v16 = vadd.f32 %v7294_v7, %v9829_v12 }
 0x327   : > { %v2614_v3 = vpop.f32.mrf.mxu1  ;;  %v7341_v31 = vadd.f32 %v7340_v26, %v7339_v25 }
 0x328   : > { %v2654_v38 = vmax.f32 %v2620_v30, 0.0  ;;  %v2615_v39 = vadd.f32 %v2614_v3, %v2510_v27  ;;  %v7342_v33 = vpop.f32.mrf.mxu0 }
 0x329   : > { %v8387_v35 = vpop.f32.mrf.mxu1  ;;  %v2530_v5 = vadd.f32 %v7341_v31, %v2425_v28 }
 0x32a   : > { %2662 = vst [vmem:[#allocation4 + $0x8] sm:$0xff] %v2654_v38  ;;  %v2653_v42 = vmax.f32 %v2615_v39, 0.0  ;;  %v2630_v43 = vadd.f32 %v8387_v35, %v2525_v40  ;;  %v7343_v20 = vpop.f32.mrf.mxu0 }
 0x32b   : > { %v7344_v45 = vadd.f32 %v7343_v20, %v7342_v33  ;;  %v2624_v52 = vpop.f32.mrf.mxu1 }
 0x32c   : > { %2661 = vst [vmem:[#allocation4] sm:$0xff] %v2653_v42  ;;  %v2656_v53 = vmax.f32 %v2630_v43, 0.0  ;;  %v2625_v55 = vadd.f32 %v2624_v52, %v2520_v36  ;;  %v7345_v54 = vpop.f32.mrf.mxu0 }
 0x32d   : > { %v2535_v49 = vadd.f32 %v7344_v45, %v2430_v47  ;;  %v8390_v4 = vpop.f32.mrf.mxu1 }
 0x32e   : > { %2664 = vst [vmem:[#allocation4 + $0x18] sm:$0xff] %v2656_v53  ;;  %v2655_v59 = vmax.f32 %v2625_v55, 0.0  ;;  %v7346_v44 = vpop.f32.mrf.mxu0 }
 0x32f   : > { %v2640_v56 = vadd.f32 %v8390_v4, %v2535_v49  ;;  %v7347_v48 = vadd.f32 %v7346_v44, %v7345_v54  ;;  %v2634_v61 = vpop.f32.mrf.mxu1 }
 0x330   : > { %2663 = vst [vmem:[#allocation4 + $0x10] sm:$0xff] %v2655_v59  ;;  %v2635_v10 = vadd.f32 %v2634_v61, %v2530_v5  ;;  %v7348_v11 = vpop.f32.mrf.mxu0 }
 0x331   : > { %v2658_v58 = vmax.f32 %v2640_v56, 0.0  ;;  %v8393_v6 = vpop.f32.mrf.mxu1  ;;  %v2540_v62 = vadd.f32 %v7347_v48, %v2435_v22  ;;  %v2670_v50 = vld [vmem:[#allocation4 + $0x8] sm:$0x3f] }
 0x332   : > { %v2676_v8 = vld [vmem:[#allocation4 + $0x9] sm:$0x3f]  ;;  %v2657_v14 = vmax.f32 %v2635_v10, 0.0  ;;  %v7349_v15 = vpop.f32.mrf.mxu0 }
 0x333   : > { %v2865_v2 = vcombine.low %v2670_v50, %v2676_v8  ;;  %2666 = vst [vmem:[#allocation4 + $0x28] sm:$0xff] %v2658_v58  ;;  %v7350_v9 = vadd.f32 %v7349_v15, %v7348_v11  ;;  %v2644_v17 = vpop.f32.mrf.mxu1  ;;  %v2669_v13 = vld [vmem:[#allocation4] sm:$0x3f]  ;;  %v2866_v21 = vcombine.high %v2670_v50, %v2676_v8  ;;  %v8744_v23 = vld [vmem:[#allocation4 + $0x6] ss:$6 sps:$4 sm:$0x33]  }
 0x334   : > { %v2675_v18 = vld [vmem:[#allocation4 + $0x1] sm:$0x3f]  ;;  %2665 = vst [vmem:[#allocation4 + $0x20] sm:$0xff] %v2657_v14  ;;  %v2645_v25 = vadd.f32 %v2644_v17, %v2540_v62  ;;  %v2810_v31 = vrot.slane %v8744_v23, %v9842_v63 }
 0x335   : > { %v2779_v19 = vcombine.low %v2669_v13, %v2675_v18  ;;  %v2780_v1 = vcombine.high %v2669_v13, %v2675_v18  ;;  %v8742_v41 = vld [vmem:[#allocation4 + $0x2] ss:$6 sps:$4 sm:$0xff]   ;;  %v2545_v30 = vadd.f32 %v7350_v9, %v2440_v16  ;;  %v2875_v26 = vrot.slane %v2865_v2, %v9842_v63  ;;  %v2672_v27 = vld [vmem:[#allocation4 + $0x18] sm:$0x3f] }
 0x336   : > { %v2678_v34 = vld [vmem:[#allocation4 + $0x19] sm:$0x3f]  ;;  %v2659_v60 = vmax.f32 %v2645_v25, 0.0  ;;  %v2803_v37 = vrot.slane %v8742_v41, %v9842_v63  ;;  %v2882_v40 = vrot.slane %v2866_v21, %v9842_v63  ;;  %v3374_v10 = vld [vmem:[#allocation14 + $0x278] sm:$0xff] }
 0x337   : > { %v2789_v12 = vrot.slane %v2779_v19, %v9842_v63  ;;  %v2796_v3 = vrot.slane %v2780_v1, %v9842_v63  ;;  %v2650_v38 = vadd.f32 %v8393_v6, %v2545_v30  ;;  %v8745_v39 = vld [vmem:[#allocation4 + $0xa] ss:$6 sps:$4 sm:$0xff]   ;;  %v3037_v35 = vcombine.low %v2672_v27, %v2678_v34  ;;  %v8747_v45 = vld [vmem:[#allocation4 + $0xe] ss:$6 sps:$4 sm:$0x33]   ;;  %v3389_v50 = vld [vmem:[#allocation14 + $0x2f0] sm:$0xff] }
 0x338   : > { %v2671_v33 = vld [vmem:[#allocation4 + $0x10] sm:$0x3f]  ;;  %2667 = vst [vmem:[#allocation4 + $0x30] sm:$0xff] %v2659_v60  ;;  %v3038_v20 = vcombine.high %v2672_v27, %v2678_v34  ;;  %v2889_v47 = vrot.slane %v8745_v39, %v9842_v63  ;;  %v3463_v53 = vrot.slane %v2803_v37, %v9842_v63  ;;  %v8752_v49 = vld [vmem:[#allocation4 + $0x16] ss:$6 sps:$4 sm:$0x33]   ;;  %v2896_v44 = vrot.slane %v8747_v45, %v9842_v63 }
 0x339   : > { %v7130_v51 = vcombine.low %v2796_v3, %v2875_v26  ;;  %v3456_v24 = vrot.slane %v2789_v12, %v9842_v63  ;;  %v2677_v42 = vld [vmem:[#allocation4 + $0x11] sm:$0x3f]  ;;  %v2660_v36 = vmax.f32 %v2650_v38, 0.0  ;;  %v3047_v54 = vrot.slane %v3037_v35, %v9842_v63  ;;  %v3373_v16 = vld [vmem:[#allocation14 + $0x270] sm:$0xff]  ;;  %v3406_v25 = vld [vmem:[#allocation14 + $0x378] sm:$0xff] }
 0x33a   : > { %v8748_v43 = vld [vmem:[#allocation4 + $0x12] ss:$6 sps:$4 sm:$0xff]   ;;  %v2951_v57 = vcombine.low %v2671_v33, %v2677_v42  ;;  %v2952_v52 = vcombine.high %v2671_v33, %v2677_v42  ;;  %v7131_v4 = vcombine.low %v2810_v31, %v2889_v47  ;;  %v2898_v46 = vcombine.high %v2875_v26, %v2889_v47  ;;  %v9874_v33 = vld [vmem:[#allocation4 + $0x28] sm:$0x3f] }
 0x33b   : > { %v3470_v28 = vrot.slane %v7130_v51, %v9842_v63  ;;  %v2975_v55 = vrot.slane %v8748_v43, %v9842_v63  ;;  %2668 = vst [vmem:[#allocation4 + $0x38] sm:$0xff] %v2660_v36  ;;  %v8750_v5 = vld [vmem:[#allocation4 + $0x1a] ss:$6 sps:$4 sm:$0xff]   ;;  %v3054_v48 = vrot.slane %v3038_v20, %v9842_v63  ;;  %v8753_v61 = vld [vmem:[#allocation4 + $0x1e] ss:$6 sps:$4 sm:$0x33]   ;;  %v2899_v62 = vcombine.low %v2882_v40, %v2896_v44 }
 0x33c   : > { %v2961_v59 = vrot.slane %v2951_v57, %v9842_v63  ;;  %v2968_v56 = vrot.slane %v2952_v52, %v9842_v63  ;;  %v3477_v11 = vrot.slane %v7131_v4, %v9842_v63  ;;  %v7134_v58 = vcombine.low %v2898_v46, %v2882_v40  ;;  %v3388_v13 = vld [vmem:[#allocation14 + $0x2e8] sm:$0xff]  ;;  %v2673_v30 = vld [vmem:[#allocation4 + $0x20] sm:$0x3f]  ;;  %v3387_v12 = vld [vmem:[#allocation14 + $0x2e0] sm:$0xff] }
 0x33d   : > { %v3478_v22 = vcombine.low %v3456_v24, %v3470_v28  ;;  %v3479_v7 = vcombine.high %v3456_v24, %v3470_v28  ;;  %v3061_v8 = vrot.slane %v8750_v5, %v9842_v63  ;;  %v2982_v15 = vrot.slane %v8752_v49, %v9842_v63  ;;  %v2679_v26 = vld [vmem:[#allocation4 + $0x21] sm:$0x3f]  ;;  %v3372_v27 = vld [vmem:[#allocation14 + $0x268] sm:$0xff]  ;;  %v9876_v40 = vld [vmem:[#allocation4 + $0x29] sm:$0x3f] }
 0x33e   : > { %v3559_v6 = vrot.slane %v2961_v59, %v9842_v63  ;;  %v7138_v14 = vcombine.low %v2968_v56, %v3047_v54  ;;  %v3068_v2 = vrot.slane %v8753_v61, %v9842_v63  ;;  %v3480_v9 = vcombine.low %v3463_v53, %v3477_v11  ;;  %v9878_v35 = vld [vmem:[#allocation4 + $0x22] ss:$6 sps:$4 sm:$0xff]   ;;  %v3371_v31 = vld [vmem:[#allocation14 + $0x260] sm:$0xff] }
 0x33f   : > { %3955 = vmatprep.mubr.f32.mxu0 %v3479_v7  ;;  %v3481_v17 = vcombine.high %v3463_v53, %v3477_v11  ;;  %v3545_v18 = vrot.slane %v7134_v58, %v9842_v63  ;;  %v7135_v21 = vcombine.high %v2889_v47, %v2899_v62  ;;  %v9868_v19 = vrot.slane %v2975_v55, %v9842_v63  ;;  %v3421_v24 = vld [vmem:[#allocation14 + $0x3f0] sm:$0xff]  ;;  %v8756_v45 = vld [vmem:[#allocation4 + $0x26] ss:$6 sps:$4 sm:$0x33]   ;;  %v3420_v53 = vld [vmem:[#allocation14 + $0x3e8] sm:$0xff] }
 0x340   : > { %3956 = vmatmul.mubr.f32.vlgmr.msra.gmra.mxu0 %v3478_v22  ;;  %v3070_v1 = vcombine.high %v3047_v54, %v3061_v8  ;;  %v3071_v41 = vcombine.low %v3054_v48, %v3068_v2  ;;  %v7139_v23 = vcombine.low %v2982_v15, %v3061_v8  ;;  %v9872_v3 = vrot.slane %v7138_v14, %v9842_v63  ;;  %v3405_v20 = vld [vmem:[#allocation14 + $0x370] sm:$0xff]  ;;  %v8757_v52 = vld [vmem:[#allocation4 + $0x2a] ss:$6 sps:$4 sm:$0xff]   ;;  %v8759_v5 = vld [vmem:[#allocation4 + $0x2e] ss:$6 sps:$4 sm:$0x33]  }
 0x341   : > { %7462 = vmatpush3.msra.mxu0 %v3374_v10  ;;  %4045 = vmatprep.mubr.f32.mxu1 %v3481_v17  ;;  %v3568_v34 = vcombine.high %v3545_v18, %v3559_v6  ;;  %v3552_v60 = vrot.slane %v7135_v21, %v9842_v63  ;;  %v3567_v37 = vcombine.low %v3545_v18, %v3559_v6  ;;  %v3386_v28 = vld [vmem:[#allocation14 + $0x2d8] sm:$0xff]  ;;  %v3404_v22 = vld [vmem:[#allocation14 + $0x368] sm:$0xff]  ;;  %v3385_v61 = vld [vmem:[#allocation14 + $0x2d0] sm:$0xff] }
 0x342   : > { %7463 = vmatprep.subr.mxu0 %v3389_v50  ;;  %4046 = vmatmul.mubr.f32.vlgmr.msra.gmra.mxu1 %v3480_v9  ;;  %v7140_v38 = vcombine.low %v3070_v1, %v3054_v48  ;;  %v7141_v39 = vcombine.high %v3061_v8, %v3071_v41  ;;  %v9882_v42 = vrot.slane %v7139_v23, %v9842_v63  ;;  %v3370_v4 = vld [vmem:[#allocation14 + $0x258] sm:$0xff]  ;;  %v3419_v10 = vld [vmem:[#allocation14 + $0x3e0] sm:$0xff]  ;;  %v3369_v9 = vld [vmem:[#allocation14 + $0x250] sm:$0xff] }
 0x343   : > { %7464 = vmatpush3.msra.mxu0 %v3373_v16  ;;  %7509 = vmatpush3.msra.mxu1 %v3406_v25  ;;  %v3570_v51 = vcombine.high %v3552_v60, %v9868_v19  ;;  %v3123_v43 = vcombine.low %v2673_v30, %v2679_v26  ;;  %v3124_v57 = vcombine.high %v2673_v30, %v2679_v26  ;;  %v2694_v62 = vld [vmem:[#allocation4 + $0x9] sm:$0x3f]  ;;  %v9911_v15 = vld [vmem:[#allocation4 + $0x11] sm:$0x3f] }
 0x344   : > { %7465 = vmatprep.subr.mxu0 %v3388_v13  ;;  %3960 = vmatprep.mubr.f32.mxu0 %v3568_v34  ;;  %v3648_v36 = vrot.slane %v7140_v38, %v9842_v63  ;;  %v9886_v47 = vrot.slane %v7141_v39, %v9842_v63  ;;  %v3569_v55 = vcombine.low %v3552_v60, %v9868_v19  ;;  %v2700_v2 = vld [vmem:[#allocation4 + $0xa] sm:$0x3f]  ;;  %v9913_v16 = vld [vmem:[#allocation4 + $0x12] sm:$0x3f] }
 0x345   : > { %7466 = vmatpush3.msra.mxu0 %v3372_v27  ;;  %4050 = vmatprep.mubr.f32.mxu1 %v3570_v51  ;;  %v3133_v54 = vrot.slane %v3123_v43, %v9842_v63  ;;  %v3209_v49 = vcombine.low %v9874_v33, %v9876_v40  ;;  %v3147_v44 = vrot.slane %v9878_v35, %v9842_v63  ;;  %v3403_v17 = vld [vmem:[#allocation14 + $0x360] sm:$0xff]  ;;  %v3384_v19 = vld [vmem:[#allocation14 + $0x2c8] sm:$0xff]  ;;  %v3418_v1 = vld [vmem:[#allocation14 + $0x3d8] sm:$0xff] }
 0x346   : > { %7467 = vmatprep.subr.mxu0 %v3387_v12  ;;  %7510 = vmatprep.subr.mxu1 %v3421_v24  ;;  %v3657_v46 = vcombine.high %v9872_v3, %v3648_v36  ;;  %v3659_v59 = vcombine.high %v9882_v42, %v9886_v47  ;;  %v3656_v7 = vcombine.low %v9872_v3, %v3648_v36  ;;  %v3368_v30 = vld [vmem:[#allocation14 + $0x248] sm:$0xff]  ;;  %v3402_v12 = vld [vmem:[#allocation14 + $0x358] sm:$0xff]  ;;  %v3417_v24 = vld [vmem:[#allocation14 + $0x3d0] sm:$0xff] }
 0x347   : > { %3961 = vmatmul.mubr.f32.gmra.mxu0 %v3567_v37  ;;  %7511 = vmatpush3.msra.mxu1 %v3405_v20  ;;  %v3140_v56 = vrot.slane %v3124_v57, %v9842_v63  ;;  %v3219_v48 = vrot.slane %v3209_v49, %v9842_v63  ;;  %v9901_v11 = vrot.slane %v3133_v54, %v9842_v63  ;;  %v2707_v38 = vld [vmem:[#allocation4 + $0x10] sm:$0x3f]  ;;  %v3401_v20 = vld [vmem:[#allocation14 + $0x350] sm:$0xff] }
 0x348   : > { %7468 = vmatpush3.msra.mxu0 %v3371_v31  ;;  %7512 = vmatprep.subr.mxu1 %v3420_v53  ;;  %v3154_v58 = vrot.slane %v8756_v45, %v9842_v63  ;;  %v9905_v6 = vrot.slane %v8757_v52, %v9842_v63  ;;  %v3658_v8 = vcombine.low %v9882_v42, %v9886_v47  ;;  %v2713_v39 = vld [vmem:[#allocation4 + $0x11] sm:$0x3f]  ;;  %v9932_v57 = vld [vmem:[#allocation4 + $0x18] sm:$0x3f] }
 0x349   : > { %7469 = vmatprep.subr.mxu0 %v3386_v28  ;;  %4051 = vmatmul.mubr.f32.gmra.mxu1 %v3569_v55  ;;  %v7146_v50 = vcombine.low %v3140_v56, %v3219_v48  ;;  %v3210_v14 = vcombine.high %v9874_v33, %v9876_v40  ;;  %v3240_v21 = vrot.slane %v8759_v5, %v9842_v63  ;;  %v3383_v33 = vld [vmem:[#allocation14 + $0x2c0] sm:$0xff]  ;;  %v9934_v45 = vld [vmem:[#allocation4 + $0x19] sm:$0x3f]  ;;  %v3382_v28 = vld [vmem:[#allocation14 + $0x2b8] sm:$0xff] }
 0x34a   : > { %7470 = vmatpush3.msra.mxu0 %v3370_v4  ;;  %7513 = vmatpush3.msra.mxu1 %v3404_v22  ;;  %v7147_v13 = vcombine.low %v3154_v58, %v9905_v6  ;;  %v3242_v18 = vcombine.high %v3219_v48, %v9905_v6  ;;  %v3730_v41 = vrot.slane %v3147_v44, %v9842_v63  ;;  %v3367_v31 = vld [vmem:[#allocation14 + $0x240] sm:$0xff]  ;;  %v3416_v49 = vld [vmem:[#allocation14 + $0x3c8] sm:$0xff]  ;;  %v3366_v44 = vld [vmem:[#allocation14 + $0x238] sm:$0xff] }
 0x34b   : > { %3965 = vmatprep.mubr.f32.mxu0 %v3657_v46  ;;  %4055 = vmatprep.mubr.f32.mxu1 %v3659_v59  ;;  %v3737_v25 = vrot.slane %v7146_v50, %v9842_v63  ;;  %v3226_v23 = vrot.slane %v3210_v14, %v9842_v63  ;;  %v2815_v27 = vcombine.high %v2694_v62, %v2700_v2  ;;  %v3400_v5 = vld [vmem:[#allocation14 + $0x348] sm:$0xff]  ;;  %v3381_v56 = vld [vmem:[#allocation14 + $0x2b0] sm:$0xff] }
 0x34c   : > { %7471 = vmatprep.subr.mxu0 %v3385_v61  ;;  %7514 = vmatprep.subr.mxu1 %v3419_v10  ;;  %v3744_v26 = vrot.slane %v7147_v13, %v9842_v63  ;;  %v2900_v34 = vcombine.low %v9911_v15, %v9913_v16  ;;  %v2814_v37 = vcombine.low %v2694_v62, %v2700_v2  ;;  %v9946_v10 = vld [vmem:[#allocation4 + $0x19] sm:$0x3f]  ;;  %v2703_v14 = vld [vmem:[#allocation4 + $0x22] sm:$0x3f] }
 0x34d   : > { %3966 = vmatmul.mubr.f32.gmra.mxu0 %v3656_v7  ;;  %7515 = vmatpush3.msra.mxu1 %v3403_v17  ;;  %v3746_v60 = vcombine.high %v9901_v11, %v3737_v25  ;;  %v7150_v3 = vcombine.low %v3242_v18, %v3226_v23  ;;  %v3745_v40 = vcombine.low %v9901_v11, %v3737_v25  ;;  %v9948_v11 = vld [vmem:[#allocation4 + $0x1a] sm:$0x3f]  ;;  %v9967_v25 = vld [vmem:[#allocation4 + $0x29] sm:$0x3f] }
 0x34e   : > { %7472 = vmatpush3.msra.mxu0 %v3369_v9  ;;  %7516 = vmatprep.subr.mxu1 %v3418_v1  ;;  %v3243_v35 = vcombine.low %v3226_v23, %v3240_v21  ;;  %v3748_v51 = vcombine.high %v3730_v41, %v3744_v26  ;;  %v2831_v43 = vrot.slane %v2815_v27, %v9842_v63  ;;  %v3365_v2 = vld [vmem:[#allocation14 + $0x230] sm:$0xff]  ;;  %v3399_v9 = vld [vmem:[#allocation14 + $0x340] sm:$0xff]  ;;  %v3380_v13 = vld [vmem:[#allocation14 + $0x2a8] sm:$0xff] }
 0x34f   : > { %7473 = vmatprep.subr.mxu0 %v3384_v19  ;;  %3970 = vmatprep.mubr.f32.mxu0 %v3746_v60  ;;  %v3810_v42 = vrot.slane %v7150_v3, %v9842_v63  ;;  %v9930_v47 = vrot.slane %v2900_v34, %v9842_v63  ;;  %v2816_v52 = vcombine.low %v2707_v38, %v2713_v39  ;;  %v3414_v1 = vld [vmem:[#allocation14 + $0x3b8] sm:$0xff]  ;;  %v3364_v23 = vld [vmem:[#allocation14 + $0x228] sm:$0xff] }
 0x350   : > { %4056 = vmatmul.mubr.f32.gmra.mxu1 %v3658_v8  ;;  %7474 = vmatpush3.msra.mxu0 %v3368_v30  ;;  %v7151_v36 = vcombine.high %v9905_v6, %v3243_v35  ;;  %v2824_v53 = vrot.slane %v2814_v37, %v9842_v63  ;;  %v2817_v55 = vcombine.high %v2707_v38, %v2713_v39  ;;  %v3415_v6 = vld [vmem:[#allocation14 + $0x3c0] sm:$0xff]  ;;  %v9955_v8 = vld [vmem:[#allocation4 + $0x21] sm:$0x3f] }
 0x351   : > { %7517 = vmatpush3.msra.mxu1 %v3402_v12  ;;  %4060 = vmatprep.mubr.f32.mxu1 %v3748_v51  ;;  %v3818_v54 = vcombine.high %v3810_v42, %v3810_v42  ;;  %v7132_v46 = vcombine.low %v2831_v43, %v9930_v47  ;;  %v3747_v59 = vcombine.low %v3730_v41, %v3744_v26  ;;  %v3398_v30 = vld [vmem:[#allocation14 + $0x338] sm:$0xff]  ;;  %v3379_v26 = vld [vmem:[#allocation14 + $0x2a0] sm:$0xff]  ;;  %v3413_v12 = vld [vmem:[#allocation14 + $0x3b0] sm:$0xff] }
 0x352   : > { %7475 = vmatprep.subr.mxu0 %v3383_v33  ;;  %7518 = vmatprep.subr.mxu1 %v3417_v24  ;;  %v3817_v4 = vrot.slane %v7151_v36, %v9842_v63  ;;  %v2845_v22 = vrot.slane %v2817_v55, %v9842_v63  ;;  %v2902_v7 = vcombine.low %v9932_v57, %v9934_v45  ;;  %v9987_v39 = vld [vmem:[#allocation4 + $0x20] sm:$0x3f]  ;;  %v10006_v55 = vld [vmem:[#allocation4 + $0x31] sm:$0x3f] }
 0x353   : > { %3971 = vmatmul.mubr.f32.gmra.mxu0 %v3745_v40  ;;  %7519 = vmatpush3.msra.mxu1 %v3401_v20  ;;  %v9943_v48 = vrot.slane %v7132_v46, %v9842_v63  ;;  %v2838_v61 = vrot.slane %v2816_v52, %v9842_v63  ;;  %v2901_v50 = vcombine.high %v9911_v15, %v9913_v16  ;;  %v9965_v16 = vld [vmem:[#allocation4 + $0x28] sm:$0x3f]  ;;  %v9989_v33 = vld [vmem:[#allocation4 + $0x21] sm:$0x3f]  ;;  %v3412_v20 = vld [vmem:[#allocation14 + $0x3a8] sm:$0xff] }
 0x354   : > { %7476 = vmatpush3.msra.mxu0 %v3367_v31  ;;  %3975 = vmatprep.mubr.f32.mxu0 %v3818_v54  ;;  %v3819_v58 = vcombine.high %v3817_v4, %v3817_v4  ;;  %v9951_v62 = vrot.slane %v2902_v7, %v9842_v63  ;;  %v9958_v17 = vrot.slane %v2824_v53, %v9842_v63  ;;  %v3363_v40 = vld [vmem:[#allocation14 + $0x220] sm:$0xff]  ;;  %v3378_v43 = vld [vmem:[#allocation14 + $0x298] sm:$0xff] }
 0x355   : > { %7477 = vmatprep.subr.mxu0 %v3382_v28  ;;  %7520 = vmatprep.subr.mxu1 %v3416_v49  ;;  %v2986_v15 = vcombine.low %v9946_v10, %v9948_v11  ;;  %v3072_v41 = vcombine.low %v9955_v8, %v2703_v14  ;;  %v9973_v27 = vrot.slane %v2838_v61, %v9842_v63  ;;  %v3362_v28 = vld [vmem:[#allocation14 + $0x218] sm:$0xff]  ;;  %v10008_v54 = vld [vmem:[#allocation4 + $0x32] sm:$0x3f] }
 0x356   : > { %4061 = vmatmul.mubr.f32.gmra.mxu1 %v3747_v59  ;;  %7478 = vmatpush3.msra.mxu0 %v3366_v44  ;;  %v7133_v18 = vcombine.low %v2845_v22, %v9951_v62  ;;  %v2933_v21 = vcombine.high %v9930_v47, %v9951_v62  ;;  %v3515_v19 = vcombine.high %v9958_v17, %v9943_v48  ;;  %v3396_v49 = vld [vmem:[#allocation14 + $0x328] sm:$0xff]  ;;  %v3411_v46 = vld [vmem:[#allocation14 + $0x3a0] sm:$0xff]  ;;  %v3361_v44 = vld [vmem:[#allocation14 + $0x210] sm:$0xff] }
 0x357   : > { %7521 = vmatpush3.msra.mxu1 %v3400_v5  ;;  %4065 = vmatprep.mubr.f32.mxu1 %v3819_v58  ;;  %v9979_v60 = vrot.slane %v2901_v50, %v9842_v63  ;;  %v3073_v3 = vcombine.high %v9955_v8, %v2703_v14  ;;  %v3074_v37 = vcombine.low %v9965_v16, %v9967_v25  ;;  %v2704_v61 = vld [vmem:[#allocation4 + $0x2a] sm:$0x3f] }
 0x358   : > { %7479 = vmatprep.subr.mxu0 %v3381_v56  ;;  %7522 = vmatprep.subr.mxu1 %v3415_v6  ;;  %v9976_v34 = vrot.slane %v7133_v18, %v9842_v63  ;;  %v9985_v38 = vrot.slane %v3072_v41, %v9842_v63  ;;  %v2996_v35 = vrot.slane %v2986_v15, %v9842_v63  ;;  %v2698_v56 = vld [vmem:[#allocation4 + $0x29] sm:$0x3f]  ;;  %v3409_v41 = vld [vmem:[#allocation14 + $0x390] sm:$0xff] }
 0x359   : > { %3976 = vmatmul.mubr.f32.gmra.mxu0 %v3810_v42  ;;  %7523 = vmatpush3.msra.mxu1 %v3399_v9  ;;  %v7136_v51 = vcombine.low %v2933_v21, %v9979_v60  ;;  %v2987_v24 = vcombine.high %v9946_v10, %v9948_v11  ;;  %v3397_v42 = vld [vmem:[#allocation14 + $0x330] sm:$0xff]  ;;  %v9998_v36 = vrot.slane %v3074_v37, %v9842_v63  ;;  %v3395_v10 = vld [vmem:[#allocation14 + $0x320] sm:$0xff]  ;;  %v3376_v11 = vld [vmem:[#allocation14 + $0x288] sm:$0xff] }
 0x35a   : > { %7480 = vmatpush3.msra.mxu0 %v3365_v2  ;;  %4135 = vmatprep.mubr.f32.mxu0 %v3515_v19  ;;  %v3517_v31 = vcombine.high %v9973_v27, %v9976_v34  ;;  %v2903_v47 = vcombine.high %v9932_v57, %v9934_v45  ;;  %v3514_v52 = vcombine.low %v9958_v17, %v9943_v48  ;;  %v3410_v14 = vld [vmem:[#allocation14 + $0x398] sm:$0xff]  ;;  %v3360_v2 = vld [vmem:[#allocation14 + $0x208] sm:$0xff]  ;;  %v3375_v21 = vld [vmem:[#allocation14 + $0x280] sm:$0xff] }
 0x35b   : > { %7481 = vmatprep.subr.mxu0 %v3380_v13  ;;  %7524 = vmatprep.subr.mxu1 %v3414_v1  ;;  %v2988_v53 = vcombine.low %v9987_v39, %v9989_v33  ;;  %v10011_v57 = vrot.slane %v3073_v3, %v9842_v63  ;;  %v3105_v45 = vcombine.high %v9985_v38, %v9998_v36  ;;  %v3394_v18 = vld [vmem:[#allocation14 + $0x318] sm:$0xff]  ;;  %v3437_v48 = vld [vmem:[#allocation14 + $0x470] sm:$0xff] }
 0x35c   : > { %4066 = vmatmul.mubr.f32.gmra.mxu1 %v3817_v4  ;;  %7482 = vmatpush3.msra.mxu0 %v3364_v23  ;;  %v3377_v4 = vld [vmem:[#allocation14 + $0x290] sm:$0xff]  ;;  %v2931_v59 = vrot.slane %v2903_v47, %v9842_v63  ;;  %v10017_v5 = vrot.slane %v7136_v51, %v9842_v63  ;;  %v10020_v22 = vrot.slane %v2996_v35, %v9842_v63  ;;  %v3359_v23 = vld [vmem:[#allocation14 + $0x200] sm:$0xff]  ;;  %v3392_v35 = vld [vmem:[#allocation14 + $0x308] sm:$0xff] }
 0x35d   : > { %7525 = vmatpush3.msra.mxu1 %v3398_v30  ;;  %7483 = vmatprep.subr.mxu0 %v3379_v26  ;;  %v3003_v7 = vrot.slane %v2987_v24, %v9842_v63  ;;  %v7144_v58 = vcombine.low %v3105_v45, %v10011_v57  ;;  %v3244_v50 = vcombine.low %v10006_v55, %v10008_v54  ;;  %v3407_v47 = vld [vmem:[#allocation14 + $0x380] sm:$0xff] }
 0x35e   : > { %7526 = vmatprep.subr.mxu1 %v3413_v12  ;;  %4225 = vmatprep.mubr.f32.mxu1 %v3517_v31  ;;  %v2934_v6 = vcombine.low %v9979_v60, %v2931_v59  ;;  %v3516_v8 = vcombine.low %v9973_v27, %v9976_v34  ;;  %v3010_v13 = vrot.slane %v2988_v53, %v9842_v63  ;;  %v3393_v12 = vld [vmem:[#allocation14 + $0x310] sm:$0xff] }
 0x35f   : > { %7484 = vmatpush3.msra.mxu0 %v3363_v40  ;;  %7527 = vmatpush3.msra.mxu1 %v3397_v42  ;;  %v7142_v9 = vcombine.low %v3003_v7, %v9985_v38  ;;  %v3158_v19 = vcombine.low %v2698_v56, %v2704_v61  ;;  %v3159_v1 = vcombine.high %v2698_v56, %v2704_v61  ;;  %v3408_v38 = vld [vmem:[#allocation14 + $0x388] sm:$0xff] }
 0x360   : > { %7485 = vmatprep.subr.mxu0 %v3378_v43  ;;  %7528 = vmatprep.subr.mxu1 %v3412_v20  ;;  %v7137_v15 = vcombine.high %v9951_v62, %v2934_v6  ;;  %v10033_v30 = vrot.slane %v7144_v58, %v9842_v63  ;;  %v2989_v26 = vcombine.high %v9987_v39, %v9989_v33  ;;  %v2718_v33 = vld [vmem:[#allocation4 + $0x39] sm:$0x3f]  ;;  %v2711_v42 = vld [vmem:[#allocation4 + $0x30] sm:$0x3f]  ;;  %v3438_v20 = vld [vmem:[#allocation14 + $0x478] sm:$0xff] }
 0x361   : > { %7486 = vmatpush3.msra.mxu0 %v3362_v28  ;;  %7529 = vmatpush3.msra.mxu1 %v3396_v49  ;;  %v3075_v60 = vcombine.high %v9965_v16, %v9967_v25  ;;  %v3604_v62 = vcombine.high %v10017_v5, %v10020_v22  ;;  %v3603_v3 = vcombine.low %v10017_v5, %v10020_v22  ;;  %v2712_v25 = vld [vmem:[#allocation4 + $0x38] sm:$0x3f]  ;;  %v2717_v43 = vld [vmem:[#allocation4 + $0x31] sm:$0x3f] }
 0x362   : > { %7487 = vmatprep.subr.mxu0 %v3377_v4  ;;  %7530 = vmatprep.subr.mxu1 %v3411_v46  ;;  %v3254_v37 = vrot.slane %v3244_v50, %v9842_v63  ;;  %v10045_v40 = vrot.slane %v7142_v9, %v9842_v63  ;;  %v3017_v39 = vrot.slane %v2989_v26, %v9842_v63  ;;  %v3391_v4 = vld [vmem:[#allocation14 + $0x300] sm:$0xff] }
 0x363   : > { %7488 = vmatpush3.msra.mxu0 %v3361_v44  ;;  %7531 = vmatpush3.msra.mxu1 %v3395_v10  ;;  %v3103_v16 = vrot.slane %v3075_v60, %v9842_v63  ;;  %v3588_v51 = vrot.slane %v7137_v15, %v9842_v63  ;;  %v3602_v24 = vrot.slane %v3010_v13, %v9842_v63  ;;  %v3435_v50 = vld [vmem:[#allocation14 + $0x460] sm:$0xff]  ;;  %v3434_v13 = vld [vmem:[#allocation14 + $0x458] sm:$0xff] }
 0x364   : > { %7489 = vmatprep.subr.mxu0 %v3376_v11  ;;  %7532 = vmatprep.subr.mxu1 %v3410_v14  ;;  %v3175_v31 = vrot.slane %v3159_v1, %v9842_v63  ;;  %v3693_v28 = vcombine.high %v10045_v40, %v10033_v30  ;;  %v3168_v53 = vrot.slane %v3158_v19, %v9842_v63 }
 0x365   : > { %7490 = vmatpush3.msra.mxu0 %v3360_v2  ;;  %7533 = vmatpush3.msra.mxu1 %v3394_v18  ;;  %v3106_v49 = vcombine.low %v10011_v57, %v3103_v16  ;;  %v3245_v45 = vcombine.high %v10006_v55, %v10008_v54  ;;  %v3246_v59 = vcombine.low %v2712_v25, %v2718_v33 }
 0x366   : > { %7491 = vmatprep.subr.mxu0 %v3375_v21  ;;  %7534 = vmatprep.subr.mxu1 %v3409_v41  ;;  %v7148_v46 = vcombine.low %v3175_v31, %v3254_v37  ;;  %v7143_v17 = vcombine.low %v3017_v39, %v9998_v36  ;;  %v3160_v44 = vcombine.low %v2711_v42, %v2717_v43  ;;  %v3433_v41 = vld [vmem:[#allocation14 + $0x450] sm:$0xff] }
 0x367   : > { %7492 = vmatpush3.msra.mxu0 %v3359_v23  ;;  %7535 = vmatpush3.msra.mxu1 %v3393_v12  ;;  %v3606_v57 = vcombine.high %v3588_v51, %v3602_v24  ;;  %v3268_v5 = vrot.slane %v3246_v59, %v9842_v63  ;;  %v3161_v22 = vcombine.high %v2711_v42, %v2717_v43  ;;  %v3432_v12 = vld [vmem:[#allocation14 + $0x448] sm:$0xff] }
 0x368   : > { %4136 = vmatmul.mubr.f32.vlgmr.msra.gmra.mxu0 %v3514_v52  ;;  %7536 = vmatprep.subr.mxu1 %v3408_v38  ;;  %v7145_v52 = vcombine.high %v9998_v36, %v3106_v49  ;;  %v3605_v7 = vcombine.low %v3588_v51, %v3602_v24  ;;  %v3247_v54 = vcombine.high %v2712_v25, %v2718_v33  ;;  %v3436_v36 = vld [vmem:[#allocation14 + $0x468] sm:$0xff]  ;;  %v3431_v38 = vld [vmem:[#allocation14 + $0x440] sm:$0xff]  ;;  %v3430_v33 = vld [vmem:[#allocation14 + $0x438] sm:$0xff] }
 0x369   : > { %8394 = vmatprep.subr.mxu0 %v9128_v0  ;;  %4140 = vmatprep.mubr.f32.mxu0 %v3604_v62  ;;  %v3261_v56 = vrot.slane %v3245_v45, %v9842_v63  ;;  %v3277_v61 = vcombine.high %v3254_v37, %v3268_v5  ;;  %v3189_v10 = vrot.slane %v3161_v22, %v9842_v63  ;;  %v2719_v62 = vld [vmem:[#allocation4 + $0x12] sm:$0x3f]  ;;  %v3429_v51 = vld [vmem:[#allocation14 + $0x430] sm:$0xff] }
 0x36a   : > { %7537 = vmatpush3.msra.mxu1 %v3392_v35  ;;  %8395 = vmatpush3.msra.mxu0 %v3438_v20  ;;  %v3691_v55 = vrot.slane %v7145_v52, %v9842_v63  ;;  %v3773_v11 = vrot.slane %v7148_v46, %v9842_v63  ;;  %v3677_v58 = vrot.slane %v7143_v17, %v9842_v63  ;;  %v2721_v35 = vld [vmem:[#allocation4 + $0x22] sm:$0x3f]  ;;  %v2720_v24 = vld [vmem:[#allocation4 + $0x1a] sm:$0x3f]  ;;  %v3427_v49 = vld [vmem:[#allocation14 + $0x420] sm:$0xff] }
 0x36b   : > { %7538 = vmatprep.subr.mxu1 %v3407_v47  ;;  %8396 = vmatprep.subr.mxu0 %v9128_v0  ;;  %v3182_v6 = vrot.slane %v3160_v44, %v9842_v63  ;;  %v7152_v27 = vcombine.low %v3277_v61, %v3261_v56  ;;  %v7149_v34 = vcombine.low %v3189_v10, %v3268_v5  ;;  %v3428_v20 = vld [vmem:[#allocation14 + $0x428] sm:$0xff]  ;;  %v3425_v22 = vld [vmem:[#allocation14 + $0x410] sm:$0xff] }
 0x36c   : > { %7539 = vmatpush3.msra.mxu1 %v3391_v4  ;;  %8397 = vmatpush3.msra.mxu0 %v3437_v48  ;;  %v3759_v14 = vrot.slane %v3168_v53, %v9842_v63  ;;  %v3695_v2 = vcombine.high %v3677_v58, %v3691_v55  ;;  %v3692_v9 = vcombine.low %v10045_v40, %v10033_v30  ;;  %v2722_v53 = vld [vmem:[#allocation4 + $0x2a] sm:$0x3f] }
 0x36d   : > { %4226 = vmatmul.mubr.f32.vlgmr.msra.gmra.mxu1 %v3516_v8  ;;  %4141 = vmatmul.mubr.f32.gmra.mxu0 %v3603_v3  ;;  %v3275_v8 = vrot.slane %v3247_v54, %v9842_v63  ;;  %v3780_v18 = vrot.slane %v7149_v34, %v9842_v63  ;;  %v3828_v19 = vrot.slane %v7152_v27, %v9842_v63  ;;  %v3426_v48 = vld [vmem:[#allocation14 + $0x418] sm:$0xff]  ;;  %v3423_v27 = vld [vmem:[#allocation14 + $0x400] sm:$0xff] }
 0x36e   : > { %8398 = vmatprep.subr.mxu0 %v9128_v0  ;;  %4145 = vmatprep.mubr.f32.mxu0 %v3693_v28  ;;  %v3782_v15 = vcombine.high %v3759_v14, %v3773_v11  ;;  %v3766_v1 = vrot.slane %v3182_v6, %v9842_v63  ;;  %v3694_v23 = vcombine.low %v3677_v58, %v3691_v55 }
 0x36f   : > { %4230 = vmatprep.mubr.f32.mxu1 %v3606_v57  ;;  %8399 = vmatpush3.msra.mxu0 %v3436_v36  ;;  %v3278_v21 = vcombine.low %v3261_v56, %v3275_v8  ;;  %v3781_v60 = vcombine.low %v3759_v14, %v3773_v11  ;;  %v3836_v3 = vcombine.high %v3828_v19, %v3828_v19  ;;  %v3424_v56 = vld [vmem:[#allocation14 + $0x408] sm:$0xff] }
 0x370   : > { %8400 = vmatprep.subr.mxu0 %v9128_v0  ;;  %v3784_v30 = vcombine.high %v3766_v1, %v3780_v18  ;;  %v3783_v40 = vcombine.low %v3766_v1, %v3780_v18  ;;  %v2849_v16 = vcombine.high %v2719_v62, %v2719_v62  ;;  %v2856_v25 = vrot.slane %v2719_v62, %v9842_v63 }
 0x371   : > { %4231 = vmatmul.mubr.f32.gmra.mxu1 %v3605_v7  ;;  %8401 = vmatpush3.msra.mxu0 %v3435_v50  ;;  %v7153_v26 = vcombine.high %v3268_v5, %v3278_v21  ;;  %v3028_v43 = vrot.slane %v2721_v35, %v9842_v63  ;;  %v2942_v47 = vrot.slane %v2720_v24, %v9842_v63  ;;  %v2723_v5 = vld [vmem:[#allocation4 + $0x32] sm:$0x3f]  ;;  %v2724_v50 = vld [vmem:[#allocation4 + $0x3a] sm:$0x3f] }
 0x372   : > { %4235 = vmatprep.mubr.f32.mxu1 %v3695_v2  ;;  %4146 = vmatmul.mubr.f32.gmra.mxu0 %v3692_v9  ;;  %v2863_v31 = vrot.slane %v2849_v16, %v9842_v63  ;;  %v2864_v42 = vcombine.high %v2856_v25, %v2856_v25  ;;  %v2935_v28 = vcombine.high %v2720_v24, %v2720_v24  ;;  %v4710_v16 = vld [vmem:[#allocation17 + $0x1f8] sm:$0xff]  ;;  %v4661_v24 = vld [vmem:[#allocation17 + $0x70] sm:$0xff] }
 0x373   : > { %8402 = vmatprep.subr.mxu0 %v9128_v0  ;;  %4150 = vmatprep.mubr.f32.mxu0 %v3782_v15  ;;  %v3835_v37 = vrot.slane %v7153_v26, %v9842_v63  ;;  %v3036_v45 = vcombine.high %v3028_v43, %v3028_v43  ;;  %v3021_v59 = vcombine.high %v2721_v35, %v2721_v35  ;;  %v4677_v35 = vld [vmem:[#allocation17 + $0xf0] sm:$0xff] }
 0x374   : > { %8403 = vmatpush3.msra.mxu0 %v3434_v13  ;;  %v3518_v4 = vcombine.low %v2856_v25, %v2864_v42  ;;  %v3519_v46 = vcombine.low %v2863_v31, %v2942_v47  ;;  %v3107_v17 = vcombine.high %v2722_v53, %v2722_v53  ;;  %v3114_v52 = vrot.slane %v2722_v53, %v9842_v63  ;;  %v4662_v25 = vld [vmem:[#allocation17 + $0x78] sm:$0xff]  ;;  %v4693_v31 = vld [vmem:[#allocation17 + $0x170] sm:$0xff]  ;;  %v4676_v42 = vld [vmem:[#allocation17 + $0xe8] sm:$0xff] }
 0x375   : > { %8404 = vmatprep.subr.mxu0 %v9128_v0  ;;  %4236 = vmatmul.mubr.f32.gmra.mxu1 %v3694_v23  ;;  %v3837_v39 = vcombine.high %v3835_v37, %v3835_v37  ;;  %v2949_v44 = vrot.slane %v2935_v28, %v9842_v63  ;;  %v2950_v57 = vcombine.high %v2942_v47, %v2942_v47  ;;  %v4692_v47 = vld [vmem:[#allocation17 + $0x168] sm:$0xff]  ;;  %v4707_v28 = vld [vmem:[#allocation17 + $0x1e0] sm:$0xff] }
 0x376   : > { %8405 = vmatpush3.msra.mxu0 %v3433_v41  ;;  %4240 = vmatprep.mubr.f32.mxu1 %v3784_v30  ;;  %v3526_v7 = vrot.slane %v3518_v4, %v9842_v63  ;;  %v3533_v55 = vrot.slane %v3519_v46, %v9842_v63  ;;  %v3608_v54 = vcombine.low %v3028_v43, %v3036_v45  ;;  %v4708_v43 = vld [vmem:[#allocation17 + $0x1e8] sm:$0xff]  ;;  %v4659_v53 = vld [vmem:[#allocation17 + $0x60] sm:$0xff]  ;;  %v4674_v4 = vld [vmem:[#allocation17 + $0xd8] sm:$0xff] }
 0x377   : > { %4151 = vmatmul.mubr.f32.gmra.mxu0 %v3781_v60  ;;  %8406 = vmatprep.subr.mxu0 %v9128_v0  ;;  %v3035_v36 = vrot.slane %v3021_v59, %v9842_v63  ;;  %v3121_v61 = vrot.slane %v3107_v17, %v9842_v63  ;;  %v3122_v10 = vcombine.high %v3114_v52, %v3114_v52  ;;  %v4706_v46 = vld [vmem:[#allocation17 + $0x1d8] sm:$0xff]  ;;  %v4705_v17 = vld [vmem:[#allocation17 + $0x1d0] sm:$0xff] }
 0x378   : > { %4155 = vmatprep.mubr.f32.mxu0 %v3836_v3  ;;  %8407 = vmatpush3.msra.mxu0 %v3432_v12  ;;  %v3193_v11 = vcombine.high %v2723_v5, %v2723_v5  ;;  %v3200_v58 = vrot.slane %v2723_v5, %v9842_v63  ;;  %v3607_v6 = vcombine.low %v2950_v57, %v2949_v44  ;;  %v4658_v45 = vld [vmem:[#allocation17 + $0x58] sm:$0xff]  ;;  %v4689_v44 = vld [vmem:[#allocation17 + $0x150] sm:$0xff]  ;;  %v4672_v57 = vld [vmem:[#allocation17 + $0xc8] sm:$0xff] }
 0x379   : > { %8408 = vmatprep.subr.mxu0 %v9128_v0  ;;  %4241 = vmatmul.mubr.f32.gmra.mxu1 %v3783_v40  ;;  %v3534_v34 = vcombine.low %v3526_v7, %v3533_v55  ;;  %v3622_v8 = vrot.slane %v3608_v54, %v9842_v63  ;;  %v3696_v14 = vcombine.low %v3035_v36, %v3114_v52  ;;  %v4690_v59 = vld [vmem:[#allocation17 + $0x158] sm:$0xff]  ;;  %v4657_v52 = vld [vmem:[#allocation17 + $0x50] sm:$0xff]  ;;  %v4704_v5 = vld [vmem:[#allocation17 + $0x1c8] sm:$0xff] }
 0x37a   : > { %8409 = vmatpush3.msra.mxu0 %v3431_v38  ;;  %4245 = vmatprep.mubr.f32.mxu1 %v3837_v39  ;;  %v3697_v2 = vcombine.low %v3122_v10, %v3121_v61  ;;  %v3207_v9 = vrot.slane %v3193_v11, %v9842_v63  ;;  %v3208_v13 = vcombine.high %v3200_v58, %v3200_v58  ;;  %v4678_v39 = vld [vmem:[#allocation17 + $0xf8] sm:$0xff]  ;;  %v4688_v7 = vld [vmem:[#allocation17 + $0x148] sm:$0xff]  ;;  %v4671_v55 = vld [vmem:[#allocation17 + $0xc0] sm:$0xff] }
 0x37b   : > { %4156 = vmatmul.mubr.f32.gmra.mxu0 %v3828_v19  ;;  %8410 = vmatprep.subr.mxu0 %v9128_v0  ;;  %v3286_v18 = vrot.slane %v2724_v50, %v9842_v63  ;;  %v3615_v21 = vrot.slane %v3607_v6, %v9842_v63  ;;  %v3704_v19 = vrot.slane %v3696_v14, %v9842_v63  ;;  %v4703_v54 = vld [vmem:[#allocation17 + $0x1c0] sm:$0xff]  ;;  %v4670_v61 = vld [vmem:[#allocation17 + $0xb8] sm:$0xff]  ;;  %v4669_v6 = vld [vmem:[#allocation17 + $0xb0] sm:$0xff] }
 0x37c   : > { %8411 = vmatpush3.msra.mxu0 %v3430_v33  ;;  %8426 = vmatprep.mubr.msk.f32.mxu0 %vm9131_vm5, %v9128_v0  ;;  %v3711_v1 = vrot.slane %v3697_v2, %v9842_v63  ;;  %v3785_v41 = vcombine.low %v3200_v58, %v3208_v13  ;;  %v3279_v30 = vcombine.high %v2724_v50, %v2724_v50  ;;  %v4694_v33 = vld [vmem:[#allocation17 + $0x178] sm:$0xff]  ;;  %v4655_v36 = vld [vmem:[#allocation17 + $0x40] sm:$0xff]  ;;  %v4701_v50 = vld [vmem:[#allocation17 + $0x1b0] sm:$0xff] }
 0x37d   : > { %8412 = vmatprep.subr.mxu0 %v9128_v0  ;;  %4246 = vmatmul.mubr.f32.gmra.mxu1 %v3835_v37  ;;  %v3623_v15 = vcombine.low %v3615_v21, %v3622_v8  ;;  %v3786_v23 = vcombine.low %v3207_v9, %v3286_v18  ;;  %v3294_v26 = vcombine.high %v3286_v18, %v3286_v18  ;;  %v4702_v10 = vld [vmem:[#allocation17 + $0x1b8] sm:$0xff]  ;;  %v4668_v8 = vld [vmem:[#allocation17 + $0xa8] sm:$0xff]  ;;  %v4667_v13 = vld [vmem:[#allocation17 + $0xa0] sm:$0xff] }
 0x37e   : > { %8413 = vmatpush3.msra.mxu0 %v3429_v51  ;;  %v3712_v60 = vcombine.low %v3704_v19, %v3711_v1  ;;  %v3793_v12 = vrot.slane %v3785_v41, %v9842_v63  ;;  %v3293_v3 = vrot.slane %v3279_v30, %v9842_v63  ;;  %7576 = vmatprep.subr.mxu1 %v4678_v39  ;;  %v4709_v51 = vld [vmem:[#allocation17 + $0x1f0] sm:$0xff]  ;;  %v4654_v11 = vld [vmem:[#allocation17 + $0x38] sm:$0xff]  ;;  %v4700_v14 = vld [vmem:[#allocation17 + $0x1a8] sm:$0xff] }
 0x37f   : > { %8414 = vmatprep.subr.mxu0 %v9128_v0  ;;  %v3800_v62 = vrot.slane %v3786_v23, %v9842_v63  ;;  %7577 = vmatpush3.msra.mxu1 %v4662_v25  ;;  %v4686_v58 = vld [vmem:[#allocation17 + $0x138] sm:$0xff]  ;;  %v4652_v2 = vld [vmem:[#allocation17 + $0x28] sm:$0xff]  ;;  %v4699_v18 = vld [vmem:[#allocation17 + $0x1a0] sm:$0xff] }
 0x380   : > { %8415 = vmatpush3.msra.mxu0 %v3428_v20  ;;  %v3838_v38 = vcombine.low %v3294_v26, %v3293_v3  ;;  %7578 = vmatprep.subr.mxu1 %v4677_v35  ;;  %v4660_v20 = vld [vmem:[#allocation17 + $0x68] sm:$0xff]  ;;  %v4651_v21 = vld [vmem:[#allocation17 + $0x20] sm:$0xff]  ;;  %v4666_v19 = vld [vmem:[#allocation17 + $0x98] sm:$0xff] }
 0x381   : > { %8416 = vmatprep.subr.mxu0 %v9128_v0  ;;  %v3801_v37 = vcombine.low %v3793_v12, %v3800_v62  ;;  %7579 = vmatpush3.msra.mxu1 %v4661_v24  ;;  %v4684_v9 = vld [vmem:[#allocation17 + $0x128] sm:$0xff]  ;;  %v4698_v1 = vld [vmem:[#allocation17 + $0x198] sm:$0xff]  ;;  %v4665_v30 = vld [vmem:[#allocation17 + $0x90] sm:$0xff] }
 0x382   : > { %8417 = vmatpush3.msra.mxu0 %v3427_v49  ;;  %v3845_v40 = vrot.slane %v3838_v38, %v9842_v63  ;;  %v4675_v63 = vld [vmem:[#allocation17 + $0xe0] sm:$0xff]  ;;  %7580 = vmatprep.subr.mxu1 %v4676_v42  ;;  %v4650_v41 = vld [vmem:[#allocation17 + $0x18] sm:$0xff]  ;;  %v4697_v26 = vld [vmem:[#allocation17 + $0x190] sm:$0xff] }
 0x383   : > { %8418 = vmatprep.subr.mxu0 %v9128_v0  ;;  %7581 = vmatpush3.msra.mxu1 %v4660_v20  ;;  %v4691_v49 = vld [vmem:[#allocation17 + $0x160] sm:$0xff]  ;;  %v4682_v23 = vld [vmem:[#allocation17 + $0x118] sm:$0xff]  ;;  %v4681_v12 = vld [vmem:[#allocation17 + $0x110] sm:$0xff] }
 0x384   : > { %8419 = vmatpush3.msra.mxu0 %v3426_v48  ;;  %7582 = vmatprep.subr.mxu1 %v4675_v63  ;;  %v4673_v48 = vld [vmem:[#allocation17 + $0xd0] sm:$0xff]  ;;  %v4664_v62 = vld [vmem:[#allocation17 + $0x88] sm:$0xff]  ;;  %v4695_v39 = vld [vmem:[#allocation17 + $0x180] sm:$0xff] }
 0x385   : > { %8420 = vmatprep.subr.mxu0 %v9128_v0  ;;  %7583 = vmatpush3.msra.mxu1 %v4659_v53  ;;  %v4696_v3 = vld [vmem:[#allocation17 + $0x188] sm:$0xff]  ;;  %v4679_v25 = vld [vmem:[#allocation17 + $0x100] sm:$0xff]  ;;  %v4774_v35 = vld [vmem:[#allocation17 + $0x3f8] sm:$0xff] }
 0x386   : > { %8421 = vmatpush3.msra.mxu0 %v3425_v22  ;;  %7584 = vmatprep.subr.mxu1 %v4674_v4  ;;  %v4656_v22 = vld [vmem:[#allocation17 + $0x48] sm:$0xff] }
 0x387   : > { %8422 = vmatprep.subr.mxu0 %v9128_v0  ;;  %7585 = vmatpush3.msra.mxu1 %v4658_v45  ;;  %v4680_v38 = vld [vmem:[#allocation17 + $0x108] sm:$0xff] }
 0x388   : > { %8423 = vmatpush3.msra.mxu0 %v3424_v56  ;;  %7586 = vmatprep.subr.mxu1 %v4673_v48  ;;  %v4687_v56 = vld [vmem:[#allocation17 + $0x140] sm:$0xff] }
 0x389   : > { %8424 = vmatprep.subr.mxu0 %v9128_v0  ;;  %7587 = vmatpush3.msra.mxu1 %v4657_v52 }
 0x38a   : > { %8425 = vmatpush3.msra.mxu0 %v3423_v27  ;;  %7588 = vmatprep.subr.mxu1 %v4672_v57  ;;  %v4653_v27 = vld [vmem:[#allocation17 + $0x30] sm:$0xff] }
 0x38b   : > { %8427 = vmatmul.mubr.f32.vlgmr.msra.gmra.mxu0 %v3534_v34  ;;  %7611 = vmatprep.subr.mxu0 %v4710_v16  ;;  %v4685_v34 = vld [vmem:[#allocation17 + $0x130] sm:$0xff]  ;;  %v4647_v16 = vld [vmem:[#allocation17] sm:$0xff] }
 0x38c   : > { %8429 = vmatprep.mubr.msk.f32.mxu0 %vm9131_vm5, %v9128_v0  ;;  %7612 = vmatpush3.msra.mxu0 %v4694_v33  ;;  %v4742_v33 = vld [vmem:[#allocation17 + $0x2f8] sm:$0xff] }
 0x38d   : > { %7613 = vmatprep.subr.mxu0 %v4709_v51  ;;  %7589 = vmatpush3.msra.mxu1 %v4656_v22 }
 0x38e   : > { %7614 = vmatpush3.msra.mxu0 %v4693_v31  ;;  %7590 = vmatprep.subr.mxu1 %v4671_v55 }
 0x38f   : > { %8430 = vmatmul.mubr.f32.gmra.mxu0 %v3623_v15  ;;  %7615 = vmatprep.subr.mxu0 %v4708_v43  ;;  %v4683_v15 = vld [vmem:[#allocation17 + $0x120] sm:$0xff] }
 0x390   : > { %8432 = vmatprep.mubr.msk.f32.mxu0 %vm9131_vm5, %v9128_v0  ;;  %7616 = vmatpush3.msra.mxu0 %v4692_v47 }
 0x391   : > { %7617 = vmatprep.subr.mxu0 %v4707_v28  ;;  %7591 = vmatpush3.msra.mxu1 %v4655_v36 }
 0x392   : > { %7618 = vmatpush3.msra.mxu0 %v4691_v49  ;;  %7592 = vmatprep.subr.mxu1 %v4670_v61 }
 0x393   : > { %8433 = vmatmul.mubr.f32.gmra.mxu0 %v3712_v60  ;;  %7619 = vmatprep.subr.mxu0 %v4706_v46  ;;  %v4649_v60 = vld [vmem:[#allocation17 + $0x10] sm:$0xff] }
 0x394   : > { %8435 = vmatprep.mubr.msk.f32.mxu0 %vm9131_vm5, %v9128_v0  ;;  %7620 = vmatpush3.msra.mxu0 %v4690_v59 }
 0x395   : > { %7621 = vmatprep.subr.mxu0 %v4705_v17  ;;  %7593 = vmatpush3.msra.mxu1 %v4654_v11 }
 0x396   : > { %7622 = vmatpush3.msra.mxu0 %v4689_v44  ;;  %7594 = vmatprep.subr.mxu1 %v4669_v6  ;;  %v7129_v6 = vld [vmem:[#allocation15] ss:$0 sm:$0xff] }
 0x397   : > { %8436 = vmatmul.mubr.f32.gmra.mxu0 %v3801_v37  ;;  %7623 = vmatprep.subr.mxu0 %v4704_v5  ;;  %v4648_v37 = vld [vmem:[#allocation17 + $0x8] sm:$0xff] }
 0x398   : > { %8438 = vmatprep.mubr.msk.f32.mxu0 %vm9131_vm5, %v9128_v0  ;;  %7624 = vmatpush3.msra.mxu0 %v4688_v7 }
 0x399   : > { %7625 = vmatprep.subr.mxu0 %v4703_v54  ;;  %7595 = vmatpush3.msra.mxu1 %v4653_v27 }
 0x39a   : > { %7626 = vmatpush3.msra.mxu0 %v4687_v56  ;;  %7596 = vmatprep.subr.mxu1 %v4668_v8 }
 0x39b   : > { %8439 = vmatmul.mubr.f32.gmra.mxu0 %v3845_v40  ;;  %7627 = vmatprep.subr.mxu0 %v4702_v10  ;;  %v4663_v40 = vld [vmem:[#allocation17 + $0x80] sm:$0xff] }
 0x39c   : > { %7628 = vmatpush3.msra.mxu0 %v4686_v58  ;;  %7597 = vmatpush3.msra.mxu1 %v4652_v2 }
 0x39d   : > { %7629 = vmatprep.subr.mxu0 %v4701_v50  ;;  %7598 = vmatprep.subr.mxu1 %v4667_v13 }
 0x39e   : > { %7630 = vmatpush3.msra.mxu0 %v4685_v34  ;;  %7599 = vmatpush3.msra.mxu1 %v4651_v21 }
 0x39f   : > { %7631 = vmatprep.subr.mxu0 %v4700_v14  ;;  %7600 = vmatprep.subr.mxu1 %v4666_v19  ;;  %v9132_v19 = vmov 1966171168  }
 0x3a0   : > { %7632 = vmatpush3.msra.mxu0 %v4684_v9  ;;  %7601 = vmatpush3.msra.mxu1 %v4650_v41 }
 0x3a1   : > { %7633 = vmatprep.subr.mxu0 %v4699_v18  ;;  %7602 = vmatprep.subr.mxu1 %v4665_v30 }
 0x3a2   : > { %7634 = vmatpush3.msra.mxu0 %v4683_v15  ;;  %7603 = vmatpush3.msra.mxu1 %v4649_v60 }
 0x3a3   : > { %7635 = vmatprep.subr.mxu0 %v4698_v1  ;;  %7604 = vmatprep.subr.mxu1 %v4664_v62  ;;  %v4353_v1 = vunpack.c.l.s4 %v9132_v19 }
 0x3a4   : > { %7636 = vmatpush3.msra.mxu0 %v4682_v23  ;;  %7605 = vmatpush3.msra.mxu1 %v4648_v37 }
 0x3a5   : > { %7637 = vmatprep.subr.mxu0 %v4697_v26  ;;  %7606 = vmatprep.subr.mxu1 %v4663_v40  ;;  %v4354_v37 = vunpack.c.0.s8 %v4353_v1 }
 0x3a6   : > { %7638 = vmatpush3.msra.mxu0 %v4681_v12  ;;  %7607 = vmatpush3.msra.mxu1 %v4647_v16 }
 0x3a7   : > { %7639 = vmatprep.subr.mxu0 %v4696_v3  ;;  %7646 = vmatprep.subr.mxu1 %v4742_v33 }
 0x3a8   : > { %7640 = vmatpush3.msra.mxu0 %v4680_v38 }
 0x3a9   : > { %7641 = vmatprep.subr.mxu0 %v4695_v39 }
 0x3aa   : > { %7642 = vmatpush3.msra.mxu0 %v4679_v25 }
 0x3ab   : > { %7681 = vmatprep.subr.mxu0 %v4774_v35 }
 0x400   : > { %v7399_v51 = vpop.f32.mrf.mxu0 }
 0x402   : > { %v7400_v24 = vpop.f32.mrf.mxu0  ;;  %v7446_v31 = vpop.f32.mrf.mxu1 }
 0x403   : > { %v7401_v58 = vadd.f32 %v7400_v24, %v7399_v51 }
 0x404   : > { %v7447_v43 = vpop.f32.mrf.mxu1 }
 0x405   : > { %v3958_v34 = vadd.f32 %v7401_v58, %v7129_v6  ;;  %v7448_v8 = vadd.f32 %v7447_v43, %v7446_v31 }
 0x407   : > { %v7402_v42 = vpop.f32.mrf.mxu0  ;;  %v4048_v18 = vadd.f32 %v7448_v8, %v3958_v34  ;;  %v10142_v8 = vsub.s32 1, %v9838_v32 }
 0x409   : > { %v7403_v20 = vpop.f32.mrf.mxu0  ;;  %v7449_v47 = vpop.f32.mrf.mxu1 }
 0x40a   : > { %v7404_v14 = vadd.f32 %v7403_v20, %v7402_v42 }
 0x40b   : > { %v7450_v28 = vpop.f32.mrf.mxu1 }
 0x40c   : > { %v3963_v21 = vadd.f32 %v7404_v14, %v7129_v6  ;;  %v7451_v15 = vadd.f32 %v7450_v28, %v7449_v47 }
 0x40d   : > { %v7405_v63 = vpop.f32.mrf.mxu0 }
 0x40e   : > { %v4053_v3 = vadd.f32 %v7451_v15, %v3963_v21 }
 0x40f   : > { %v7406_v53 = vpop.f32.mrf.mxu0 }
 0x410   : > { %v7452_v49 = vpop.f32.mrf.mxu1  ;;  %v7407_v41 = vadd.f32 %v7406_v53, %v7405_v63  ;;  %v10129_v63 = vsub.s32 %v4354_v37, %v9838_v32 }
 0x412   : > { %v7453_v46 = vpop.f32.mrf.mxu1  ;;  %v3968_v38 = vadd.f32 %v7407_v41, %v7129_v6 }
 0x413   : > { %v7408_v4 = vpop.f32.mrf.mxu0  ;;  %v7454_v40 = vadd.f32 %v7453_v46, %v7452_v49  ;;  %v4769_v49 = vld [vmem:[#allocation17 + $0x3d0] sm:$0xff] }
 0x415   : > { %v7409_v45 = vpop.f32.mrf.mxu0  ;;  %v4058_v28 = vadd.f32 %v7454_v40, %v3968_v38 }
 0x416   : > { %v7455_v59 = vpop.f32.mrf.mxu1  ;;  %v7410_v23 = vadd.f32 %v7409_v45, %v7408_v4 }
 0x418   : > { %v7456_v17 = vpop.f32.mrf.mxu1  ;;  %v3973_v39 = vadd.f32 %v7410_v23, %v7129_v6 }
 0x419   : > { %v7411_v48 = vpop.f32.mrf.mxu0  ;;  %v7457_v16 = vadd.f32 %v7456_v17, %v7455_v59 }
 0x41b   : > { %v7412_v52 = vpop.f32.mrf.mxu0  ;;  %v4063_v53 = vadd.f32 %v7457_v16, %v3973_v39  ;;  %v10165_v39 = vsub.s32 3, %v9838_v32  ;;  %v10168_v16 = vsub.s32 0, %v9838_v32 }
 0x41c   : > { %v7458_v57 = vpop.f32.mrf.mxu1  ;;  %v7413_v33 = vadd.f32 %v7412_v52, %v7411_v48 }
 0x41e   : > { %v7459_v22 = vpop.f32.mrf.mxu1  ;;  %v3978_v46 = vadd.f32 %v7413_v33, %v7129_v6 }
 0x41f   : > { %v7460_v45 = vadd.f32 %v7459_v22, %v7458_v57 }
 0x421   : > { %v4068_v58 = vadd.f32 %v7460_v45, %v3978_v46 }
 0x428   : > { %v7493_v44 = vpop.f32.mrf.mxu0 }
 0x42a   : > { %v7494_v5 = vpop.f32.mrf.mxu0 }
 0x42b   : > { %v7495_v9 = vadd.f32 %v7494_v5, %v7493_v44 }
 0x42d   : > { %v7496_v7 = vpop.f32.mrf.mxu0  ;;  %v7540_v55 = vpop.f32.mrf.mxu1  ;;  %v4138_v26 = vadd.f32 %v7495_v9, %v4048_v18 }
 0x42f   : > { %v7497_v54 = vpop.f32.mrf.mxu0  ;;  %v7541_v36 = vpop.f32.mrf.mxu1 }
 0x430   : > { %v7498_v60 = vadd.f32 %v7497_v54, %v7496_v7  ;;  %v7542_v12 = vadd.f32 %v7541_v36, %v7540_v55 }
 0x431   : > { %v7543_v61 = vpop.f32.mrf.mxu1 }
 0x432   : > { %v7499_v56 = vpop.f32.mrf.mxu0  ;;  %v4143_v35 = vadd.f32 %v7498_v60, %v4053_v3  ;;  %v4228_v24 = vadd.f32 %v7542_v12, %v4138_v26 }
 0x433   : > { %v7544_v11 = vpop.f32.mrf.mxu1 }
 0x434   : > { %v7500_v10 = vpop.f32.mrf.mxu0  ;;  %v7545_v51 = vadd.f32 %v7544_v11, %v7543_v61 }
 0x435   : > { %v7546_v27 = vpop.f32.mrf.mxu1  ;;  %v7501_v31 = vadd.f32 %v7500_v10, %v7499_v56 }
 0x436   : > { %v4233_v48 = vadd.f32 %v7545_v51, %v4143_v35 }
 0x437   : > { %v7502_v50 = vpop.f32.mrf.mxu0  ;;  %v7547_v13 = vpop.f32.mrf.mxu1  ;;  %v4148_v17 = vadd.f32 %v7501_v31, %v4058_v28 }
 0x438   : > { %v7548_v44 = vadd.f32 %v7547_v13, %v7546_v27 }
 0x439   : > { %v7503_v2 = vpop.f32.mrf.mxu0  ;;  %v7549_v62 = vpop.f32.mrf.mxu1 }
 0x43a   : > { %v7504_v42 = vadd.f32 %v7503_v2, %v7502_v50  ;;  %v4238_v50 = vadd.f32 %v7548_v44, %v4148_v17 }
 0x43b   : > { %v7505_v30 = vpop.f32.mrf.mxu0  ;;  %v7550_v43 = vpop.f32.mrf.mxu1 }
 0x43c   : > { %v4153_v52 = vadd.f32 %v7504_v42, %v4063_v53  ;;  %v7551_v5 = vadd.f32 %v7550_v43, %v7549_v62 }
 0x43d   : > { %v7506_v25 = vpop.f32.mrf.mxu0  ;;  %v7552_v7 = vpop.f32.mrf.mxu1 }
 0x43e   : > { %v7507_v56 = vadd.f32 %v7506_v25, %v7505_v30  ;;  %v4243_v34 = vadd.f32 %v7551_v5, %v4153_v52 }
 0x43f   : > { %v7553_v6 = vpop.f32.mrf.mxu1 }
 0x440   : > { %v4158_v18 = vadd.f32 %v7507_v56, %v4068_v58  ;;  %v7554_v41 = vadd.f32 %v7553_v6, %v7552_v7 }
 0x44b   : > { %v4317_v20 = vpop.f32.mrf.mxu0 }
 0x44c   : > { %v4318_v47 = vadd.f32 %v4317_v20, %v4228_v24  ;;  %v10178_v20 = vsub.s32 2, %v9838_v32 }
 0x44d   : > { %v8428_v4 = vpop.f32.mrf.mxu0 }
 0x44e   : > { %v4341_v59 = vmax.f32 %v4318_v47, 0.0  ;;  %v4248_v4 = vadd.f32 %v7554_v41, %v4158_v18 }
 0x44f   : > { %v4322_v55 = vpop.f32.mrf.mxu0 }
 0x450   : > { %4350 = vst.msk [vmem:[#allocation5] sm:$0x1] %vm10132_vm6, %v4341_v59  ;;  %v4358_v54 = vrot.slane %v4341_v59, %v10129_v63  ;;  %v4382_v29 = vcombine.high %v4341_v59, %v4341_v59  ;;  %v4323_v36 = vadd.f32 %v4322_v55, %v4233_v48  ;;  %v10199_v55 = vsub.s32 5, %v9838_v32 }
 0x451   : > { %v8431_v61 = vpop.f32.mrf.mxu0 }
 0x452   : > { %v4359_v10 = vcombine.high %v4358_v54, %v4358_v54  ;;  %v4366_v57 = vrot.slane %v4358_v54, %v10129_v63  ;;  %v4389_v22 = vrot.slane %v4382_v29, %v10129_v63  ;;  %v4342_v11 = vmax.f32 %v4323_v36, 0.0 }
 0x453   : > { %v4327_v27 = vpop.f32.mrf.mxu0 }
 0x454   : > { %v4373_v14 = vrot.slane %v4359_v10, %v10129_v63  ;;  %v4376_v2 = vcombine.high %v4366_v57, %v4366_v57  ;;  %v4396_v9 = vrot.slane %v4389_v22, %v10129_v63  ;;  %v4399_v13 = vcombine.high %v4389_v22, %v4389_v22  ;;  %4415 = vst.msk [vmem:[#allocation5 + $0x8] sm:$0x1] %vm10132_vm6, %v4342_v11 }
 0x455   : > { %v4423_v21 = vrot.slane %v4342_v11, %v10129_v63  ;;  %v4447_v15 = vcombine.high %v4342_v11, %v4342_v11  ;;  %v4328_v19 = vadd.f32 %v4327_v27, %v4238_v50  ;;  %v8434_v1 = vpop.f32.mrf.mxu0  ;;  %v10215_v50 = vsub.s32 7, %v9838_v32 }
 0x456   : > { %4375 = vst.msk [vmem:[#allocation5 + $0x1] sm:$0x1] %vm10132_vm6, %v4373_v14  ;;  %4378 = vst.msk [vmem:[#allocation5 + $0x2] sm:$0x1] %vm10132_vm6, %v4376_v2  ;;  %v4379_v23 = vcombine.high %v4373_v14, %v4373_v14  ;;  %v4406_v30 = vrot.slane %v4399_v13, %v10129_v63  ;;  %v4409_v26 = vcombine.high %v4396_v9, %v4396_v9 }
 0x457   : > { %4398 = vst.msk [vmem:[#allocation5 + $0x4] sm:$0x1] %vm10132_vm6, %v4396_v9  ;;  %v4424_v60 = vcombine.high %v4423_v21, %v4423_v21  ;;  %v4431_v12 = vrot.slane %v4423_v21, %v10129_v63  ;;  %v4454_v62 = vrot.slane %v4447_v15, %v10129_v63  ;;  %v4343_v3 = vmax.f32 %v4328_v19, 0.0  ;;  %v4332_v37 = vpop.f32.mrf.mxu0 }
 0x458   : > { %4381 = vst.msk [vmem:[#allocation5 + $0x3] sm:$0x1] %vm10132_vm6, %v4379_v23  ;;  %4408 = vst.msk [vmem:[#allocation5 + $0x5] sm:$0x1] %vm10132_vm6, %v4406_v30  ;;  %v4412_v38 = vcombine.high %v4406_v30, %v4406_v30  ;;  %v4333_v40 = vadd.f32 %v4332_v37, %v4243_v34  ;;  %v4726_v30 = vld [vmem:[#allocation17 + $0x278] sm:$0xff] }
 0x459   : > { %4411 = vst.msk [vmem:[#allocation5 + $0x6] sm:$0x1] %vm10132_vm6, %v4409_v26  ;;  %v4438_v25 = vrot.slane %v4424_v60, %v10129_v63  ;;  %v4441_v33 = vcombine.high %v4431_v12, %v4431_v12  ;;  %v4461_v35 = vrot.slane %v4454_v62, %v10129_v63  ;;  %v4464_v51 = vcombine.high %v4454_v62, %v4454_v62  ;;  %v8437_v24 = vpop.f32.mrf.mxu0  ;;  %v4758_v62 = vld [vmem:[#allocation17 + $0x378] sm:$0xff] }
 0x45a   : > { %4480 = vst.msk [vmem:[#allocation5 + $0x10] sm:$0x1] %vm10132_vm6, %v4343_v3  ;;  %4414 = vst.msk [vmem:[#allocation5 + $0x7] sm:$0x1] %vm10132_vm6, %v4412_v38  ;;  %v4488_v31 = vrot.slane %v4343_v3, %v10129_v63  ;;  %v4512_v42 = vcombine.high %v4343_v3, %v4343_v3  ;;  %v4344_v43 = vmax.f32 %v4333_v40, 0.0  ;;  %v4741_v3 = vld [vmem:[#allocation17 + $0x2f0] sm:$0xff] }
 0x45b   : > { %4440 = vst.msk [vmem:[#allocation5 + $0x9] sm:$0x1] %vm10132_vm6, %v4438_v25  ;;  %4443 = vst.msk [vmem:[#allocation5 + $0xa] sm:$0x1] %vm10132_vm6, %v4441_v33  ;;  %v4444_v47 = vcombine.high %v4438_v25, %v4438_v25  ;;  %v4471_v28 = vrot.slane %v4464_v51, %v10129_v63  ;;  %v4474_v53 = vcombine.high %v4461_v35, %v4461_v35  ;;  %v4337_v46 = vpop.f32.mrf.mxu0  ;;  %v4773_v38 = vld [vmem:[#allocation17 + $0x3f0] sm:$0xff] }
 0x45c   : > { %4463 = vst.msk [vmem:[#allocation5 + $0xc] sm:$0x1] %vm10132_vm6, %v4461_v35  ;;  %v4489_v45 = vcombine.high %v4488_v31, %v4488_v31  ;;  %v4496_v59 = vrot.slane %v4488_v31, %v10129_v63  ;;  %v4519_v48 = vrot.slane %v4512_v42, %v10129_v63  ;;  %4545 = vst.msk [vmem:[#allocation5 + $0x18] sm:$0x1] %vm10132_vm6, %v4344_v43  ;;  %v4725_v35 = vld [vmem:[#allocation17 + $0x270] sm:$0xff]  ;;  %v4740_v42 = vld [vmem:[#allocation17 + $0x2e8] sm:$0xff] }
 0x45d   : > { %v4553_v17 = vrot.slane %v4344_v43, %v10129_v63  ;;  %4446 = vst.msk [vmem:[#allocation5 + $0xb] sm:$0x1] %vm10132_vm6, %v4444_v47  ;;  %4473 = vst.msk [vmem:[#allocation5 + $0xd] sm:$0x1] %vm10132_vm6, %v4471_v28  ;;  %v4477_v52 = vcombine.high %v4471_v28, %v4471_v28  ;;  %v4577_v44 = vcombine.high %v4344_v43, %v4344_v43  ;;  %v8440_v7 = vpop.f32.mrf.mxu0  ;;  %v4757_v31 = vld [vmem:[#allocation17 + $0x370] sm:$0xff]  ;;  %v10267_v43 = vsub.s32 6, %v9838_v32 }
 0x45e   : > { %4476 = vst.msk [vmem:[#allocation5 + $0xe] sm:$0x1] %vm10132_vm6, %v4474_v53  ;;  %v4338_v5 = vadd.f32 %v4337_v46, %v4248_v4  ;;  %v4503_v54 = vrot.slane %v4489_v45, %v10129_v63  ;;  %v4506_v29 = vcombine.high %v4496_v59, %v4496_v59  ;;  %v4526_v36 = vrot.slane %v4519_v48, %v10129_v63  ;;  %v4772_v28 = vld [vmem:[#allocation17 + $0x3e8] sm:$0xff]  ;;  %v4739_v46 = vld [vmem:[#allocation17 + $0x2e0] sm:$0xff]  ;;  %v4722_v7 = vld [vmem:[#allocation17 + $0x258] sm:$0xff] }
 0x45f   : > { %v4529_v56 = vcombine.high %v4519_v48, %v4519_v48  ;;  %4479 = vst.msk [vmem:[#allocation5 + $0xf] sm:$0x1] %vm10132_vm6, %v4477_v52  ;;  %v4554_v61 = vcombine.high %v4553_v17, %v4553_v17  ;;  %v4561_v10 = vrot.slane %v4553_v17, %v10129_v63  ;;  %v4584_v57 = vrot.slane %v4577_v44, %v10129_v63  ;;  %v4724_v53 = vld [vmem:[#allocation17 + $0x268] sm:$0xff]  ;;  %v4771_v59 = vld [vmem:[#allocation17 + $0x3e0] sm:$0xff]  ;;  %v4738_v52 = vld [vmem:[#allocation17 + $0x2d8] sm:$0xff] }
 0x460   : > { %v4345_v22 = vmax.f32 %v4338_v5, 0.0  ;;  %4505 = vst.msk [vmem:[#allocation5 + $0x11] sm:$0x1] %vm10132_vm6, %v4503_v54  ;;  %4508 = vst.msk [vmem:[#allocation5 + $0x12] sm:$0x1] %vm10132_vm6, %v4506_v29  ;;  %v4509_v11 = vcombine.high %v4503_v54, %v4503_v54  ;;  %v4539_v6 = vcombine.high %v4526_v36, %v4526_v36  ;;  %v4756_v4 = vld [vmem:[#allocation17 + $0x368] sm:$0xff] }
 0x461   : > { %4528 = vst.msk [vmem:[#allocation5 + $0x14] sm:$0x1] %vm10132_vm6, %v4526_v36  ;;  %v4536_v58 = vrot.slane %v4529_v56, %v10129_v63  ;;  %v4568_v27 = vrot.slane %v4554_v61, %v10129_v63  ;;  %v4571_v34 = vcombine.high %v4561_v10, %v4561_v10  ;;  %v4591_v14 = vrot.slane %v4584_v57, %v10129_v63  ;;  %v10221_v9 = vld [vmem:[#allocation5] sm:$0xff]  ;;  %v4723_v48 = vld [vmem:[#allocation17 + $0x260] sm:$0xff] }
 0x462   : > { %v4594_v2 = vcombine.high %v4584_v57, %v4584_v57  ;;  %4610 = vst.msk [vmem:[#allocation5 + $0x20] sm:$0x1] %vm10132_vm6, %v4345_v22  ;;  %4511 = vst.msk [vmem:[#allocation5 + $0x13] sm:$0x1] %vm10132_vm6, %v4509_v11  ;;  %v4618_v18 = vrot.slane %v4345_v22, %v10129_v63  ;;  %v5236_v21 = vrot.slane %v10221_v9, %v10142_v8  ;;  %v4755_v17 = vld [vmem:[#allocation17 + $0x360] sm:$0xff]  ;;  %v4770_v5 = vld [vmem:[#allocation17 + $0x3d8] sm:$0xff] }
 0x463   : > { %4538 = vst.msk [vmem:[#allocation5 + $0x15] sm:$0x1] %vm10132_vm6, %v4536_v58  ;;  %4541 = vst.msk [vmem:[#allocation5 + $0x16] sm:$0x1] %vm10132_vm6, %v4539_v6  ;;  %v4542_v13 = vcombine.high %v4536_v58, %v4536_v58  ;;  %v5244_v15 = vrot.slane %v10221_v9, %v10165_v39  ;;  %v4574_v19 = vcombine.high %v4568_v27, %v4568_v27  ;;  %v4754_v54 = vld [vmem:[#allocation17 + $0x358] sm:$0xff]  ;;  %v4737_v29 = vld [vmem:[#allocation17 + $0x2d0] sm:$0xff] }
 0x464   : > { %4570 = vst.msk [vmem:[#allocation5 + $0x19] sm:$0x1] %vm10132_vm6, %v4568_v27  ;;  %4573 = vst.msk [vmem:[#allocation5 + $0x1a] sm:$0x1] %vm10132_vm6, %v4571_v34  ;;  %v4601_v1 = vrot.slane %v4594_v2, %v10129_v63  ;;  %v4604_v41 = vcombine.high %v4591_v14, %v4591_v14  ;;  %v5232_v23 = vrot.slane %v10221_v9, %v10168_v16  ;;  %5473 = vmatprep.mubr.f32.mxu1 %v5236_v21  ;;  %v4721_v36 = vld [vmem:[#allocation17 + $0x250] sm:$0xff]  ;;  %v4736_v22 = vld [vmem:[#allocation17 + $0x2c8] sm:$0xff] }
 0x465   : > { %4593 = vst.msk [vmem:[#allocation5 + $0x1c] sm:$0x1] %vm10132_vm6, %v4591_v14  ;;  %4544 = vst.msk [vmem:[#allocation5 + $0x17] sm:$0x1] %vm10132_vm6, %v4542_v13  ;;  %v4619_v26 = vcombine.high %v4618_v18, %v4618_v18  ;;  %v4626_v60 = vrot.slane %v4618_v18, %v10129_v63  ;;  %5543 = vmatprep.mubr.f32.mxu0 %v5244_v15  ;;  %v5240_v12 = vrot.slane %v10221_v9, %v10178_v20  ;;  %v4753_v57 = vld [vmem:[#allocation17 + $0x350] sm:$0xff]  ;;  %v4768_v11 = vld [vmem:[#allocation17 + $0x3c8] sm:$0xff] }
 0x466   : > { %4576 = vst.msk [vmem:[#allocation5 + $0x1b] sm:$0x1] %vm10132_vm6, %v4574_v19  ;;  %4603 = vst.msk [vmem:[#allocation5 + $0x1d] sm:$0x1] %vm10132_vm6, %v4601_v1  ;;  %v4607_v37 = vcombine.high %v4601_v1, %v4601_v1  ;;  %5474 = vmatmul.mubr.f32.vlgmr.msra.gmra.mxu1 %v5232_v23  ;;  %v5252_v33 = vrot.slane %v10221_v9, %v10199_v55  ;;  %v10257_v51 = vld [vmem:[#allocation5 + $0x8] sm:$0xff]  ;;  %v5260_v24 = vrot.slane %v10221_v9, %v10215_v50  ;;  %v4720_v58 = vld [vmem:[#allocation17 + $0x248] sm:$0xff] }
 0x467   : > { %4606 = vst.msk [vmem:[#allocation5 + $0x1e] sm:$0x1] %vm10132_vm6, %v4604_v41  ;;  %v4633_v40 = vrot.slane %v4619_v26, %v10129_v63  ;;  %v4636_v25 = vcombine.high %v4626_v60, %v4626_v60  ;;  %5544 = vmatmul.mubr.f32.vlgmr.msra.gmra.mxu0 %v5240_v12  ;;  %7647 = vmatpush3.msra.mxu1 %v4726_v30  ;;  %v10264_v63 = vsub.s32 4, %v9838_v32  ;;  %v4752_v6 = vld [vmem:[#allocation17 + $0x348] sm:$0xff]  ;;  %v4735_v27 = vld [vmem:[#allocation17 + $0x2c0] sm:$0xff]  ;;  %v4734_v21 = vld [vmem:[#allocation17 + $0x2b8] sm:$0xff] }
 0x468   : > { %4609 = vst.msk [vmem:[#allocation5 + $0x1f] sm:$0x1] %vm10132_vm6, %v4607_v37  ;;  %7682 = vmatpush3.msra.mxu0 %v4758_v62  ;;  %7648 = vmatprep.subr.mxu1 %v4741_v3  ;;  %v5288_v32 = vrot.slane %v10257_v51, %v10267_v43  ;;  %v4767_v2 = vld [vmem:[#allocation17 + $0x3c0] sm:$0xff]  ;;  %v4766_v15 = vld [vmem:[#allocation17 + $0x3b8] sm:$0xff]  ;;  %v4733_v41 = vld [vmem:[#allocation17 + $0x2b0] sm:$0xff] }
 0x469   : > { %4635 = vst.msk [vmem:[#allocation5 + $0x21] sm:$0x1] %vm10132_vm6, %v4633_v40  ;;  %4638 = vst.msk [vmem:[#allocation5 + $0x22] sm:$0x1] %vm10132_vm6, %v4636_v25  ;;  %v4639_v47 = vcombine.high %v4633_v40, %v4633_v40  ;;  %5613 = vmatprep.mubr.f32.mxu1 %v5252_v33  ;;  %7683 = vmatprep.subr.mxu0 %v4773_v38  ;;  %v5280_v45 = vrot.slane %v10257_v51, %v10264_v63  ;;  %v4719_v13 = vld [vmem:[#allocation17 + $0x240] sm:$0xff]  ;;  %v4718_v19 = vld [vmem:[#allocation17 + $0x238] sm:$0xff] }
 0x46a   : > { %5683 = vmatprep.mubr.f32.mxu0 %v5260_v24  ;;  %7649 = vmatpush3.msra.mxu1 %v4725_v35  ;;  %v4751_v18 = vld [vmem:[#allocation17 + $0x340] sm:$0xff]  ;;  %v4750_v1 = vld [vmem:[#allocation17 + $0x338] sm:$0xff]  ;;  %v4765_v23 = vld [vmem:[#allocation17 + $0x3b0] sm:$0xff] }
 0x46b   : > { %4641 = vst.msk [vmem:[#allocation5 + $0x23] sm:$0x1] %vm10132_vm6, %v4639_v47  ;;  %7684 = vmatpush3.msra.mxu0 %v4757_v31  ;;  %7650 = vmatprep.subr.mxu1 %v4740_v42  ;;  %v4717_v30 = vld [vmem:[#allocation17 + $0x230] sm:$0xff]  ;;  %v4732_v60 = vld [vmem:[#allocation17 + $0x2a8] sm:$0xff]  ;;  %v4731_v37 = vld [vmem:[#allocation17 + $0x2a0] sm:$0xff] }
 0x46c   : > { %7685 = vmatprep.subr.mxu0 %v4772_v28  ;;  %7651 = vmatpush3.msra.mxu1 %v4724_v53  ;;  %v10279_v44 = vld [vmem:[#allocation5 + $0x10] sm:$0xff]  ;;  %v4749_v26 = vld [vmem:[#allocation17 + $0x330] sm:$0xff]  ;;  %v4730_v33 = vld [vmem:[#allocation17 + $0x298] sm:$0xff] }
 0x46d   : > { %7686 = vmatpush3.msra.mxu0 %v4756_v4  ;;  %7652 = vmatprep.subr.mxu1 %v4739_v46  ;;  %v5312_v56 = vrot.slane %v10279_v44, %v10264_v63  ;;  %v5320_v61 = vrot.slane %v10279_v44, %v10267_v43  ;;  %v4764_v12 = vld [vmem:[#allocation17 + $0x3a8] sm:$0xff]  ;;  %v4763_v38 = vld [vmem:[#allocation17 + $0x3a0] sm:$0xff]  ;;  %v4762_v35 = vld [vmem:[#allocation17 + $0x398] sm:$0xff] }
 0x46e   : > { %7687 = vmatprep.subr.mxu0 %v4771_v59  ;;  %7653 = vmatpush3.msra.mxu1 %v4723_v48  ;;  %v4716_v62 = vld [vmem:[#allocation17 + $0x228] sm:$0xff]  ;;  %v4715_v40 = vld [vmem:[#allocation17 + $0x220] sm:$0xff]  ;;  %v4714_v24 = vld [vmem:[#allocation17 + $0x218] sm:$0xff] }
 0x46f   : > { %7688 = vmatpush3.msra.mxu0 %v4755_v17  ;;  %7654 = vmatprep.subr.mxu1 %v4738_v52  ;;  %v10285_v10 = vld [vmem:[#allocation5 + $0x18] sm:$0xff]  ;;  %v4747_v25 = vld [vmem:[#allocation17 + $0x320] sm:$0xff]  ;;  %v4746_v31 = vld [vmem:[#allocation17 + $0x318] sm:$0xff] }
 0x470   : > { %7689 = vmatprep.subr.mxu0 %v4770_v5  ;;  %7655 = vmatpush3.msra.mxu1 %v4722_v7  ;;  %v5344_v34 = vrot.slane %v10285_v10, %v10264_v63  ;;  %v5352_v14 = vrot.slane %v10285_v10, %v10267_v43  ;;  %v4748_v3 = vld [vmem:[#allocation17 + $0x328] sm:$0xff]  ;;  %v4729_v42 = vld [vmem:[#allocation17 + $0x290] sm:$0xff]  ;;  %v4727_v17 = vld [vmem:[#allocation17 + $0x280] sm:$0xff] }
 0x471   : > { %7690 = vmatpush3.msra.mxu0 %v4754_v54  ;;  %7656 = vmatprep.subr.mxu1 %v4737_v29  ;;  %v4761_v47 = vld [vmem:[#allocation17 + $0x390] sm:$0xff]  ;;  %v4728_v4 = vld [vmem:[#allocation17 + $0x288] sm:$0xff]  ;;  %v4759_v52 = vld [vmem:[#allocation17 + $0x380] sm:$0xff]  ;;  %v5248_v54 = vrot.slane %v10221_v9, %v10264_v63 }
 0x472   : > { %7691 = vmatprep.subr.mxu0 %v4769_v49  ;;  %7657 = vmatpush3.msra.mxu1 %v4721_v36  ;;  %v4713_v28 = vld [vmem:[#allocation17 + $0x210] sm:$0xff]  ;;  %v4760_v46 = vld [vmem:[#allocation17 + $0x388] sm:$0xff]  ;;  %v4711_v5 = vld [vmem:[#allocation17 + $0x200] sm:$0xff]  ;;  %v5256_v49 = vrot.slane %v10221_v9, %v10267_v43 }
 0x473   : > { %7692 = vmatpush3.msra.mxu0 %v4753_v57  ;;  %7658 = vmatprep.subr.mxu1 %v4736_v22  ;;  %v4745_v53 = vld [vmem:[#allocation17 + $0x310] sm:$0xff]  ;;  %v4712_v59 = vld [vmem:[#allocation17 + $0x208] sm:$0xff]  ;;  %v4743_v7 = vld [vmem:[#allocation17 + $0x300] sm:$0xff] }
 0x474   : > { %7693 = vmatprep.subr.mxu0 %v4768_v11  ;;  %7659 = vmatpush3.msra.mxu1 %v4720_v58  ;;  %v4744_v48 = vld [vmem:[#allocation17 + $0x308] sm:$0xff]  ;;  %v4806_v29 = vld [vmem:[#allocation17 + $0x4f8] sm:$0xff]  ;;  %v5268_v11 = vrot.slane %v10257_v51, %v10142_v8  ;;  %v4805_v58 = vld [vmem:[#allocation17 + $0x4f0] sm:$0xff] }
 0x475   : > { %7694 = vmatpush3.msra.mxu0 %v4752_v6  ;;  %7660 = vmatprep.subr.mxu1 %v4735_v27  ;;  %v4838_v36 = vld [vmem:[#allocation17 + $0x5f8] sm:$0xff]  ;;  %v5276_v6 = vrot.slane %v10257_v51, %v10165_v39  ;;  %v4837_v27 = vld [vmem:[#allocation17 + $0x5f0] sm:$0xff]  ;;  %v5220_v43 = vld [vmem:[#allocation17 + $0x11e8] sm:$0xff] }
 0x476   : > { %7695 = vmatprep.subr.mxu0 %v4767_v2  ;;  %7661 = vmatpush3.msra.mxu1 %v4719_v13  ;;  %v4790_v57 = vld [vmem:[#allocation17 + $0x478] sm:$0xff]  ;;  %v4789_v2 = vld [vmem:[#allocation17 + $0x470] sm:$0xff]  ;;  %v4804_v13 = vld [vmem:[#allocation17 + $0x4e8] sm:$0xff] }
 0x477   : > { %7696 = vmatpush3.msra.mxu0 %v4751_v18  ;;  %7662 = vmatprep.subr.mxu1 %v4734_v21  ;;  %v4822_v22 = vld [vmem:[#allocation17 + $0x578] sm:$0xff]  ;;  %v4821_v9 = vld [vmem:[#allocation17 + $0x570] sm:$0xff]  ;;  %v4836_v18 = vld [vmem:[#allocation17 + $0x5e8] sm:$0xff] }
 0x478   : > { %7697 = vmatprep.subr.mxu0 %v4766_v15  ;;  %7663 = vmatpush3.msra.mxu1 %v4718_v19  ;;  %v4788_v21 = vld [vmem:[#allocation17 + $0x468] sm:$0xff]  ;;  %v4803_v19 = vld [vmem:[#allocation17 + $0x4e0] sm:$0xff]  ;;  %v5205_v63 = vld [vmem:[#allocation17 + $0x1170] sm:$0xff] }
 0x479   : > { %7698 = vmatpush3.msra.mxu0 %v4750_v1  ;;  %7664 = vmatprep.subr.mxu1 %v4733_v41  ;;  %v4820_v15 = vld [vmem:[#allocation17 + $0x568] sm:$0xff]  ;;  %v4835_v1 = vld [vmem:[#allocation17 + $0x5e0] sm:$0xff] }
 0x47a   : > { %7699 = vmatprep.subr.mxu0 %v4765_v23  ;;  %7665 = vmatpush3.msra.mxu1 %v4717_v30  ;;  %v4787_v41 = vld [vmem:[#allocation17 + $0x460] sm:$0xff]  ;;  %v4802_v30 = vld [vmem:[#allocation17 + $0x4d8] sm:$0xff]  ;;  %v5172_v10 = vld [vmem:[#allocation17 + $0x1068] sm:$0xff] }
 0x47b   : > { %7700 = vmatpush3.msra.mxu0 %v4749_v26  ;;  %7666 = vmatprep.subr.mxu1 %v4732_v60  ;;  %v4819_v23 = vld [vmem:[#allocation17 + $0x560] sm:$0xff]  ;;  %v4834_v26 = vld [vmem:[#allocation17 + $0x5d8] sm:$0xff] }
 0x47c   : > { %7701 = vmatprep.subr.mxu0 %v4764_v12  ;;  %7667 = vmatpush3.msra.mxu1 %v4716_v62  ;;  %v4786_v60 = vld [vmem:[#allocation17 + $0x458] sm:$0xff]  ;;  %v4801_v62 = vld [vmem:[#allocation17 + $0x4d0] sm:$0xff] }
 0x47d   : > { %7702 = vmatpush3.msra.mxu0 %v4748_v3  ;;  %7668 = vmatprep.subr.mxu1 %v4731_v37  ;;  %v4818_v12 = vld [vmem:[#allocation17 + $0x558] sm:$0xff]  ;;  %v4833_v3 = vld [vmem:[#allocation17 + $0x5d0] sm:$0xff] }
 0x47e   : > { %7703 = vmatprep.subr.mxu0 %v4763_v38  ;;  %7669 = vmatpush3.msra.mxu1 %v4715_v40  ;;  %v4785_v37 = vld [vmem:[#allocation17 + $0x450] sm:$0xff]  ;;  %v4800_v40 = vld [vmem:[#allocation17 + $0x4c8] sm:$0xff] }
 0x47f   : > { %7704 = vmatpush3.msra.mxu0 %v4747_v25  ;;  %7670 = vmatprep.subr.mxu1 %v4730_v33  ;;  %v4817_v38 = vld [vmem:[#allocation17 + $0x550] sm:$0xff]  ;;  %v4832_v25 = vld [vmem:[#allocation17 + $0x5c8] sm:$0xff] }
 0x480   : > { %7705 = vmatprep.subr.mxu0 %v4762_v35  ;;  %7671 = vmatpush3.msra.mxu1 %v4714_v24  ;;  %v4784_v33 = vld [vmem:[#allocation17 + $0x448] sm:$0xff]  ;;  %v4799_v24 = vld [vmem:[#allocation17 + $0x4c0] sm:$0xff] }
 0x481   : > { %7706 = vmatpush3.msra.mxu0 %v4746_v31  ;;  %7672 = vmatprep.subr.mxu1 %v4729_v42  ;;  %v4816_v35 = vld [vmem:[#allocation17 + $0x548] sm:$0xff]  ;;  %v4831_v31 = vld [vmem:[#allocation17 + $0x5c0] sm:$0xff] }
 0x482   : > { %7707 = vmatprep.subr.mxu0 %v4761_v47  ;;  %7673 = vmatpush3.msra.mxu1 %v4713_v28  ;;  %v4783_v42 = vld [vmem:[#allocation17 + $0x440] sm:$0xff]  ;;  %v4798_v28 = vld [vmem:[#allocation17 + $0x4b8] sm:$0xff] }
 0x483   : > { %7708 = vmatpush3.msra.mxu0 %v4745_v53  ;;  %7674 = vmatprep.subr.mxu1 %v4728_v4  ;;  %v4815_v47 = vld [vmem:[#allocation17 + $0x540] sm:$0xff]  ;;  %v4830_v53 = vld [vmem:[#allocation17 + $0x5b8] sm:$0xff] }
 0x484   : > { %7709 = vmatprep.subr.mxu0 %v4760_v46  ;;  %7675 = vmatpush3.msra.mxu1 %v4712_v59  ;;  %v4782_v4 = vld [vmem:[#allocation17 + $0x438] sm:$0xff]  ;;  %v4797_v59 = vld [vmem:[#allocation17 + $0x4b0] sm:$0xff] }
 0x485   : > { %7710 = vmatpush3.msra.mxu0 %v4744_v48  ;;  %7676 = vmatprep.subr.mxu1 %v4727_v17  ;;  %v4814_v46 = vld [vmem:[#allocation17 + $0x538] sm:$0xff]  ;;  %v4829_v48 = vld [vmem:[#allocation17 + $0x5b0] sm:$0xff] }
 0x486   : > { %7711 = vmatprep.subr.mxu0 %v4759_v52  ;;  %7677 = vmatpush3.msra.mxu1 %v4711_v5  ;;  %v4781_v17 = vld [vmem:[#allocation17 + $0x430] sm:$0xff]  ;;  %v4796_v5 = vld [vmem:[#allocation17 + $0x4a8] sm:$0xff] }
 0x487   : > { %7712 = vmatpush3.msra.mxu0 %v4743_v7  ;;  %5614 = vmatmul.mubr.f32.vlgmr.msra.gmra.mxu1 %v5248_v54  ;;  %v4813_v52 = vld [vmem:[#allocation17 + $0x530] sm:$0xff]  ;;  %v4828_v7 = vld [vmem:[#allocation17 + $0x5a8] sm:$0xff] }
 0x488   : > { %5684 = vmatmul.mubr.f32.vlgmr.msra.gmra.mxu0 %v5256_v49  ;;  %7716 = vmatprep.subr.mxu1 %v4806_v29  ;;  %v4780_v54 = vld [vmem:[#allocation17 + $0x428] sm:$0xff]  ;;  %v4795_v49 = vld [vmem:[#allocation17 + $0x4a0] sm:$0xff] }
 0x489   : > { %7751 = vmatprep.subr.mxu0 %v4838_v36  ;;  %7717 = vmatpush3.msra.mxu1 %v4790_v57  ;;  %v4812_v29 = vld [vmem:[#allocation17 + $0x528] sm:$0xff]  ;;  %v4827_v36 = vld [vmem:[#allocation17 + $0x5a0] sm:$0xff] }
 0x48a   : > { %5753 = vmatprep.mubr.f32.mxu1 %v5268_v11  ;;  %7752 = vmatpush3.msra.mxu0 %v4822_v22  ;;  %v4779_v57 = vld [vmem:[#allocation17 + $0x420] sm:$0xff]  ;;  %v4794_v11 = vld [vmem:[#allocation17 + $0x498] sm:$0xff] }
 0x48b   : > { %5823 = vmatprep.mubr.f32.mxu0 %v5276_v6  ;;  %7718 = vmatprep.subr.mxu1 %v4805_v58  ;;  %v4811_v22 = vld [vmem:[#allocation17 + $0x520] sm:$0xff]  ;;  %v4826_v58 = vld [vmem:[#allocation17 + $0x598] sm:$0xff] }
 0x48c   : > { %7753 = vmatprep.subr.mxu0 %v4837_v27  ;;  %7719 = vmatpush3.msra.mxu1 %v4789_v2  ;;  %v4778_v6 = vld [vmem:[#allocation17 + $0x418] sm:$0xff]  ;;  %v4793_v2 = vld [vmem:[#allocation17 + $0x490] sm:$0xff] }
 0x48d   : > { %7754 = vmatpush3.msra.mxu0 %v4821_v9  ;;  %7720 = vmatprep.subr.mxu1 %v4804_v13  ;;  %v4810_v27 = vld [vmem:[#allocation17 + $0x518] sm:$0xff]  ;;  %v4825_v9 = vld [vmem:[#allocation17 + $0x590] sm:$0xff] }
 0x48e   : > { %7755 = vmatprep.subr.mxu0 %v4836_v18  ;;  %7721 = vmatpush3.msra.mxu1 %v4788_v21  ;;  %v4777_v13 = vld [vmem:[#allocation17 + $0x410] sm:$0xff]  ;;  %v4792_v21 = vld [vmem:[#allocation17 + $0x488] sm:$0xff] }
 0x48f   : > { %7756 = vmatpush3.msra.mxu0 %v4820_v15  ;;  %7722 = vmatprep.subr.mxu1 %v4803_v19  ;;  %v4809_v18 = vld [vmem:[#allocation17 + $0x510] sm:$0xff]  ;;  %v4824_v15 = vld [vmem:[#allocation17 + $0x588] sm:$0xff] }
 0x490   : > { %7757 = vmatprep.subr.mxu0 %v4835_v1  ;;  %7723 = vmatpush3.msra.mxu1 %v4787_v41  ;;  %v4776_v19 = vld [vmem:[#allocation17 + $0x408] sm:$0xff]  ;;  %v4791_v41 = vld [vmem:[#allocation17 + $0x480] sm:$0xff] }
 0x491   : > { %7758 = vmatpush3.msra.mxu0 %v4819_v23  ;;  %7724 = vmatprep.subr.mxu1 %v4802_v30  ;;  %v4808_v1 = vld [vmem:[#allocation17 + $0x508] sm:$0xff]  ;;  %v4823_v23 = vld [vmem:[#allocation17 + $0x580] sm:$0xff] }
 0x492   : > { %7759 = vmatprep.subr.mxu0 %v4834_v26  ;;  %7725 = vmatpush3.msra.mxu1 %v4786_v60  ;;  %v4775_v30 = vld [vmem:[#allocation17 + $0x400] sm:$0xff]  ;;  %v5264_v60 = vrot.slane %v10257_v51, %v10168_v16 }
 0x493   : > { %7760 = vmatpush3.msra.mxu0 %v4818_v12  ;;  %7726 = vmatprep.subr.mxu1 %v4801_v62  ;;  %v4807_v26 = vld [vmem:[#allocation17 + $0x500] sm:$0xff]  ;;  %v4870_v12 = vld [vmem:[#allocation17 + $0x6f8] sm:$0xff]  ;;  %v5272_v62 = vrot.slane %v10257_v51, %v10178_v20 }
 0x494   : > { %7761 = vmatprep.subr.mxu0 %v4833_v3  ;;  %7727 = vmatpush3.msra.mxu1 %v4785_v37  ;;  %v4902_v3 = vld [vmem:[#allocation17 + $0x7f8] sm:$0xff] }
 0x495   : > { %7762 = vmatpush3.msra.mxu0 %v4817_v38  ;;  %7728 = vmatprep.subr.mxu1 %v4800_v40  ;;  %v4854_v37 = vld [vmem:[#allocation17 + $0x678] sm:$0xff]  ;;  %v5284_v40 = vrot.slane %v10257_v51, %v10199_v55 }
 0x496   : > { %7763 = vmatprep.subr.mxu0 %v4832_v25  ;;  %7729 = vmatpush3.msra.mxu1 %v4784_v33  ;;  %v4886_v38 = vld [vmem:[#allocation17 + $0x778] sm:$0xff]  ;;  %v4869_v25 = vld [vmem:[#allocation17 + $0x6f0] sm:$0xff]  ;;  %v5292_v33 = vrot.slane %v10257_v51, %v10215_v50  ;;  %v4964_v51 = vld [vmem:[#allocation17 + $0x9e8] sm:$0xff] }
 0x497   : > { %7764 = vmatpush3.msra.mxu0 %v4816_v35  ;;  %7730 = vmatprep.subr.mxu1 %v4799_v24  ;;  %v4901_v35 = vld [vmem:[#allocation17 + $0x7f0] sm:$0xff] }
 0x498   : > { %7765 = vmatprep.subr.mxu0 %v4831_v31  ;;  %7731 = vmatpush3.msra.mxu1 %v4783_v42  ;;  %v4853_v24 = vld [vmem:[#allocation17 + $0x670] sm:$0xff]  ;;  %v4868_v42 = vld [vmem:[#allocation17 + $0x6e8] sm:$0xff] }
 0x499   : > { %7766 = vmatpush3.msra.mxu0 %v4815_v47  ;;  %7732 = vmatprep.subr.mxu1 %v4798_v28  ;;  %v4885_v31 = vld [vmem:[#allocation17 + $0x770] sm:$0xff]  ;;  %v4900_v47 = vld [vmem:[#allocation17 + $0x7e8] sm:$0xff] }
 0x49a   : > { %7767 = vmatprep.subr.mxu0 %v4830_v53  ;;  %7733 = vmatpush3.msra.mxu1 %v4782_v4  ;;  %v4852_v28 = vld [vmem:[#allocation17 + $0x668] sm:$0xff]  ;;  %v4867_v4 = vld [vmem:[#allocation17 + $0x6e0] sm:$0xff] }
 0x49b   : > { %7768 = vmatpush3.msra.mxu0 %v4814_v46  ;;  %7734 = vmatprep.subr.mxu1 %v4797_v59  ;;  %v4884_v53 = vld [vmem:[#allocation17 + $0x768] sm:$0xff]  ;;  %v4899_v46 = vld [vmem:[#allocation17 + $0x7e0] sm:$0xff] }
 0x49c   : > { %7769 = vmatprep.subr.mxu0 %v4829_v48  ;;  %7735 = vmatpush3.msra.mxu1 %v4781_v17  ;;  %v4851_v59 = vld [vmem:[#allocation17 + $0x660] sm:$0xff]  ;;  %v4866_v17 = vld [vmem:[#allocation17 + $0x6d8] sm:$0xff] }
 0x49d   : > { %7770 = vmatpush3.msra.mxu0 %v4813_v52  ;;  %7736 = vmatprep.subr.mxu1 %v4796_v5  ;;  %v4883_v48 = vld [vmem:[#allocation17 + $0x760] sm:$0xff]  ;;  %v4898_v52 = vld [vmem:[#allocation17 + $0x7d8] sm:$0xff] }
 0x49e   : > { %7771 = vmatprep.subr.mxu0 %v4828_v7  ;;  %7737 = vmatpush3.msra.mxu1 %v4780_v54  ;;  %v4850_v5 = vld [vmem:[#allocation17 + $0x658] sm:$0xff]  ;;  %v4865_v54 = vld [vmem:[#allocation17 + $0x6d0] sm:$0xff] }
 0x49f   : > { %7772 = vmatpush3.msra.mxu0 %v4812_v29  ;;  %7738 = vmatprep.subr.mxu1 %v4795_v49  ;;  %v4882_v7 = vld [vmem:[#allocation17 + $0x758] sm:$0xff]  ;;  %v4897_v29 = vld [vmem:[#allocation17 + $0x7d0] sm:$0xff] }
 0x4a0   : > { %7773 = vmatprep.subr.mxu0 %v4827_v36  ;;  %7739 = vmatpush3.msra.mxu1 %v4779_v57  ;;  %v4849_v49 = vld [vmem:[#allocation17 + $0x650] sm:$0xff]  ;;  %v4864_v57 = vld [vmem:[#allocation17 + $0x6c8] sm:$0xff] }
 0x4a1   : > { %7774 = vmatpush3.msra.mxu0 %v4811_v22  ;;  %7740 = vmatprep.subr.mxu1 %v4794_v11  ;;  %v4881_v36 = vld [vmem:[#allocation17 + $0x750] sm:$0xff]  ;;  %v4896_v22 = vld [vmem:[#allocation17 + $0x7c8] sm:$0xff] }
 0x4a2   : > { %7775 = vmatprep.subr.mxu0 %v4826_v58  ;;  %7741 = vmatpush3.msra.mxu1 %v4778_v6  ;;  %v4848_v11 = vld [vmem:[#allocation17 + $0x648] sm:$0xff]  ;;  %v4863_v6 = vld [vmem:[#allocation17 + $0x6c0] sm:$0xff] }
 0x4a3   : > { %7776 = vmatpush3.msra.mxu0 %v4810_v27  ;;  %7742 = vmatprep.subr.mxu1 %v4793_v2  ;;  %v4880_v58 = vld [vmem:[#allocation17 + $0x748] sm:$0xff]  ;;  %v4895_v27 = vld [vmem:[#allocation17 + $0x7c0] sm:$0xff] }
 0x4a4   : > { %7777 = vmatprep.subr.mxu0 %v4825_v9  ;;  %7743 = vmatpush3.msra.mxu1 %v4777_v13  ;;  %v4847_v2 = vld [vmem:[#allocation17 + $0x640] sm:$0xff]  ;;  %v4862_v13 = vld [vmem:[#allocation17 + $0x6b8] sm:$0xff] }
 0x4a5   : > { %7778 = vmatpush3.msra.mxu0 %v4809_v18  ;;  %7744 = vmatprep.subr.mxu1 %v4792_v21  ;;  %v4879_v9 = vld [vmem:[#allocation17 + $0x740] sm:$0xff]  ;;  %v4894_v18 = vld [vmem:[#allocation17 + $0x7b8] sm:$0xff] }
 0x4a6   : > { %7779 = vmatprep.subr.mxu0 %v4824_v15  ;;  %7745 = vmatpush3.msra.mxu1 %v4776_v19  ;;  %v4846_v21 = vld [vmem:[#allocation17 + $0x638] sm:$0xff]  ;;  %v4861_v19 = vld [vmem:[#allocation17 + $0x6b0] sm:$0xff] }
 0x4a7   : > { %7780 = vmatpush3.msra.mxu0 %v4808_v1  ;;  %7746 = vmatprep.subr.mxu1 %v4791_v41  ;;  %v4878_v15 = vld [vmem:[#allocation17 + $0x738] sm:$0xff]  ;;  %v4893_v1 = vld [vmem:[#allocation17 + $0x7b0] sm:$0xff] }
 0x4a8   : > { %7781 = vmatprep.subr.mxu0 %v4823_v23  ;;  %7747 = vmatpush3.msra.mxu1 %v4775_v30  ;;  %v4845_v41 = vld [vmem:[#allocation17 + $0x630] sm:$0xff]  ;;  %v4860_v30 = vld [vmem:[#allocation17 + $0x6a8] sm:$0xff] }
 0x4a9   : > { %7782 = vmatpush3.msra.mxu0 %v4807_v26  ;;  %5754 = vmatmul.mubr.f32.vlgmr.msra.gmra.mxu1 %v5264_v60  ;;  %v4877_v23 = vld [vmem:[#allocation17 + $0x730] sm:$0xff]  ;;  %v4892_v26 = vld [vmem:[#allocation17 + $0x7a8] sm:$0xff] }
 0x4aa   : > { %5824 = vmatmul.mubr.f32.vlgmr.msra.gmra.mxu0 %v5272_v62  ;;  %7786 = vmatprep.subr.mxu1 %v4870_v12  ;;  %v4844_v60 = vld [vmem:[#allocation17 + $0x628] sm:$0xff]  ;;  %v4859_v62 = vld [vmem:[#allocation17 + $0x6a0] sm:$0xff] }
 0x4ab   : > { %7821 = vmatprep.subr.mxu0 %v4902_v3  ;;  %7787 = vmatpush3.msra.mxu1 %v4854_v37  ;;  %v4876_v12 = vld [vmem:[#allocation17 + $0x728] sm:$0xff]  ;;  %v4891_v3 = vld [vmem:[#allocation17 + $0x7a0] sm:$0xff] }
 0x4ac   : > { %5893 = vmatprep.mubr.f32.mxu1 %v5284_v40  ;;  %7822 = vmatpush3.msra.mxu0 %v4886_v38  ;;  %v4843_v37 = vld [vmem:[#allocation17 + $0x620] sm:$0xff]  ;;  %v4858_v40 = vld [vmem:[#allocation17 + $0x698] sm:$0xff] }
 0x4ad   : > { %5963 = vmatprep.mubr.f32.mxu0 %v5292_v33  ;;  %7788 = vmatprep.subr.mxu1 %v4869_v25  ;;  %v4875_v38 = vld [vmem:[#allocation17 + $0x720] sm:$0xff]  ;;  %v4890_v25 = vld [vmem:[#allocation17 + $0x798] sm:$0xff] }
 0x4ae   : > { %7823 = vmatprep.subr.mxu0 %v4901_v35  ;;  %7789 = vmatpush3.msra.mxu1 %v4853_v24  ;;  %v4842_v33 = vld [vmem:[#allocation17 + $0x618] sm:$0xff]  ;;  %v4857_v24 = vld [vmem:[#allocation17 + $0x690] sm:$0xff] }
 0x4af   : > { %7824 = vmatpush3.msra.mxu0 %v4885_v31  ;;  %7790 = vmatprep.subr.mxu1 %v4868_v42  ;;  %v4874_v35 = vld [vmem:[#allocation17 + $0x718] sm:$0xff]  ;;  %v4889_v31 = vld [vmem:[#allocation17 + $0x790] sm:$0xff] }
 0x4b0   : > { %7825 = vmatprep.subr.mxu0 %v4900_v47  ;;  %7791 = vmatpush3.msra.mxu1 %v4852_v28  ;;  %v4841_v42 = vld [vmem:[#allocation17 + $0x610] sm:$0xff]  ;;  %v4856_v28 = vld [vmem:[#allocation17 + $0x688] sm:$0xff] }
 0x4b1   : > { %7826 = vmatpush3.msra.mxu0 %v4884_v53  ;;  %7792 = vmatprep.subr.mxu1 %v4867_v4  ;;  %v4873_v47 = vld [vmem:[#allocation17 + $0x710] sm:$0xff]  ;;  %v4888_v53 = vld [vmem:[#allocation17 + $0x788] sm:$0xff] }
 0x4b2   : > { %7827 = vmatprep.subr.mxu0 %v4899_v46  ;;  %7793 = vmatpush3.msra.mxu1 %v4851_v59  ;;  %v4840_v4 = vld [vmem:[#allocation17 + $0x608] sm:$0xff]  ;;  %v4855_v59 = vld [vmem:[#allocation17 + $0x680] sm:$0xff] }
 0x4b3   : > { %7828 = vmatpush3.msra.mxu0 %v4883_v48  ;;  %7794 = vmatprep.subr.mxu1 %v4866_v17  ;;  %v4872_v46 = vld [vmem:[#allocation17 + $0x708] sm:$0xff]  ;;  %v4887_v48 = vld [vmem:[#allocation17 + $0x780] sm:$0xff] }
 0x4b4   : > { %7829 = vmatprep.subr.mxu0 %v4898_v52  ;;  %7795 = vmatpush3.msra.mxu1 %v4850_v5  ;;  %v4839_v17 = vld [vmem:[#allocation17 + $0x600] sm:$0xff]  ;;  %v4934_v5 = vld [vmem:[#allocation17 + $0x8f8] sm:$0xff] }
 0x4b5   : > { %7830 = vmatpush3.msra.mxu0 %v4882_v7  ;;  %7796 = vmatprep.subr.mxu1 %v4865_v54  ;;  %v4871_v52 = vld [vmem:[#allocation17 + $0x700] sm:$0xff]  ;;  %v4966_v7 = vld [vmem:[#allocation17 + $0x9f8] sm:$0xff] }
 0x4b6   : > { %7831 = vmatprep.subr.mxu0 %v4897_v29  ;;  %7797 = vmatpush3.msra.mxu1 %v4849_v49  ;;  %v4918_v54 = vld [vmem:[#allocation17 + $0x878] sm:$0xff]  ;;  %v5300_v49 = vrot.slane %v10279_v44, %v10142_v8 }
 0x4b7   : > { %7832 = vmatpush3.msra.mxu0 %v4881_v36  ;;  %7798 = vmatprep.subr.mxu1 %v4864_v57  ;;  %v4950_v29 = vld [vmem:[#allocation17 + $0x978] sm:$0xff]  ;;  %v4933_v36 = vld [vmem:[#allocation17 + $0x8f0] sm:$0xff]  ;;  %v5308_v57 = vrot.slane %v10279_v44, %v10165_v39 }
 0x4b8   : > { %7833 = vmatprep.subr.mxu0 %v4896_v22  ;;  %7799 = vmatpush3.msra.mxu1 %v4848_v11  ;;  %v4965_v22 = vld [vmem:[#allocation17 + $0x9f0] sm:$0xff] }
 0x4b9   : > { %7834 = vmatpush3.msra.mxu0 %v4880_v58  ;;  %7800 = vmatprep.subr.mxu1 %v4863_v6  ;;  %v4917_v11 = vld [vmem:[#allocation17 + $0x870] sm:$0xff]  ;;  %v4932_v58 = vld [vmem:[#allocation17 + $0x8e8] sm:$0xff] }
 0x4ba   : > { %7835 = vmatprep.subr.mxu0 %v4895_v27  ;;  %7801 = vmatpush3.msra.mxu1 %v4847_v2  ;;  %v4948_v6 = vld [vmem:[#allocation17 + $0x968] sm:$0xff]  ;;  %v4931_v27 = vld [vmem:[#allocation17 + $0x8e0] sm:$0xff] }
 0x4bb   : > { %7836 = vmatpush3.msra.mxu0 %v4879_v9  ;;  %7802 = vmatprep.subr.mxu1 %v4862_v13  ;;  %v4963_v2 = vld [vmem:[#allocation17 + $0x9e0] sm:$0xff] }
 0x4bc   : > { %7837 = vmatprep.subr.mxu0 %v4894_v18  ;;  %7803 = vmatpush3.msra.mxu1 %v4846_v21  ;;  %v4915_v9 = vld [vmem:[#allocation17 + $0x860] sm:$0xff]  ;;  %v4930_v18 = vld [vmem:[#allocation17 + $0x8d8] sm:$0xff] }
 0x4bd   : > { %7838 = vmatpush3.msra.mxu0 %v4878_v15  ;;  %7804 = vmatprep.subr.mxu1 %v4861_v19  ;;  %v4947_v13 = vld [vmem:[#allocation17 + $0x960] sm:$0xff]  ;;  %v4962_v21 = vld [vmem:[#allocation17 + $0x9d8] sm:$0xff] }
 0x4be   : > { %7839 = vmatprep.subr.mxu0 %v4893_v1  ;;  %7805 = vmatpush3.msra.mxu1 %v4845_v41  ;;  %v4914_v15 = vld [vmem:[#allocation17 + $0x858] sm:$0xff]  ;;  %v4929_v1 = vld [vmem:[#allocation17 + $0x8d0] sm:$0xff] }
 0x4bf   : > { %7840 = vmatpush3.msra.mxu0 %v4877_v23  ;;  %7806 = vmatprep.subr.mxu1 %v4860_v30  ;;  %v4946_v19 = vld [vmem:[#allocation17 + $0x958] sm:$0xff]  ;;  %v4961_v41 = vld [vmem:[#allocation17 + $0x9d0] sm:$0xff] }
 0x4c0   : > { %7841 = vmatprep.subr.mxu0 %v4892_v26  ;;  %7807 = vmatpush3.msra.mxu1 %v4844_v60  ;;  %v4913_v23 = vld [vmem:[#allocation17 + $0x850] sm:$0xff]  ;;  %v4928_v26 = vld [vmem:[#allocation17 + $0x8c8] sm:$0xff] }
 0x4c1   : > { %7842 = vmatpush3.msra.mxu0 %v4876_v12  ;;  %7808 = vmatprep.subr.mxu1 %v4859_v62  ;;  %v4945_v30 = vld [vmem:[#allocation17 + $0x950] sm:$0xff]  ;;  %v4960_v60 = vld [vmem:[#allocation17 + $0x9c8] sm:$0xff] }
 0x4c2   : > { %7843 = vmatprep.subr.mxu0 %v4891_v3  ;;  %7809 = vmatpush3.msra.mxu1 %v4843_v37  ;;  %v4912_v12 = vld [vmem:[#allocation17 + $0x848] sm:$0xff]  ;;  %v4927_v3 = vld [vmem:[#allocation17 + $0x8c0] sm:$0xff] }
 0x4c3   : > { %7844 = vmatpush3.msra.mxu0 %v4875_v38  ;;  %7810 = vmatprep.subr.mxu1 %v4858_v40  ;;  %v4944_v62 = vld [vmem:[#allocation17 + $0x948] sm:$0xff]  ;;  %v4959_v37 = vld [vmem:[#allocation17 + $0x9c0] sm:$0xff] }
 0x4c4   : > { %7845 = vmatprep.subr.mxu0 %v4890_v25  ;;  %7811 = vmatpush3.msra.mxu1 %v4842_v33  ;;  %v4911_v38 = vld [vmem:[#allocation17 + $0x840] sm:$0xff]  ;;  %v4926_v25 = vld [vmem:[#allocation17 + $0x8b8] sm:$0xff] }
 0x4c5   : > { %7846 = vmatpush3.msra.mxu0 %v4874_v35  ;;  %7812 = vmatprep.subr.mxu1 %v4857_v24  ;;  %v4943_v40 = vld [vmem:[#allocation17 + $0x940] sm:$0xff]  ;;  %v4958_v33 = vld [vmem:[#allocation17 + $0x9b8] sm:$0xff] }
 0x4c6   : > { %7847 = vmatprep.subr.mxu0 %v4889_v31  ;;  %7813 = vmatpush3.msra.mxu1 %v4841_v42  ;;  %v4910_v35 = vld [vmem:[#allocation17 + $0x838] sm:$0xff]  ;;  %v4925_v31 = vld [vmem:[#allocation17 + $0x8b0] sm:$0xff] }
 0x4c7   : > { %7848 = vmatpush3.msra.mxu0 %v4873_v47  ;;  %7814 = vmatprep.subr.mxu1 %v4856_v28  ;;  %v4942_v24 = vld [vmem:[#allocation17 + $0x938] sm:$0xff]  ;;  %v4957_v42 = vld [vmem:[#allocation17 + $0x9b0] sm:$0xff] }
 0x4c8   : > { %7849 = vmatprep.subr.mxu0 %v4888_v53  ;;  %7815 = vmatpush3.msra.mxu1 %v4840_v4  ;;  %v4909_v47 = vld [vmem:[#allocation17 + $0x830] sm:$0xff]  ;;  %v4924_v53 = vld [vmem:[#allocation17 + $0x8a8] sm:$0xff] }
 0x4c9   : > { %7850 = vmatpush3.msra.mxu0 %v4872_v46  ;;  %7816 = vmatprep.subr.mxu1 %v4855_v59  ;;  %v4941_v28 = vld [vmem:[#allocation17 + $0x930] sm:$0xff]  ;;  %v4956_v4 = vld [vmem:[#allocation17 + $0x9a8] sm:$0xff] }
 0x4ca   : > { %7851 = vmatprep.subr.mxu0 %v4887_v48  ;;  %7817 = vmatpush3.msra.mxu1 %v4839_v17  ;;  %v4908_v46 = vld [vmem:[#allocation17 + $0x828] sm:$0xff]  ;;  %v4923_v48 = vld [vmem:[#allocation17 + $0x8a0] sm:$0xff] }
 0x4cb   : > { %7852 = vmatpush3.msra.mxu0 %v4871_v52  ;;  %5894 = vmatmul.mubr.f32.vlgmr.msra.gmra.mxu1 %v5280_v45  ;;  %v4949_v45 = vld [vmem:[#allocation17 + $0x970] sm:$0xff]  ;;  %v4940_v59 = vld [vmem:[#allocation17 + $0x928] sm:$0xff]  ;;  %v4955_v17 = vld [vmem:[#allocation17 + $0x9a0] sm:$0xff] }
 0x4cc   : > { %5964 = vmatmul.mubr.f32.vlgmr.msra.gmra.mxu0 %v5288_v32  ;;  %7856 = vmatprep.subr.mxu1 %v4934_v5  ;;  %v4916_v32 = vld [vmem:[#allocation17 + $0x868] sm:$0xff]  ;;  %v4907_v52 = vld [vmem:[#allocation17 + $0x820] sm:$0xff] }
 0x4cd   : > { %7891 = vmatprep.subr.mxu0 %v4966_v7  ;;  %7857 = vmatpush3.msra.mxu1 %v4918_v54  ;;  %v4939_v5 = vld [vmem:[#allocation17 + $0x920] sm:$0xff]  ;;  %v4922_v7 = vld [vmem:[#allocation17 + $0x898] sm:$0xff] }
 0x4ce   : > { %6033 = vmatprep.mubr.f32.mxu1 %v5300_v49  ;;  %7892 = vmatpush3.msra.mxu0 %v4950_v29  ;;  %v4954_v54 = vld [vmem:[#allocation17 + $0x998] sm:$0xff] }
 0x4cf   : > { %6103 = vmatprep.mubr.f32.mxu0 %v5308_v57  ;;  %7858 = vmatprep.subr.mxu1 %v4933_v36  ;;  %v4906_v29 = vld [vmem:[#allocation17 + $0x818] sm:$0xff]  ;;  %v4921_v36 = vld [vmem:[#allocation17 + $0x890] sm:$0xff] }
 0x4d0   : > { %7893 = vmatprep.subr.mxu0 %v4965_v22  ;;  %7859 = vmatpush3.msra.mxu1 %v4917_v11  ;;  %v4938_v49 = vld [vmem:[#allocation17 + $0x918] sm:$0xff]  ;;  %v4953_v57 = vld [vmem:[#allocation17 + $0x990] sm:$0xff] }
 0x4d1   : > { %7894 = vmatpush3.msra.mxu0 %v4949_v45  ;;  %7860 = vmatprep.subr.mxu1 %v4932_v58  ;;  %v4905_v22 = vld [vmem:[#allocation17 + $0x810] sm:$0xff]  ;;  %v4920_v45 = vld [vmem:[#allocation17 + $0x888] sm:$0xff] }
 0x4d2   : > { %7895 = vmatprep.subr.mxu0 %v4964_v51  ;;  %7861 = vmatpush3.msra.mxu1 %v4916_v32  ;;  %v4937_v11 = vld [vmem:[#allocation17 + $0x910] sm:$0xff]  ;;  %v4952_v58 = vld [vmem:[#allocation17 + $0x988] sm:$0xff] }
 0x4d3   : > { %7896 = vmatpush3.msra.mxu0 %v4948_v6  ;;  %7862 = vmatprep.subr.mxu1 %v4931_v27  ;;  %v4904_v51 = vld [vmem:[#allocation17 + $0x808] sm:$0xff]  ;;  %v4919_v6 = vld [vmem:[#allocation17 + $0x880] sm:$0xff] }
 0x4d4   : > { %7897 = vmatprep.subr.mxu0 %v4963_v2  ;;  %7863 = vmatpush3.msra.mxu1 %v4915_v9  ;;  %v4936_v32 = vld [vmem:[#allocation17 + $0x908] sm:$0xff]  ;;  %v4951_v27 = vld [vmem:[#allocation17 + $0x980] sm:$0xff] }
 0x4d5   : > { %7898 = vmatpush3.msra.mxu0 %v4947_v13  ;;  %7864 = vmatprep.subr.mxu1 %v4930_v18  ;;  %v4903_v2 = vld [vmem:[#allocation17 + $0x800] sm:$0xff]  ;;  %v5296_v13 = vrot.slane %v10279_v44, %v10168_v16  ;;  %v4998_v18 = vld [vmem:[#allocation17 + $0xaf8] sm:$0xff]  ;;  %v5092_v44 = vld [vmem:[#allocation17 + $0xde8] sm:$0xff] }
 0x4d6   : > { %7899 = vmatprep.subr.mxu0 %v4962_v21  ;;  %7865 = vmatpush3.msra.mxu1 %v4914_v15  ;;  %v4935_v9 = vld [vmem:[#allocation17 + $0x900] sm:$0xff] }
 0x4d7   : > { %7900 = vmatpush3.msra.mxu0 %v4946_v19  ;;  %7866 = vmatprep.subr.mxu1 %v4929_v1  ;;  %v8766_v21 = vld [vmem:[#allocation5 + $0x10] sm:$0xff]  ;;  %v5030_v19 = vld [vmem:[#allocation17 + $0xbf8] sm:$0xff] }
 0x4d8   : > { %7901 = vmatprep.subr.mxu0 %v4961_v41  ;;  %7867 = vmatpush3.msra.mxu1 %v4913_v23  ;;  %v5304_v15 = vrot.slane %v8766_v21, %v10178_v20  ;;  %v4982_v1 = vld [vmem:[#allocation17 + $0xa78] sm:$0xff]  ;;  %v5316_v23 = vrot.slane %v8766_v21, %v10199_v55 }
 0x4d9   : > { %7902 = vmatpush3.msra.mxu0 %v4945_v30  ;;  %7868 = vmatprep.subr.mxu1 %v4928_v26  ;;  %v5014_v41 = vld [vmem:[#allocation17 + $0xb78] sm:$0xff]  ;;  %v4997_v30 = vld [vmem:[#allocation17 + $0xaf0] sm:$0xff]  ;;  %v5324_v26 = vrot.slane %v8766_v21, %v10215_v50  ;;  %v4971_v21 = vld [vmem:[#allocation17 + $0xa20] sm:$0xff] }
 0x4da   : > { %7903 = vmatprep.subr.mxu0 %v4960_v60  ;;  %7869 = vmatpush3.msra.mxu1 %v4912_v12  ;;  %v5029_v60 = vld [vmem:[#allocation17 + $0xbf0] sm:$0xff] }
 0x4db   : > { %7904 = vmatpush3.msra.mxu0 %v4944_v62  ;;  %7870 = vmatprep.subr.mxu1 %v4927_v3  ;;  %v4981_v12 = vld [vmem:[#allocation17 + $0xa70] sm:$0xff]  ;;  %v4996_v3 = vld [vmem:[#allocation17 + $0xae8] sm:$0xff] }
 0x4dc   : > { %7905 = vmatprep.subr.mxu0 %v4959_v37  ;;  %7871 = vmatpush3.msra.mxu1 %v4911_v38  ;;  %v5013_v62 = vld [vmem:[#allocation17 + $0xb70] sm:$0xff]  ;;  %v5028_v37 = vld [vmem:[#allocation17 + $0xbe8] sm:$0xff] }
 0x4dd   : > { %7906 = vmatpush3.msra.mxu0 %v4943_v40  ;;  %7872 = vmatprep.subr.mxu1 %v4926_v25  ;;  %v4980_v38 = vld [vmem:[#allocation17 + $0xa68] sm:$0xff]  ;;  %v4995_v25 = vld [vmem:[#allocation17 + $0xae0] sm:$0xff] }
 0x4de   : > { %7907 = vmatprep.subr.mxu0 %v4958_v33  ;;  %7873 = vmatpush3.msra.mxu1 %v4910_v35  ;;  %v5012_v40 = vld [vmem:[#allocation17 + $0xb68] sm:$0xff]  ;;  %v5027_v33 = vld [vmem:[#allocation17 + $0xbe0] sm:$0xff] }
 0x4df   : > { %7908 = vmatpush3.msra.mxu0 %v4942_v24  ;;  %7874 = vmatprep.subr.mxu1 %v4925_v31  ;;  %v4979_v35 = vld [vmem:[#allocation17 + $0xa60] sm:$0xff]  ;;  %v4994_v31 = vld [vmem:[#allocation17 + $0xad8] sm:$0xff] }
 0x4e0   : > { %7909 = vmatprep.subr.mxu0 %v4957_v42  ;;  %7875 = vmatpush3.msra.mxu1 %v4909_v47  ;;  %v5011_v24 = vld [vmem:[#allocation17 + $0xb60] sm:$0xff]  ;;  %v5026_v42 = vld [vmem:[#allocation17 + $0xbd8] sm:$0xff] }
 0x4e1   : > { %7910 = vmatpush3.msra.mxu0 %v4941_v28  ;;  %7876 = vmatprep.subr.mxu1 %v4924_v53  ;;  %v4978_v47 = vld [vmem:[#allocation17 + $0xa58] sm:$0xff]  ;;  %v4993_v53 = vld [vmem:[#allocation17 + $0xad0] sm:$0xff] }
 0x4e2   : > { %7911 = vmatprep.subr.mxu0 %v4956_v4  ;;  %7877 = vmatpush3.msra.mxu1 %v4908_v46  ;;  %v5010_v28 = vld [vmem:[#allocation17 + $0xb58] sm:$0xff]  ;;  %v5025_v4 = vld [vmem:[#allocation17 + $0xbd0] sm:$0xff] }
 0x4e3   : > { %7912 = vmatpush3.msra.mxu0 %v4940_v59  ;;  %7878 = vmatprep.subr.mxu1 %v4923_v48  ;;  %v4977_v46 = vld [vmem:[#allocation17 + $0xa50] sm:$0xff]  ;;  %v4992_v48 = vld [vmem:[#allocation17 + $0xac8] sm:$0xff] }
 0x4e4   : > { %7913 = vmatprep.subr.mxu0 %v4955_v17  ;;  %7879 = vmatpush3.msra.mxu1 %v4907_v52  ;;  %v5009_v59 = vld [vmem:[#allocation17 + $0xb50] sm:$0xff]  ;;  %v5024_v17 = vld [vmem:[#allocation17 + $0xbc8] sm:$0xff] }
 0x4e5   : > { %7914 = vmatpush3.msra.mxu0 %v4939_v5  ;;  %7880 = vmatprep.subr.mxu1 %v4922_v7  ;;  %v4976_v52 = vld [vmem:[#allocation17 + $0xa48] sm:$0xff]  ;;  %v4991_v7 = vld [vmem:[#allocation17 + $0xac0] sm:$0xff] }
 0x4e6   : > { %7915 = vmatprep.subr.mxu0 %v4954_v54  ;;  %7881 = vmatpush3.msra.mxu1 %v4906_v29  ;;  %v5008_v5 = vld [vmem:[#allocation17 + $0xb48] sm:$0xff]  ;;  %v5023_v54 = vld [vmem:[#allocation17 + $0xbc0] sm:$0xff] }
 0x4e7   : > { %7916 = vmatpush3.msra.mxu0 %v4938_v49  ;;  %7882 = vmatprep.subr.mxu1 %v4921_v36  ;;  %v4975_v29 = vld [vmem:[#allocation17 + $0xa40] sm:$0xff]  ;;  %v4990_v36 = vld [vmem:[#allocation17 + $0xab8] sm:$0xff] }
 0x4e8   : > { %7917 = vmatprep.subr.mxu0 %v4953_v57  ;;  %7883 = vmatpush3.msra.mxu1 %v4905_v22  ;;  %v5007_v49 = vld [vmem:[#allocation17 + $0xb40] sm:$0xff]  ;;  %v5022_v57 = vld [vmem:[#allocation17 + $0xbb8] sm:$0xff] }
 0x4e9   : > { %7918 = vmatpush3.msra.mxu0 %v4937_v11  ;;  %7884 = vmatprep.subr.mxu1 %v4920_v45  ;;  %v4974_v22 = vld [vmem:[#allocation17 + $0xa38] sm:$0xff]  ;;  %v4989_v45 = vld [vmem:[#allocation17 + $0xab0] sm:$0xff] }
 0x4ea   : > { %7919 = vmatprep.subr.mxu0 %v4952_v58  ;;  %7885 = vmatpush3.msra.mxu1 %v4904_v51  ;;  %v5006_v11 = vld [vmem:[#allocation17 + $0xb38] sm:$0xff]  ;;  %v5021_v58 = vld [vmem:[#allocation17 + $0xbb0] sm:$0xff] }
 0x4eb   : > { %7920 = vmatpush3.msra.mxu0 %v4936_v32  ;;  %7886 = vmatprep.subr.mxu1 %v4919_v6  ;;  %v4973_v51 = vld [vmem:[#allocation17 + $0xa30] sm:$0xff]  ;;  %v4988_v6 = vld [vmem:[#allocation17 + $0xaa8] sm:$0xff] }
 0x4ec   : > { %7921 = vmatprep.subr.mxu0 %v4951_v27  ;;  %7887 = vmatpush3.msra.mxu1 %v4903_v2  ;;  %v5005_v32 = vld [vmem:[#allocation17 + $0xb30] sm:$0xff]  ;;  %v5020_v27 = vld [vmem:[#allocation17 + $0xba8] sm:$0xff] }
 0x4ed   : > { %7922 = vmatpush3.msra.mxu0 %v4935_v9  ;;  %6034 = vmatmul.mubr.f32.vlgmr.msra.gmra.mxu1 %v5296_v13  ;;  %v4972_v2 = vld [vmem:[#allocation17 + $0xa28] sm:$0xff]  ;;  %v4987_v13 = vld [vmem:[#allocation17 + $0xaa0] sm:$0xff] }
 0x4ee   : > { %6104 = vmatmul.mubr.f32.vlgmr.msra.gmra.mxu0 %v5304_v15  ;;  %7926 = vmatprep.subr.mxu1 %v4998_v18  ;;  %v5004_v9 = vld [vmem:[#allocation17 + $0xb28] sm:$0xff]  ;;  %v5019_v18 = vld [vmem:[#allocation17 + $0xba0] sm:$0xff] }
 0x4ef   : > { %7961 = vmatprep.subr.mxu0 %v5030_v19  ;;  %7927 = vmatpush3.msra.mxu1 %v4982_v1  ;;  %v5003_v15 = vld [vmem:[#allocation17 + $0xb20] sm:$0xff]  ;;  %v4986_v19 = vld [vmem:[#allocation17 + $0xa98] sm:$0xff] }
 0x4f0   : > { %6173 = vmatprep.mubr.f32.mxu1 %v5316_v23  ;;  %7962 = vmatpush3.msra.mxu0 %v5014_v41  ;;  %v5018_v1 = vld [vmem:[#allocation17 + $0xb98] sm:$0xff] }
 0x4f1   : > { %6243 = vmatprep.mubr.f32.mxu0 %v5324_v26  ;;  %7928 = vmatprep.subr.mxu1 %v4997_v30  ;;  %v4970_v41 = vld [vmem:[#allocation17 + $0xa18] sm:$0xff]  ;;  %v4985_v30 = vld [vmem:[#allocation17 + $0xa90] sm:$0xff] }
 0x4f2   : > { %7963 = vmatprep.subr.mxu0 %v5029_v60  ;;  %7929 = vmatpush3.msra.mxu1 %v4981_v12  ;;  %v5002_v23 = vld [vmem:[#allocation17 + $0xb18] sm:$0xff]  ;;  %v5017_v26 = vld [vmem:[#allocation17 + $0xb90] sm:$0xff] }
 0x4f3   : > { %7964 = vmatpush3.msra.mxu0 %v5013_v62  ;;  %7930 = vmatprep.subr.mxu1 %v4996_v3  ;;  %v4969_v60 = vld [vmem:[#allocation17 + $0xa10] sm:$0xff]  ;;  %v4984_v62 = vld [vmem:[#allocation17 + $0xa88] sm:$0xff] }
 0x4f4   : > { %7965 = vmatprep.subr.mxu0 %v5028_v37  ;;  %7931 = vmatpush3.msra.mxu1 %v4980_v38  ;;  %v5001_v12 = vld [vmem:[#allocation17 + $0xb10] sm:$0xff]  ;;  %v5016_v3 = vld [vmem:[#allocation17 + $0xb88] sm:$0xff] }
 0x4f5   : > { %7966 = vmatpush3.msra.mxu0 %v5012_v40  ;;  %7932 = vmatprep.subr.mxu1 %v4995_v25  ;;  %v4968_v37 = vld [vmem:[#allocation17 + $0xa08] sm:$0xff]  ;;  %v4983_v40 = vld [vmem:[#allocation17 + $0xa80] sm:$0xff] }
 0x4f6   : > { %7967 = vmatprep.subr.mxu0 %v5027_v33  ;;  %7933 = vmatpush3.msra.mxu1 %v4979_v35  ;;  %v5000_v38 = vld [vmem:[#allocation17 + $0xb08] sm:$0xff]  ;;  %v5015_v25 = vld [vmem:[#allocation17 + $0xb80] sm:$0xff] }
 0x4f7   : > { %7968 = vmatpush3.msra.mxu0 %v5011_v24  ;;  %7934 = vmatprep.subr.mxu1 %v4994_v31  ;;  %v4967_v33 = vld [vmem:[#allocation17 + $0xa00] sm:$0xff]  ;;  %v5062_v24 = vld [vmem:[#allocation17 + $0xcf8] sm:$0xff] }
 0x4f8   : > { %7969 = vmatprep.subr.mxu0 %v5026_v42  ;;  %7935 = vmatpush3.msra.mxu1 %v4978_v47  ;;  %v4999_v35 = vld [vmem:[#allocation17 + $0xb00] sm:$0xff]  ;;  %v5094_v31 = vld [vmem:[#allocation17 + $0xdf8] sm:$0xff] }
 0x4f9   : > { %7970 = vmatpush3.msra.mxu0 %v5010_v28  ;;  %7936 = vmatprep.subr.mxu1 %v4993_v53  ;;  %v5046_v42 = vld [vmem:[#allocation17 + $0xc78] sm:$0xff]  ;;  %v10328_v28 = vld [vmem:[#allocation5 + $0x18] sm:$0xff] }
 0x4fa   : > { %7971 = vmatprep.subr.mxu0 %v5025_v4  ;;  %7937 = vmatpush3.msra.mxu1 %v4977_v46  ;;  %v5078_v47 = vld [vmem:[#allocation17 + $0xd78] sm:$0xff]  ;;  %v5332_v53 = vrot.slane %v10328_v28, %v10142_v8  ;;  %v5061_v4 = vld [vmem:[#allocation17 + $0xcf0] sm:$0xff]  ;;  %v5340_v46 = vrot.slane %v10328_v28, %v10165_v39 }
 0x4fb   : > { %7972 = vmatpush3.msra.mxu0 %v5009_v59  ;;  %7938 = vmatprep.subr.mxu1 %v4992_v48  ;;  %v5093_v59 = vld [vmem:[#allocation17 + $0xdf0] sm:$0xff] }
 0x4fc   : > { %7973 = vmatprep.subr.mxu0 %v5024_v17  ;;  %7939 = vmatpush3.msra.mxu1 %v4976_v52  ;;  %v5045_v48 = vld [vmem:[#allocation17 + $0xc70] sm:$0xff]  ;;  %v5060_v17 = vld [vmem:[#allocation17 + $0xce8] sm:$0xff] }
 0x4fd   : > { %7974 = vmatpush3.msra.mxu0 %v5008_v5  ;;  %7940 = vmatprep.subr.mxu1 %v4991_v7  ;;  %v5076_v52 = vld [vmem:[#allocation17 + $0xd68] sm:$0xff]  ;;  %v5059_v5 = vld [vmem:[#allocation17 + $0xce0] sm:$0xff] }
 0x4fe   : > { %7975 = vmatprep.subr.mxu0 %v5023_v54  ;;  %7941 = vmatpush3.msra.mxu1 %v4975_v29  ;;  %v5091_v7 = vld [vmem:[#allocation17 + $0xde0] sm:$0xff] }
 0x4ff   : > { %7976 = vmatpush3.msra.mxu0 %v5007_v49  ;;  %7942 = vmatprep.subr.mxu1 %v4990_v36  ;;  %v5043_v54 = vld [vmem:[#allocation17 + $0xc60] sm:$0xff]  ;;  %v5058_v49 = vld [vmem:[#allocation17 + $0xcd8] sm:$0xff] }
 0x500   : > { %7977 = vmatprep.subr.mxu0 %v5022_v57  ;;  %7943 = vmatpush3.msra.mxu1 %v4974_v22  ;;  %v5075_v29 = vld [vmem:[#allocation17 + $0xd60] sm:$0xff]  ;;  %v5090_v36 = vld [vmem:[#allocation17 + $0xdd8] sm:$0xff] }
 0x501   : > { %7978 = vmatpush3.msra.mxu0 %v5006_v11  ;;  %7944 = vmatprep.subr.mxu1 %v4989_v45  ;;  %v5042_v57 = vld [vmem:[#allocation17 + $0xc58] sm:$0xff]  ;;  %v5057_v11 = vld [vmem:[#allocation17 + $0xcd0] sm:$0xff] }
 0x502   : > { %7979 = vmatprep.subr.mxu0 %v5021_v58  ;;  %7945 = vmatpush3.msra.mxu1 %v4973_v51  ;;  %v5074_v22 = vld [vmem:[#allocation17 + $0xd58] sm:$0xff]  ;;  %v5089_v45 = vld [vmem:[#allocation17 + $0xdd0] sm:$0xff] }
 0x503   : > { %7980 = vmatpush3.msra.mxu0 %v5005_v32  ;;  %7946 = vmatprep.subr.mxu1 %v4988_v6  ;;  %v5041_v58 = vld [vmem:[#allocation17 + $0xc50] sm:$0xff]  ;;  %v5056_v32 = vld [vmem:[#allocation17 + $0xcc8] sm:$0xff] }
 0x504   : > { %7981 = vmatprep.subr.mxu0 %v5020_v27  ;;  %7947 = vmatpush3.msra.mxu1 %v4972_v2  ;;  %v5073_v51 = vld [vmem:[#allocation17 + $0xd50] sm:$0xff]  ;;  %v5088_v6 = vld [vmem:[#allocation17 + $0xdc8] sm:$0xff] }
 0x505   : > { %7982 = vmatpush3.msra.mxu0 %v5004_v9  ;;  %7948 = vmatprep.subr.mxu1 %v4987_v13  ;;  %v5040_v27 = vld [vmem:[#allocation17 + $0xc48] sm:$0xff]  ;;  %v5055_v9 = vld [vmem:[#allocation17 + $0xcc0] sm:$0xff] }
 0x506   : > { %7983 = vmatprep.subr.mxu0 %v5019_v18  ;;  %7949 = vmatpush3.msra.mxu1 %v4971_v21  ;;  %v5072_v2 = vld [vmem:[#allocation17 + $0xd48] sm:$0xff]  ;;  %v5087_v13 = vld [vmem:[#allocation17 + $0xdc0] sm:$0xff] }
 0x507   : > { %7984 = vmatpush3.msra.mxu0 %v5003_v15  ;;  %7950 = vmatprep.subr.mxu1 %v4986_v19  ;;  %v5039_v18 = vld [vmem:[#allocation17 + $0xc40] sm:$0xff]  ;;  %v5054_v15 = vld [vmem:[#allocation17 + $0xcb8] sm:$0xff] }
 0x508   : > { %7985 = vmatprep.subr.mxu0 %v5018_v1  ;;  %7951 = vmatpush3.msra.mxu1 %v4970_v41  ;;  %v5071_v21 = vld [vmem:[#allocation17 + $0xd40] sm:$0xff]  ;;  %v5086_v19 = vld [vmem:[#allocation17 + $0xdb8] sm:$0xff] }
 0x509   : > { %7986 = vmatpush3.msra.mxu0 %v5002_v23  ;;  %7952 = vmatprep.subr.mxu1 %v4985_v30  ;;  %v5038_v1 = vld [vmem:[#allocation17 + $0xc38] sm:$0xff]  ;;  %v5053_v23 = vld [vmem:[#allocation17 + $0xcb0] sm:$0xff] }
 0x50a   : > { %7987 = vmatprep.subr.mxu0 %v5017_v26  ;;  %7953 = vmatpush3.msra.mxu1 %v4969_v60  ;;  %v5070_v41 = vld [vmem:[#allocation17 + $0xd38] sm:$0xff]  ;;  %v5085_v30 = vld [vmem:[#allocation17 + $0xdb0] sm:$0xff] }
 0x50b   : > { %7988 = vmatpush3.msra.mxu0 %v5001_v12  ;;  %7954 = vmatprep.subr.mxu1 %v4984_v62  ;;  %v5037_v26 = vld [vmem:[#allocation17 + $0xc30] sm:$0xff]  ;;  %v5052_v12 = vld [vmem:[#allocation17 + $0xca8] sm:$0xff] }
 0x50c   : > { %7989 = vmatprep.subr.mxu0 %v5016_v3  ;;  %7955 = vmatpush3.msra.mxu1 %v4968_v37  ;;  %v5069_v60 = vld [vmem:[#allocation17 + $0xd30] sm:$0xff]  ;;  %v5084_v62 = vld [vmem:[#allocation17 + $0xda8] sm:$0xff] }
 0x50d   : > { %7990 = vmatpush3.msra.mxu0 %v5000_v38  ;;  %7956 = vmatprep.subr.mxu1 %v4983_v40  ;;  %v5036_v3 = vld [vmem:[#allocation17 + $0xc28] sm:$0xff]  ;;  %v5051_v38 = vld [vmem:[#allocation17 + $0xca0] sm:$0xff] }
 0x50e   : > { %7991 = vmatprep.subr.mxu0 %v5015_v25  ;;  %7957 = vmatpush3.msra.mxu1 %v4967_v33  ;;  %v5068_v37 = vld [vmem:[#allocation17 + $0xd28] sm:$0xff]  ;;  %v5083_v40 = vld [vmem:[#allocation17 + $0xda0] sm:$0xff] }
 0x50f   : > { %7992 = vmatpush3.msra.mxu0 %v4999_v35  ;;  %6174 = vmatmul.mubr.f32.vlgmr.msra.gmra.mxu1 %v5312_v56  ;;  %v5077_v56 = vld [vmem:[#allocation17 + $0xd70] sm:$0xff]  ;;  %v5035_v25 = vld [vmem:[#allocation17 + $0xc20] sm:$0xff]  ;;  %v5050_v35 = vld [vmem:[#allocation17 + $0xc98] sm:$0xff] }
 0x510   : > { %6244 = vmatmul.mubr.f32.vlgmr.msra.gmra.mxu0 %v5320_v61  ;;  %7996 = vmatprep.subr.mxu1 %v5062_v24  ;;  %v5044_v61 = vld [vmem:[#allocation17 + $0xc68] sm:$0xff]  ;;  %v5067_v33 = vld [vmem:[#allocation17 + $0xd20] sm:$0xff]  ;;  %v5082_v24 = vld [vmem:[#allocation17 + $0xd98] sm:$0xff] }
 0x511   : > { %8031 = vmatprep.subr.mxu0 %v5094_v31  ;;  %7997 = vmatpush3.msra.mxu1 %v5046_v42  ;;  %v5034_v31 = vld [vmem:[#allocation17 + $0xc18] sm:$0xff] }
 0x512   : > { %6313 = vmatprep.mubr.f32.mxu1 %v5332_v53  ;;  %8032 = vmatpush3.msra.mxu0 %v5078_v47  ;;  %v5066_v42 = vld [vmem:[#allocation17 + $0xd18] sm:$0xff]  ;;  %v5049_v47 = vld [vmem:[#allocation17 + $0xc90] sm:$0xff] }
 0x513   : > { %6383 = vmatprep.mubr.f32.mxu0 %v5340_v46  ;;  %7998 = vmatprep.subr.mxu1 %v5061_v4  ;;  %v5081_v53 = vld [vmem:[#allocation17 + $0xd90] sm:$0xff] }
 0x514   : > { %8033 = vmatprep.subr.mxu0 %v5093_v59  ;;  %7999 = vmatpush3.msra.mxu1 %v5045_v48  ;;  %v5033_v4 = vld [vmem:[#allocation17 + $0xc10] sm:$0xff]  ;;  %v5048_v59 = vld [vmem:[#allocation17 + $0xc88] sm:$0xff] }
 0x515   : > { %8034 = vmatpush3.msra.mxu0 %v5077_v56  ;;  %8000 = vmatprep.subr.mxu1 %v5060_v17  ;;  %v5065_v46 = vld [vmem:[#allocation17 + $0xd10] sm:$0xff]  ;;  %v5080_v48 = vld [vmem:[#allocation17 + $0xd88] sm:$0xff] }
 0x516   : > { %8035 = vmatprep.subr.mxu0 %v5092_v44  ;;  %8001 = vmatpush3.msra.mxu1 %v5044_v61  ;;  %v5032_v56 = vld [vmem:[#allocation17 + $0xc08] sm:$0xff]  ;;  %v5047_v44 = vld [vmem:[#allocation17 + $0xc80] sm:$0xff] }
 0x517   : > { %8036 = vmatpush3.msra.mxu0 %v5076_v52  ;;  %8002 = vmatprep.subr.mxu1 %v5059_v5  ;;  %v5064_v17 = vld [vmem:[#allocation17 + $0xd08] sm:$0xff]  ;;  %v5079_v61 = vld [vmem:[#allocation17 + $0xd80] sm:$0xff] }
 0x518   : > { %8037 = vmatprep.subr.mxu0 %v5091_v7  ;;  %8003 = vmatpush3.msra.mxu1 %v5043_v54  ;;  %v5031_v52 = vld [vmem:[#allocation17 + $0xc00] sm:$0xff]  ;;  %v5328_v7 = vrot.slane %v10328_v28, %v10168_v16  ;;  %v5126_v54 = vld [vmem:[#allocation17 + $0xef8] sm:$0xff] }
 0x519   : > { %8038 = vmatpush3.msra.mxu0 %v5075_v29  ;;  %8004 = vmatprep.subr.mxu1 %v5058_v49  ;;  %v5063_v5 = vld [vmem:[#allocation17 + $0xd00] sm:$0xff]  ;;  %v5336_v29 = vrot.slane %v10328_v28, %v10178_v20  ;;  %v5158_v49 = vld [vmem:[#allocation17 + $0xff8] sm:$0xff] }
 0x51a   : > { %8039 = vmatprep.subr.mxu0 %v5090_v36  ;;  %8005 = vmatpush3.msra.mxu1 %v5042_v57  ;;  %v5110_v36 = vld [vmem:[#allocation17 + $0xe78] sm:$0xff] }
 0x51b   : > { %8040 = vmatpush3.msra.mxu0 %v5074_v22  ;;  %8006 = vmatprep.subr.mxu1 %v5057_v11  ;;  %v5142_v57 = vld [vmem:[#allocation17 + $0xf78] sm:$0xff]  ;;  %v5348_v22 = vrot.slane %v10328_v28, %v10199_v55  ;;  %v5125_v11 = vld [vmem:[#allocation17 + $0xef0] sm:$0xff]  ;;  %v5123_v55 = vld [vmem:[#allocation17 + $0xee0] sm:$0xff] }
 0x51c   : > { %8041 = vmatprep.subr.mxu0 %v5089_v45  ;;  %8007 = vmatpush3.msra.mxu1 %v5041_v58  ;;  %v5356_v45 = vrot.slane %v10328_v28, %v10215_v50  ;;  %v5157_v58 = vld [vmem:[#allocation17 + $0xff0] sm:$0xff]  ;;  %v5139_v50 = vld [vmem:[#allocation17 + $0xf60] sm:$0xff]  ;;  %v5122_v28 = vld [vmem:[#allocation17 + $0xed8] sm:$0xff] }
 0x51d   : > { %8042 = vmatpush3.msra.mxu0 %v5073_v51  ;;  %8008 = vmatprep.subr.mxu1 %v5056_v32  ;;  %v5109_v51 = vld [vmem:[#allocation17 + $0xe70] sm:$0xff] }
 0x51e   : > { %8043 = vmatprep.subr.mxu0 %v5088_v6  ;;  %8009 = vmatpush3.msra.mxu1 %v5040_v27  ;;  %v5141_v32 = vld [vmem:[#allocation17 + $0xf70] sm:$0xff]  ;;  %v5124_v6 = vld [vmem:[#allocation17 + $0xee8] sm:$0xff] }
 0x51f   : > { %8044 = vmatpush3.msra.mxu0 %v5072_v2  ;;  %8010 = vmatprep.subr.mxu1 %v5055_v9  ;;  %v5156_v27 = vld [vmem:[#allocation17 + $0xfe8] sm:$0xff] }
 0x520   : > { %8045 = vmatprep.subr.mxu0 %v5087_v13  ;;  %8011 = vmatpush3.msra.mxu1 %v5039_v18  ;;  %v5108_v2 = vld [vmem:[#allocation17 + $0xe68] sm:$0xff]  ;;  %v5155_v13 = vld [vmem:[#allocation17 + $0xfe0] sm:$0xff] }
 0x521   : > { %8046 = vmatpush3.msra.mxu0 %v5071_v21  ;;  %8012 = vmatprep.subr.mxu1 %v5054_v15  ;;  %v5140_v9 = vld [vmem:[#allocation17 + $0xf68] sm:$0xff]  ;;  %v5107_v18 = vld [vmem:[#allocation17 + $0xe60] sm:$0xff]  ;;  %v5154_v21 = vld [vmem:[#allocation17 + $0xfd8] sm:$0xff] }
 0x522   : > { %8047 = vmatprep.subr.mxu0 %v5086_v19  ;;  %8013 = vmatpush3.msra.mxu1 %v5038_v1  ;;  %v5106_v15 = vld [vmem:[#allocation17 + $0xe58] sm:$0xff]  ;;  %v5121_v1 = vld [vmem:[#allocation17 + $0xed0] sm:$0xff] }
 0x523   : > { %8048 = vmatpush3.msra.mxu0 %v5070_v41  ;;  %8014 = vmatprep.subr.mxu1 %v5053_v23  ;;  %v5138_v19 = vld [vmem:[#allocation17 + $0xf58] sm:$0xff]  ;;  %v5153_v41 = vld [vmem:[#allocation17 + $0xfd0] sm:$0xff] }
 0x524   : > { %8049 = vmatprep.subr.mxu0 %v5085_v30  ;;  %8015 = vmatpush3.msra.mxu1 %v5037_v26  ;;  %v5105_v23 = vld [vmem:[#allocation17 + $0xe50] sm:$0xff]  ;;  %v5120_v26 = vld [vmem:[#allocation17 + $0xec8] sm:$0xff] }
 0x525   : > { %8050 = vmatpush3.msra.mxu0 %v5069_v60  ;;  %8016 = vmatprep.subr.mxu1 %v5052_v12  ;;  %v5137_v30 = vld [vmem:[#allocation17 + $0xf50] sm:$0xff]  ;;  %v5152_v60 = vld [vmem:[#allocation17 + $0xfc8] sm:$0xff] }
 0x526   : > { %8051 = vmatprep.subr.mxu0 %v5084_v62  ;;  %8017 = vmatpush3.msra.mxu1 %v5036_v3  ;;  %v5104_v12 = vld [vmem:[#allocation17 + $0xe48] sm:$0xff]  ;;  %v5119_v3 = vld [vmem:[#allocation17 + $0xec0] sm:$0xff] }
 0x527   : > { %8052 = vmatpush3.msra.mxu0 %v5068_v37  ;;  %8018 = vmatprep.subr.mxu1 %v5051_v38  ;;  %v5136_v62 = vld [vmem:[#allocation17 + $0xf48] sm:$0xff]  ;;  %v5151_v37 = vld [vmem:[#allocation17 + $0xfc0] sm:$0xff] }
 0x528   : > { %8053 = vmatprep.subr.mxu0 %v5083_v40  ;;  %8019 = vmatpush3.msra.mxu1 %v5035_v25  ;;  %v5103_v38 = vld [vmem:[#allocation17 + $0xe40] sm:$0xff]  ;;  %v5118_v25 = vld [vmem:[#allocation17 + $0xeb8] sm:$0xff] }
 0x529   : > { %8054 = vmatpush3.msra.mxu0 %v5067_v33  ;;  %8020 = vmatprep.subr.mxu1 %v5050_v35  ;;  %v5135_v40 = vld [vmem:[#allocation17 + $0xf40] sm:$0xff]  ;;  %v5150_v33 = vld [vmem:[#allocation17 + $0xfb8] sm:$0xff] }
 0x52a   : > { %8055 = vmatprep.subr.mxu0 %v5082_v24  ;;  %8021 = vmatpush3.msra.mxu1 %v5034_v31  ;;  %v5102_v35 = vld [vmem:[#allocation17 + $0xe38] sm:$0xff]  ;;  %v5117_v31 = vld [vmem:[#allocation17 + $0xeb0] sm:$0xff] }
 0x52b   : > { %8056 = vmatpush3.msra.mxu0 %v5066_v42  ;;  %8022 = vmatprep.subr.mxu1 %v5049_v47  ;;  %v5134_v24 = vld [vmem:[#allocation17 + $0xf38] sm:$0xff]  ;;  %v5149_v42 = vld [vmem:[#allocation17 + $0xfb0] sm:$0xff] }
 0x52c   : > { %8057 = vmatprep.subr.mxu0 %v5081_v53  ;;  %8023 = vmatpush3.msra.mxu1 %v5033_v4  ;;  %v5101_v47 = vld [vmem:[#allocation17 + $0xe30] sm:$0xff]  ;;  %v5116_v4 = vld [vmem:[#allocation17 + $0xea8] sm:$0xff] }
 0x52d   : > { %8058 = vmatpush3.msra.mxu0 %v5065_v46  ;;  %8024 = vmatprep.subr.mxu1 %v5048_v59  ;;  %v5133_v53 = vld [vmem:[#allocation17 + $0xf30] sm:$0xff]  ;;  %v5148_v46 = vld [vmem:[#allocation17 + $0xfa8] sm:$0xff] }
 0x52e   : > { %8059 = vmatprep.subr.mxu0 %v5080_v48  ;;  %8025 = vmatpush3.msra.mxu1 %v5032_v56  ;;  %v5100_v59 = vld [vmem:[#allocation17 + $0xe28] sm:$0xff]  ;;  %v5115_v56 = vld [vmem:[#allocation17 + $0xea0] sm:$0xff] }
 0x52f   : > { %8060 = vmatpush3.msra.mxu0 %v5064_v17  ;;  %8026 = vmatprep.subr.mxu1 %v5047_v44  ;;  %v5132_v48 = vld [vmem:[#allocation17 + $0xf28] sm:$0xff]  ;;  %v5147_v17 = vld [vmem:[#allocation17 + $0xfa0] sm:$0xff] }
 0x530   : > { %8061 = vmatprep.subr.mxu0 %v5079_v61  ;;  %8027 = vmatpush3.msra.mxu1 %v5031_v52  ;;  %v5099_v44 = vld [vmem:[#allocation17 + $0xe20] sm:$0xff]  ;;  %v5114_v52 = vld [vmem:[#allocation17 + $0xe98] sm:$0xff] }
 0x531   : > { %8062 = vmatpush3.msra.mxu0 %v5063_v5  ;;  %6314 = vmatmul.mubr.f32.vlgmr.msra.gmra.mxu1 %v5328_v7  ;;  %v5131_v61 = vld [vmem:[#allocation17 + $0xf20] sm:$0xff]  ;;  %v5146_v5 = vld [vmem:[#allocation17 + $0xf98] sm:$0xff] }
 0x532   : > { %6384 = vmatmul.mubr.f32.vlgmr.msra.gmra.mxu0 %v5336_v29  ;;  %8066 = vmatprep.subr.mxu1 %v5126_v54  ;;  %v5098_v7 = vld [vmem:[#allocation17 + $0xe18] sm:$0xff]  ;;  %v5113_v29 = vld [vmem:[#allocation17 + $0xe90] sm:$0xff] }
 0x533   : > { %8101 = vmatprep.subr.mxu0 %v5158_v49  ;;  %8067 = vmatpush3.msra.mxu1 %v5110_v36  ;;  %v5130_v54 = vld [vmem:[#allocation17 + $0xf18] sm:$0xff]  ;;  %v5145_v49 = vld [vmem:[#allocation17 + $0xf90] sm:$0xff] }
 0x534   : > { %6453 = vmatprep.mubr.f32.mxu1 %v5348_v22  ;;  %8102 = vmatpush3.msra.mxu0 %v5142_v57  ;;  %v5097_v36 = vld [vmem:[#allocation17 + $0xe10] sm:$0xff]  ;;  %v5112_v22 = vld [vmem:[#allocation17 + $0xe88] sm:$0xff] }
 0x535   : > { %6523 = vmatprep.mubr.f32.mxu0 %v5356_v45  ;;  %8068 = vmatprep.subr.mxu1 %v5125_v11  ;;  %v5129_v57 = vld [vmem:[#allocation17 + $0xf10] sm:$0xff]  ;;  %v5144_v11 = vld [vmem:[#allocation17 + $0xf88] sm:$0xff] }
 0x536   : > { %8103 = vmatprep.subr.mxu0 %v5157_v58  ;;  %8069 = vmatpush3.msra.mxu1 %v5109_v51  ;;  %v5096_v45 = vld [vmem:[#allocation17 + $0xe08] sm:$0xff]  ;;  %v5111_v51 = vld [vmem:[#allocation17 + $0xe80] sm:$0xff] }
 0x537   : > { %8104 = vmatpush3.msra.mxu0 %v5141_v32  ;;  %8070 = vmatprep.subr.mxu1 %v5124_v6  ;;  %v5128_v58 = vld [vmem:[#allocation17 + $0xf08] sm:$0xff]  ;;  %v5143_v32 = vld [vmem:[#allocation17 + $0xf80] sm:$0xff] }
 0x538   : > { %8105 = vmatprep.subr.mxu0 %v5156_v27  ;;  %8071 = vmatpush3.msra.mxu1 %v5108_v2  ;;  %v5095_v6 = vld [vmem:[#allocation17 + $0xe00] sm:$0xff]  ;;  %v5190_v2 = vld [vmem:[#allocation17 + $0x10f8] sm:$0xff] }
 0x539   : > { %8106 = vmatpush3.msra.mxu0 %v5140_v9  ;;  %8072 = vmatprep.subr.mxu1 %v5123_v55  ;;  %v5127_v27 = vld [vmem:[#allocation17 + $0xf00] sm:$0xff]  ;;  %v10342_v9 = vld [vmem:[#allocation5 + $0x20] sm:$0xf]  ;;  %v5222_v55 = vld [vmem:[#allocation17 + $0x11f8] sm:$0xff] }
 0x53a   : > { %8107 = vmatprep.subr.mxu0 %v5155_v13  ;;  %8073 = vmatpush3.msra.mxu1 %v5107_v18  ;;  %v5174_v13 = vld [vmem:[#allocation17 + $0x1078] sm:$0xff] }
 0x53b   : > { %8108 = vmatpush3.msra.mxu0 %v5139_v50  ;;  %8074 = vmatprep.subr.mxu1 %v5122_v28  ;;  %v5206_v18 = vld [vmem:[#allocation17 + $0x1178] sm:$0xff]  ;;  %v5364_v50 = vrot.slane %v10342_v9, %v10142_v8  ;;  %v5189_v28 = vld [vmem:[#allocation17 + $0x10f0] sm:$0xff]  ;;  %v5187_v8 = vld [vmem:[#allocation17 + $0x10e0] sm:$0xff] }
 0x53c   : > { %8109 = vmatprep.subr.mxu0 %v5154_v21  ;;  %8075 = vmatpush3.msra.mxu1 %v5106_v15  ;;  %v5372_v21 = vrot.slane %v10342_v9, %v10165_v39  ;;  %v5221_v15 = vld [vmem:[#allocation17 + $0x11f0] sm:$0xff]  ;;  %v5203_v39 = vld [vmem:[#allocation17 + $0x1160] sm:$0xff] }
 0x53d   : > { %8110 = vmatpush3.msra.mxu0 %v5138_v19  ;;  %8076 = vmatprep.subr.mxu1 %v5121_v1  ;;  %v5173_v19 = vld [vmem:[#allocation17 + $0x1070] sm:$0xff]  ;;  %v5219_v1 = vld [vmem:[#allocation17 + $0x11e0] sm:$0xff] }
 0x53e   : > { %8111 = vmatprep.subr.mxu0 %v5153_v41  ;;  %8077 = vmatpush3.msra.mxu1 %v5105_v23  ;;  %v5171_v41 = vld [vmem:[#allocation17 + $0x1060] sm:$0xff]  ;;  %v5186_v23 = vld [vmem:[#allocation17 + $0x10d8] sm:$0xff] }
 0x53f   : > { %8112 = vmatpush3.msra.mxu0 %v5137_v30  ;;  %8078 = vmatprep.subr.mxu1 %v5120_v26  ;;  %v5218_v30 = vld [vmem:[#allocation17 + $0x11d8] sm:$0xff] }
 0x540   : > { %8113 = vmatprep.subr.mxu0 %v5152_v60  ;;  %8079 = vmatpush3.msra.mxu1 %v5104_v12  ;;  %v5170_v26 = vld [vmem:[#allocation17 + $0x1058] sm:$0xff]  ;;  %v5185_v12 = vld [vmem:[#allocation17 + $0x10d0] sm:$0xff] }
 0x541   : > { %8114 = vmatpush3.msra.mxu0 %v5136_v62  ;;  %8080 = vmatprep.subr.mxu1 %v5119_v3  ;;  %v5202_v60 = vld [vmem:[#allocation17 + $0x1158] sm:$0xff]  ;;  %v5217_v62 = vld [vmem:[#allocation17 + $0x11d0] sm:$0xff] }
 0x542   : > { %8115 = vmatprep.subr.mxu0 %v5151_v37  ;;  %8081 = vmatpush3.msra.mxu1 %v5103_v38  ;;  %v5169_v3 = vld [vmem:[#allocation17 + $0x1050] sm:$0xff]  ;;  %v5184_v38 = vld [vmem:[#allocation17 + $0x10c8] sm:$0xff] }
 0x543   : > { %8116 = vmatpush3.msra.mxu0 %v5135_v40  ;;  %8082 = vmatprep.subr.mxu1 %v5118_v25  ;;  %v5201_v37 = vld [vmem:[#allocation17 + $0x1150] sm:$0xff]  ;;  %v5216_v40 = vld [vmem:[#allocation17 + $0x11c8] sm:$0xff] }
 0x544   : > { %8117 = vmatprep.subr.mxu0 %v5150_v33  ;;  %8083 = vmatpush3.msra.mxu1 %v5102_v35  ;;  %v5168_v25 = vld [vmem:[#allocation17 + $0x1048] sm:$0xff]  ;;  %v5183_v35 = vld [vmem:[#allocation17 + $0x10c0] sm:$0xff] }
 0x545   : > { %8118 = vmatpush3.msra.mxu0 %v5134_v24  ;;  %8084 = vmatprep.subr.mxu1 %v5117_v31  ;;  %v5200_v33 = vld [vmem:[#allocation17 + $0x1148] sm:$0xff]  ;;  %v5215_v24 = vld [vmem:[#allocation17 + $0x11c0] sm:$0xff] }
 0x546   : > { %8119 = vmatprep.subr.mxu0 %v5149_v42  ;;  %8085 = vmatpush3.msra.mxu1 %v5101_v47  ;;  %v5167_v31 = vld [vmem:[#allocation17 + $0x1040] sm:$0xff]  ;;  %v5182_v47 = vld [vmem:[#allocation17 + $0x10b8] sm:$0xff] }
 0x547   : > { %8120 = vmatpush3.msra.mxu0 %v5133_v53  ;;  %8086 = vmatprep.subr.mxu1 %v5116_v4  ;;  %v5199_v42 = vld [vmem:[#allocation17 + $0x1140] sm:$0xff]  ;;  %v5214_v53 = vld [vmem:[#allocation17 + $0x11b8] sm:$0xff] }
 0x548   : > { %8121 = vmatprep.subr.mxu0 %v5148_v46  ;;  %8087 = vmatpush3.msra.mxu1 %v5100_v59  ;;  %v5166_v4 = vld [vmem:[#allocation17 + $0x1038] sm:$0xff]  ;;  %v5181_v59 = vld [vmem:[#allocation17 + $0x10b0] sm:$0xff] }
 0x549   : > { %8122 = vmatpush3.msra.mxu0 %v5132_v48  ;;  %8088 = vmatprep.subr.mxu1 %v5115_v56  ;;  %v5198_v46 = vld [vmem:[#allocation17 + $0x1138] sm:$0xff]  ;;  %v5213_v48 = vld [vmem:[#allocation17 + $0x11b0] sm:$0xff] }
 0x54a   : > { %8123 = vmatprep.subr.mxu0 %v5147_v17  ;;  %8089 = vmatpush3.msra.mxu1 %v5099_v44  ;;  %v5165_v56 = vld [vmem:[#allocation17 + $0x1030] sm:$0xff]  ;;  %v5180_v44 = vld [vmem:[#allocation17 + $0x10a8] sm:$0xff] }
 0x54b   : > { %8124 = vmatpush3.msra.mxu0 %v5131_v61  ;;  %8090 = vmatprep.subr.mxu1 %v5114_v52  ;;  %v5197_v17 = vld [vmem:[#allocation17 + $0x1130] sm:$0xff]  ;;  %v5212_v61 = vld [vmem:[#allocation17 + $0x11a8] sm:$0xff] }
 0x54c   : > { %8125 = vmatprep.subr.mxu0 %v5146_v5  ;;  %8091 = vmatpush3.msra.mxu1 %v5098_v7  ;;  %v5164_v52 = vld [vmem:[#allocation17 + $0x1028] sm:$0xff]  ;;  %v5179_v7 = vld [vmem:[#allocation17 + $0x10a0] sm:$0xff] }
 0x54d   : > { %8126 = vmatpush3.msra.mxu0 %v5130_v54  ;;  %8092 = vmatprep.subr.mxu1 %v5113_v29  ;;  %v5196_v5 = vld [vmem:[#allocation17 + $0x1128] sm:$0xff]  ;;  %v5211_v54 = vld [vmem:[#allocation17 + $0x11a0] sm:$0xff] }
 0x54e   : > { %8127 = vmatprep.subr.mxu0 %v5145_v49  ;;  %8093 = vmatpush3.msra.mxu1 %v5097_v36  ;;  %v5163_v29 = vld [vmem:[#allocation17 + $0x1020] sm:$0xff]  ;;  %v5178_v36 = vld [vmem:[#allocation17 + $0x1098] sm:$0xff] }
 0x54f   : > { %8128 = vmatpush3.msra.mxu0 %v5129_v57  ;;  %8094 = vmatprep.subr.mxu1 %v5112_v22  ;;  %v5195_v49 = vld [vmem:[#allocation17 + $0x1120] sm:$0xff]  ;;  %v5210_v57 = vld [vmem:[#allocation17 + $0x1198] sm:$0xff] }
 0x550   : > { %8129 = vmatprep.subr.mxu0 %v5144_v11  ;;  %8095 = vmatpush3.msra.mxu1 %v5096_v45  ;;  %v5162_v22 = vld [vmem:[#allocation17 + $0x1018] sm:$0xff]  ;;  %v5177_v45 = vld [vmem:[#allocation17 + $0x1090] sm:$0xff] }
 0x551   : > { %8130 = vmatpush3.msra.mxu0 %v5128_v58  ;;  %8096 = vmatprep.subr.mxu1 %v5111_v51  ;;  %v5194_v11 = vld [vmem:[#allocation17 + $0x1118] sm:$0xff]  ;;  %v5209_v58 = vld [vmem:[#allocation17 + $0x1190] sm:$0xff] }
 0x552   : > { %8131 = vmatprep.subr.mxu0 %v5143_v32  ;;  %8097 = vmatpush3.msra.mxu1 %v5095_v6  ;;  %v5161_v51 = vld [vmem:[#allocation17 + $0x1010] sm:$0xff]  ;;  %v5176_v6 = vld [vmem:[#allocation17 + $0x1088] sm:$0xff] }
 0x553   : > { %8132 = vmatpush3.msra.mxu0 %v5127_v27  ;;  %6454 = vmatmul.mubr.f32.vlgmr.msra.gmra.mxu1 %v5344_v34  ;;  %v5188_v34 = vld [vmem:[#allocation17 + $0x10e8] sm:$0xff]  ;;  %v5193_v32 = vld [vmem:[#allocation17 + $0x1110] sm:$0xff] }
 0x554   : > { %6524 = vmatmul.mubr.f32.vlgmr.msra.gmra.mxu0 %v5352_v14  ;;  %8136 = vmatprep.subr.mxu1 %v5190_v2  ;;  %v5204_v14 = vld [vmem:[#allocation17 + $0x1168] sm:$0xff] }
 0x555   : > { %8171 = vmatprep.subr.mxu0 %v5222_v55  ;;  %8137 = vmatpush3.msra.mxu1 %v5174_v13  ;;  %v5208_v27 = vld [vmem:[#allocation17 + $0x1188] sm:$0xff]  ;;  %v5175_v13 = vld [vmem:[#allocation17 + $0x1080] sm:$0xff] }
 0x556   : > { %6593 = vmatprep.mubr.f32.mxu1 %v5364_v50  ;;  %8172 = vmatpush3.msra.mxu0 %v5206_v18  ;;  %v5160_v2 = vld [vmem:[#allocation17 + $0x1008] sm:$0xff]  ;;  %v5207_v18 = vld [vmem:[#allocation17 + $0x1180] sm:$0xff] }
 0x557   : > { %6663 = vmatprep.mubr.f32.mxu0 %v5372_v21  ;;  %8138 = vmatprep.subr.mxu1 %v5189_v28  ;;  %v5192_v55 = vld [vmem:[#allocation17 + $0x1108] sm:$0xff]  ;;  %v5159_v50 = vld [vmem:[#allocation17 + $0x1000] sm:$0xff]  ;;  %v5360_v21 = vrot.slane %v10342_v9, %v10168_v16  ;;  %v6684_v16 = vld [vmem:[#allocation20 + $0x70] sm:$0xff] }
 0x558   : > { %8173 = vmatprep.subr.mxu0 %v5221_v15  ;;  %8139 = vmatpush3.msra.mxu1 %v5173_v19  ;;  %v5191_v28 = vld [vmem:[#allocation17 + $0x1100] sm:$0xff]  ;;  %v5368_v15 = vrot.slane %v10342_v9, %v10178_v20 }
 0x559   : > { %8174 = vmatpush3.msra.mxu0 %v5205_v63  ;;  %8140 = vmatprep.subr.mxu1 %v5188_v34  ;;  %v6685_v19 = vld [vmem:[#allocation20 + $0x78] sm:$0xff]  ;;  %v6683_v63 = vld [vmem:[#allocation20 + $0x68] sm:$0xff]  ;;  %v6682_v20 = vld [vmem:[#allocation20 + $0x60] sm:$0xff] }
 0x55a   : > { %8175 = vmatprep.subr.mxu0 %v5220_v43  ;;  %8141 = vmatpush3.msra.mxu1 %v5172_v10  ;;  %v6681_v9 = vld [vmem:[#allocation20 + $0x58] sm:$0xff]  ;;  %v6680_v34 = vld [vmem:[#allocation20 + $0x50] sm:$0xff]  ;;  %v6679_v43 = vld [vmem:[#allocation20 + $0x48] sm:$0xff] }
 0x55b   : > { %8176 = vmatpush3.msra.mxu0 %v5204_v14  ;;  %8142 = vmatprep.subr.mxu1 %v5187_v8  ;;  %v6678_v10 = vld [vmem:[#allocation20 + $0x40] sm:$0xff]  ;;  %v6677_v14 = vld [vmem:[#allocation20 + $0x38] sm:$0xff]  ;;  %v6676_v8 = vld [vmem:[#allocation20 + $0x30] sm:$0xff] }
 0x55c   : > { %8177 = vmatprep.subr.mxu0 %v5219_v1  ;;  %8143 = vmatpush3.msra.mxu1 %v5171_v41  ;;  %v6675_v1 = vld [vmem:[#allocation20 + $0x28] sm:$0xff]  ;;  %v6674_v41 = vld [vmem:[#allocation20 + $0x20] sm:$0xff] }
 0x55d   : > { %8178 = vmatpush3.msra.mxu0 %v5203_v39  ;;  %8144 = vmatprep.subr.mxu1 %v5186_v23  ;;  %v6673_v39 = vld [vmem:[#allocation20 + $0x18] sm:$0xff]  ;;  %v6672_v23 = vld [vmem:[#allocation20 + $0x10] sm:$0xff] }
 0x55e   : > { %8179 = vmatprep.subr.mxu0 %v5218_v30  ;;  %8145 = vmatpush3.msra.mxu1 %v5170_v26  ;;  %v6773_v30 = vld [vmem:[%s10496_s11 + $0x78] sm:$0xff]  ;;  %v6772_v26 = vld [vmem:[%s10496_s11 + $0x70] sm:$0xff] }
 0x55f   : > { %8180 = vmatpush3.msra.mxu0 %v5202_v60  ;;  %8146 = vmatprep.subr.mxu1 %v5185_v12  ;;  %v6671_v60 = vld [vmem:[#allocation20 + $0x8] sm:$0xff]  ;;  %v6771_v12 = vld [vmem:[%s10496_s11 + $0x68] sm:$0xff] }
 0x560   : > { %8181 = vmatprep.subr.mxu0 %v5217_v62  ;;  %8147 = vmatpush3.msra.mxu1 %v5169_v3  ;;  %v6670_v62 = vld [vmem:[#allocation20] sm:$0xff]  ;;  %v6770_v3 = vld [vmem:[%s10496_s11 + $0x60] sm:$0xff] }
 0x561   : > { %8182 = vmatpush3.msra.mxu0 %v5201_v37  ;;  %8148 = vmatprep.subr.mxu1 %v5184_v38  ;;  %v6769_v37 = vld [vmem:[%s10496_s11 + $0x58] sm:$0xff]  ;;  %v6768_v38 = vld [vmem:[%s10496_s11 + $0x50] sm:$0xff] }
 0x562   : > { %8183 = vmatprep.subr.mxu0 %v5216_v40  ;;  %8149 = vmatpush3.msra.mxu1 %v5168_v25  ;;  %v6767_v40 = vld [vmem:[%s10496_s11 + $0x48] sm:$0xff]  ;;  %v6766_v25 = vld [vmem:[%s10496_s11 + $0x40] sm:$0xff] }
 0x563   : > { %8184 = vmatpush3.msra.mxu0 %v5200_v33  ;;  %8150 = vmatprep.subr.mxu1 %v5183_v35  ;;  %v6765_v33 = vld [vmem:[%s10496_s11 + $0x38] sm:$0xff]  ;;  %v6764_v35 = vld [vmem:[%s10496_s11 + $0x30] sm:$0xff] }
 0x564   : > { %8185 = vmatprep.subr.mxu0 %v5215_v24  ;;  %8151 = vmatpush3.msra.mxu1 %v5167_v31  ;;  %v6763_v24 = vld [vmem:[%s10496_s11 + $0x28] sm:$0xff]  ;;  %v6762_v31 = vld [vmem:[%s10496_s11 + $0x20] sm:$0xff] }
 0x565   : > { %8186 = vmatpush3.msra.mxu0 %v5199_v42  ;;  %8152 = vmatprep.subr.mxu1 %v5182_v47  ;;  %v6761_v42 = vld [vmem:[%s10496_s11 + $0x18] sm:$0xff]  ;;  %v7608_v47 = vpop.f32.mrf.mxu1 }
 0x566   : > { %8187 = vmatprep.subr.mxu0 %v5214_v53  ;;  %8153 = vmatpush3.msra.mxu1 %v5166_v4  ;;  %v7643_v4 = vpop.f32.mrf.mxu0 }
 0x567   : > { %8188 = vmatpush3.msra.mxu0 %v5198_v46  ;;  %8154 = vmatprep.subr.mxu1 %v5181_v59  ;;  %v7609_v53 = vpop.f32.mrf.mxu1 }
 0x568   : > { %8189 = vmatprep.subr.mxu0 %v5213_v48  ;;  %8155 = vmatpush3.msra.mxu1 %v5165_v56  ;;  %v7610_v59 = vadd.f32 %v7609_v53, %v7608_v47  ;;  %v5223_v48 = vld [vmem:[#allocation18] sm:$0x1]  ;;  %v7644_v56 = vpop.f32.mrf.mxu0 }
 0x569   : > { %8190 = vmatpush3.msra.mxu0 %v5197_v17  ;;  %8156 = vmatprep.subr.mxu1 %v5180_v44  ;;  %v7678_v46 = vpop.f32.mrf.mxu1 }
 0x56a   : > { %8191 = vmatprep.subr.mxu0 %v5212_v61  ;;  %8157 = vmatpush3.msra.mxu1 %v5164_v52  ;;  %v5476_v44 = vadd.f32 %v7610_v59, %v5223_v48  ;;  %v7713_v61 = vpop.f32.mrf.mxu0 }
 0x56b   : > { %8192 = vmatpush3.msra.mxu0 %v5196_v5  ;;  %8158 = vmatprep.subr.mxu1 %v5179_v7  ;;  %v7679_v17 = vpop.f32.mrf.mxu1  ;;  %v7645_v5 = vadd.f32 %v7644_v56, %v7643_v4 }
 0x56c   : > { %8193 = vmatprep.subr.mxu0 %v5211_v54  ;;  %8159 = vmatpush3.msra.mxu1 %v5163_v29  ;;  %v7680_v7 = vadd.f32 %v7679_v17, %v7678_v46  ;;  %v7714_v29 = vpop.f32.mrf.mxu0 }
 0x56d   : > { %8194 = vmatpush3.msra.mxu0 %v5195_v49  ;;  %8160 = vmatprep.subr.mxu1 %v5178_v36  ;;  %v7748_v52 = vpop.f32.mrf.mxu1  ;;  %v5546_v54 = vadd.f32 %v7645_v5, %v5476_v44  ;;  %v6760_v5 = vld [vmem:[%s10496_s11 + $0x10] sm:$0xff] }
 0x56e   : > { %8195 = vmatprep.subr.mxu0 %v5210_v57  ;;  %8161 = vmatpush3.msra.mxu1 %v5162_v22  ;;  %v7783_v57 = vpop.f32.mrf.mxu0 }
 0x56f   : > { %8196 = vmatpush3.msra.mxu0 %v5194_v11  ;;  %8162 = vmatprep.subr.mxu1 %v5177_v45  ;;  %v7749_v49 = vpop.f32.mrf.mxu1  ;;  %v5616_v36 = vadd.f32 %v7680_v7, %v5546_v54  ;;  %v7715_v11 = vadd.f32 %v7714_v29, %v7713_v61  ;;  %v6759_v7 = vld [vmem:[%s10496_s11 + $0x8] sm:$0xff]  ;;  %v6758_v54 = vld [vmem:[%s10496_s11] sm:$0xff]  ;;  %v6686_v29 = vld [vmem:[#allocation21] sm:$0x1] }
 0x570   : > { %8197 = vmatprep.subr.mxu0 %v5209_v58  ;;  %8163 = vmatpush3.msra.mxu1 %v5161_v51  ;;  %v7750_v45 = vadd.f32 %v7749_v49, %v7748_v52  ;;  %v7784_v51 = vpop.f32.mrf.mxu0 }
 0x571   : > { %8198 = vmatpush3.msra.mxu0 %v5193_v32  ;;  %8164 = vmatprep.subr.mxu1 %v5176_v6  ;;  %v5686_v58 = vadd.f32 %v7715_v11, %v5616_v36  ;;  %v6774_v11 = vld [vmem:[%s10497_s12] sm:$0x1] }
 0x572   : > { %8199 = vmatprep.subr.mxu0 %v5208_v27  ;;  %8165 = vmatpush3.msra.mxu1 %v5160_v2 }
 0x573   : > { %8200 = vmatpush3.msra.mxu0 %v5192_v55  ;;  %8166 = vmatprep.subr.mxu1 %v5175_v13  ;;  %v5756_v6 = vadd.f32 %v7750_v45, %v5686_v58  ;;  %v7785_v55 = vadd.f32 %v7784_v51, %v7783_v57 }
 0x574   : > { %8201 = vmatprep.subr.mxu0 %v5207_v18  ;;  %8167 = vmatpush3.msra.mxu1 %v5159_v50 }
 0x575   : > { %8202 = vmatpush3.msra.mxu0 %v5191_v28  ;;  %6594 = vmatmul.mubr.f32.vlgmr.msra.gmra.mxu1 %v5360_v21  ;;  %v5826_v18 = vadd.f32 %v7785_v55, %v5756_v6 }
 0x576   : > { %6664 = vmatmul.mubr.f32.vlgmr.msra.gmra.mxu0 %v5368_v15  ;;  %8441 = vmatprep.subr.mxu1 %v9128_v0 }
 0x577   : > { %8473 = vmatprep.mubr.msk.f32.mxu1 %vm9131_vm5, %v9128_v0  ;;  %8476 = vmatprep.subr.mxu0 %v9128_v0 }
 0x578   : > { %8508 = vmatprep.mubr.msk.f32.mxu0 %vm9131_vm5, %v9128_v0  ;;  %8442 = vmatpush3.msra.mxu1 %v6685_v19 }
 0x579   : > { %8443 = vmatprep.subr.mxu1 %v9128_v0  ;;  %8477 = vmatpush3.msra.mxu0 %v6773_v30 }
 0x57a   : > { %8444 = vmatpush3.msra.mxu1 %v6684_v16  ;;  %8478 = vmatprep.subr.mxu0 %v9128_v0 }
 0x57b   : > { %8445 = vmatprep.subr.mxu1 %v9128_v0  ;;  %8479 = vmatpush3.msra.mxu0 %v6772_v26 }
 0x57c   : > { %8446 = vmatpush3.msra.mxu1 %v6683_v63  ;;  %8480 = vmatprep.subr.mxu0 %v9128_v0 }
 0x57d   : > { %8447 = vmatprep.subr.mxu1 %v9128_v0  ;;  %8481 = vmatpush3.msra.mxu0 %v6771_v12 }
 0x57e   : > { %8448 = vmatpush3.msra.mxu1 %v6682_v20  ;;  %8482 = vmatprep.subr.mxu0 %v9128_v0 }
 0x57f   : > { %8449 = vmatprep.subr.mxu1 %v9128_v0  ;;  %8483 = vmatpush3.msra.mxu0 %v6770_v3 }
 0x580   : > { %8450 = vmatpush3.msra.mxu1 %v6681_v9  ;;  %8484 = vmatprep.subr.mxu0 %v9128_v0 }
 0x581   : > { %8451 = vmatprep.subr.mxu1 %v9128_v0  ;;  %8485 = vmatpush3.msra.mxu0 %v6769_v37 }
 0x582   : > { %8452 = vmatpush3.msra.mxu1 %v6680_v34  ;;  %8486 = vmatprep.subr.mxu0 %v9128_v0 }
 0x583   : > { %8453 = vmatprep.subr.mxu1 %v9128_v0  ;;  %8487 = vmatpush3.msra.mxu0 %v6768_v38 }
 0x584   : > { %8454 = vmatpush3.msra.mxu1 %v6679_v43  ;;  %8488 = vmatprep.subr.mxu0 %v9128_v0 }
 0x585   : > { %8455 = vmatprep.subr.mxu1 %v9128_v0  ;;  %8489 = vmatpush3.msra.mxu0 %v6767_v40 }
 0x586   : > { %8456 = vmatpush3.msra.mxu1 %v6678_v10  ;;  %8490 = vmatprep.subr.mxu0 %v9128_v0 }
 0x587   : > { %8457 = vmatprep.subr.mxu1 %v9128_v0  ;;  %8491 = vmatpush3.msra.mxu0 %v6766_v25 }
 0x588   : > { %8458 = vmatpush3.msra.mxu1 %v6677_v14  ;;  %8492 = vmatprep.subr.mxu0 %v9128_v0 }
 0x589   : > { %8459 = vmatprep.subr.mxu1 %v9128_v0  ;;  %8493 = vmatpush3.msra.mxu0 %v6765_v33 }
 0x58a   : > { %8460 = vmatpush3.msra.mxu1 %v6676_v8  ;;  %8494 = vmatprep.subr.mxu0 %v9128_v0 }
 0x58b   : > { %8461 = vmatprep.subr.mxu1 %v9128_v0  ;;  %8495 = vmatpush3.msra.mxu0 %v6764_v35  ;;  %v7818_v22 = vpop.f32.mrf.mxu1 }
 0x58c   : > { %8462 = vmatpush3.msra.mxu1 %v6675_v1  ;;  %8496 = vmatprep.subr.mxu0 %v9128_v0  ;;  %v7853_v27 = vpop.f32.mrf.mxu0 }
 0x58d   : > { %8463 = vmatprep.subr.mxu1 %v9128_v0  ;;  %8497 = vmatpush3.msra.mxu0 %v6763_v24  ;;  %v7819_v32 = vpop.f32.mrf.mxu1 }
 0x58e   : > { %8464 = vmatpush3.msra.mxu1 %v6674_v41  ;;  %8498 = vmatprep.subr.mxu0 %v9128_v0  ;;  %v7820_v13 = vadd.f32 %v7819_v32, %v7818_v22  ;;  %v7854_v50 = vpop.f32.mrf.mxu0 }
 0x58f   : > { %8465 = vmatprep.subr.mxu1 %v9128_v0  ;;  %8499 = vmatpush3.msra.mxu0 %v6762_v31  ;;  %v7855_v16 = vadd.f32 %v7854_v50, %v7853_v27 }
 0x590   : > { %8466 = vmatpush3.msra.mxu1 %v6673_v39  ;;  %8500 = vmatprep.subr.mxu0 %v9128_v0  ;;  %v5896_v21 = vadd.f32 %v7820_v13, %v5826_v18 }
 0x591   : > { %8467 = vmatprep.subr.mxu1 %v9128_v0  ;;  %8501 = vmatpush3.msra.mxu0 %v6761_v42 }
 0x592   : > { %8468 = vmatpush3.msra.mxu1 %v6672_v23  ;;  %8502 = vmatprep.subr.mxu0 %v9128_v0  ;;  %v5966_v20 = vadd.f32 %v7855_v16, %v5896_v21 }
 0x593   : > { %8469 = vmatprep.subr.mxu1 %v9128_v0  ;;  %8503 = vmatpush3.msra.mxu0 %v6760_v5 }
 0x594   : > { %8470 = vmatpush3.msra.mxu1 %v6671_v60  ;;  %8504 = vmatprep.subr.mxu0 %v9128_v0 }
 0x595   : > { %8471 = vmatprep.subr.mxu1 %v9128_v0  ;;  %8505 = vmatpush3.msra.mxu0 %v6759_v7 }
 0x596   : > { %8472 = vmatpush3.msra.mxu1 %v6670_v62  ;;  %8506 = vmatprep.subr.mxu0 %v9128_v0 }
 0x597   : > { %8507 = vmatpush3.msra.mxu0 %v6758_v54 }
 0x5ad   : > { %v7888_v2 = vpop.f32.mrf.mxu1 }
 0x5ae   : > { %v7923_v15 = vpop.f32.mrf.mxu0 }
 0x5af   : > { %v7889_v28 = vpop.f32.mrf.mxu1 }
 0x5b0   : > { %v7890_v63 = vadd.f32 %v7889_v28, %v7888_v2  ;;  %v7924_v9 = vpop.f32.mrf.mxu0 }
 0x5b1   : > { %v7925_v8 = vadd.f32 %v7924_v9, %v7923_v15 }
 0x5b2   : > { %v6036_v43 = vadd.f32 %v7890_v63, %v5966_v20 }
 0x5b4   : > { %v6106_v41 = vadd.f32 %v7925_v8, %v6036_v43 }
 0x5cf   : > { %v7958_v19 = vpop.f32.mrf.mxu1 }
 0x5d0   : > { %v7993_v10 = vpop.f32.mrf.mxu0 }
 0x5d1   : > { %v7959_v34 = vpop.f32.mrf.mxu1 }
 0x5d2   : > { %v7960_v1 = vadd.f32 %v7959_v34, %v7958_v19  ;;  %v7994_v39 = vpop.f32.mrf.mxu0 }
 0x5d3   : > { %v7995_v12 = vadd.f32 %v7994_v39, %v7993_v10 }
 0x5d4   : > { %v6176_v30 = vadd.f32 %v7960_v1, %v6106_v41 }
 0x5d6   : > { %v6246_v3 = vadd.f32 %v7995_v12, %v6176_v30 }
 0x5f1   : > { %v8028_v14 = vpop.f32.mrf.mxu1 }
 0x5f2   : > { %v8063_v26 = vpop.f32.mrf.mxu0 }
 0x5f3   : > { %v8029_v23 = vpop.f32.mrf.mxu1 }
 0x5f4   : > { %v8030_v62 = vadd.f32 %v8029_v23, %v8028_v14  ;;  %v8064_v37 = vpop.f32.mrf.mxu0 }
 0x5f5   : > { %v8065_v33 = vadd.f32 %v8064_v37, %v8063_v26 }
 0x5f6   : > { %v6316_v40 = vadd.f32 %v8030_v62, %v6246_v3 }
 0x5f8   : > { %v6386_v24 = vadd.f32 %v8065_v33, %v6316_v40 }
 0x613   : > { %v8098_v60 = vpop.f32.mrf.mxu1 }
 0x614   : > { %v8133_v25 = vpop.f32.mrf.mxu0 }
 0x615   : > { %v8099_v38 = vpop.f32.mrf.mxu1 }
 0x616   : > { %v8100_v35 = vadd.f32 %v8099_v38, %v8098_v60  ;;  %v8134_v31 = vpop.f32.mrf.mxu0 }
 0x617   : > { %v8135_v53 = vadd.f32 %v8134_v31, %v8133_v25 }
 0x618   : > { %v6456_v42 = vadd.f32 %v8100_v35, %v6386_v24 }
 0x61a   : > { %v6526_v59 = vadd.f32 %v8135_v53, %v6456_v42 }
 0x635   : > { %v8168_v47 = vpop.f32.mrf.mxu1 }
 0x636   : > { %v8203_v4 = vpop.f32.mrf.mxu0 }
 0x637   : > { %v8169_v46 = vpop.f32.mrf.mxu1 }
 0x638   : > { %v8170_v48 = vadd.f32 %v8169_v46, %v8168_v47  ;;  %v8204_v56 = vpop.f32.mrf.mxu0 }
 0x639   : > { %v8205_v44 = vadd.f32 %v8204_v56, %v8203_v4 }
 0x63a   : > { %v6596_v17 = vadd.f32 %v8170_v48, %v6526_v59 }
 0x63c   : > { %v6666_v61 = vadd.f32 %v8205_v44, %v6596_v17 }
 0x63e   : > { %v6669_v52 = vmax.f32 %v6666_v61, 0.0 }
 0x640   : > { %8474 = vmatmul.mubr.f32.vlgmr.msra.gmra.mxu1 %v6669_v52 }
 0x700   : > { %v6753_v49 = vpop.f32.mrf.mxu1 }
 0x701   : > { %v6754_v36 = vadd.f32 %v6753_v49, %v6686_v29 }
 0x702   : > { %v8475_v57 = vpop.f32.mrf.mxu1 }
 0x703   : > { %v6757_v22 = vmax.f32 %v6754_v36, 0.0 }
 0x705   : > { %8509 = vmatmul.mubr.f32.vlgmr.msra.gmra.mxu0 %v6757_v22 }
 0x7c5   : > { %v6841_v45 = vpop.f32.mrf.mxu0 }
 0x7c6   : > { %v6842_v58 = vadd.f32 %v6841_v45, %v6774_v11 }
 0x7c7   : > { %v8510_v0 = vpop.f32.mrf.mxu0 }
 0x7c8   : > { %6845 = vst [vmem:[%s568_s16] sm:$0x1] %v6842_v58 }
 0x7c9   : > { %9041 = shalt.err (!%p9038_p9)
}
 0x7ca   : > { %s9042_s17 = scalar_lea.hbm %s10450_s15, 16  ;;  %s9046_s30 = scalar_lea.hbm %s10498_s13, 32 }
 0x7cb   : > { %p9043_p3 = scmp.ne.s32.totalorder %s10450_s15, %s9042_s17  ;;  %p9047_p10 = scmp.lt.s32.totalorder %s10450_s15, %s10498_s13 }
 0x7cc   : > { %p9048_p4 = scmp.lt.s32.totalorder %s9046_s30, %s9042_s17 }
 0x7cd   : > { %p9044_p5 = pnand %p9043_p3, %p10532_p11 }
 0x7ce   : > { %p9049_p7 = por %p9048_p4, %p9047_p10 }
 0x7cf   : > { %p9045_p6 = pneg %p9044_p5 }
 0x7d1   : > { %p9050_p8 = pnand %p9049_p7, %p9045_p6 }
 0x7d3   : > { %9053 = shalt.err (!%p9050_p8)
}
 0x7d4   : > { %8553 = dma.vmem_to_hbm [thread:$0]  (%p10532_p11), %s6860_s19, 16, %s10450_s15, %s6847_s22  }
 0x7d5 PF: > { %s10533_s23 = sld [smem:[#allocation34_spill]]  ;;  %p8610_p13 = scmp.ge.s32.totalorder %s9112_s28, 2 }
 0x7d6   : > { %s6871_s21 = sand.u32 1, %s9100_s25  }
 0x7d7   : > { %s6872_s24 = scalar_lea.sflag [#allocation8], %s6871_s21 }
 0x7db   : > { %p10534_p0 = scmp.ne.s32.totalorder %s10533_s23, 0 }
 0x7dd   : > { %p8587_p1 = pnand %p8610_p13, %p10534_p0 }
 0x7df   : > { %p8588_p2 = pneg %p8587_p1 }
 0x7e1   : > { %9095 = dma.done.wait (%p8588_p2), %s6872_s24, 16  }
 0x7e2   : > { %9097 = vsyncadd (%p8588_p2), %s6872_s24, 4294967280  ;;  %s10535_s28 = sld [smem:[#allocation32_spill]]  ;;  %s10538_s25 = smov %s9104_s26 }
 0x7e3   : > { %s10536_s29 = sld [smem:[#allocation31_spill]] }
 0x7e4   : > { %s10537_s27 = sld [smem:[#allocation33_spill]] }
 0x7e8   : > { %p29_p12 = scmp.ge.s32.totalorder %s10535_s28, 4  }
 0x7e9   : > { %s10539_s26 = smov %s10536_s29 }
 0x7ea   :  { %31 = sbr.rel (!%p29_p12) target bundleno = 11 (0xb), region = 162 }
 0x7ef   :  { %6876 = vsyncpa [#allocation7], 1 }
 0x7f0   :  { %6878 = vsyncpa [#allocation7 + $0x1], 1 }
 0x7f1   :  { %6879 = vsyncpa [#allocation10], 1 }
 0x7f2   :  { %6880 = vsyncpa [#allocation13], 1 }
 0x7f3   :  { %6881 = vsyncpa [#allocation16], 1 }
 0x7f4   :  { %6882 = vsyncpa [#allocation19], 1 }
 0x7f5   :  { %6883 = vsyncpa [#allocation22], 1 }
 0x7f6   :  { %6884 = vsyncpa [#allocation8], 1 }
 0x7f7   :  { %6886 = vsyncpa [#allocation8 + $0x1], 1 }

</bundles_post_ra>
